<compile_context>
chip_gen: v7x
topology: tpu7x:2x2x1
jax: 0.10.0
libtpu: 0.0.40
codegen_flags: <defaults>
</compile_context>

<pallas_src>
import functools
import math

import jax
import jax.numpy as jnp
from jax import lax
from jax.experimental import pallas as pl
from jax.experimental.pallas import tpu as pltpu


def _round_up(n, m):
    return ((n + m - 1) // m) * m


def _cdiv(a, b):
    return -(-a // b)


# ----------------------------------------------------------------------------
# Row-parallel precompute kernels (bf16 MXU operands, f32 accumulate)
# ----------------------------------------------------------------------------
def _input_gates_kernel(x_ref, w_in_ref, b_in_ref, w_ih_ref, b_ih_ref, o_ref):
    # o = relu(x @ W_in + b_in) @ W_ih0 + b_ih0        (layer-0 gates, hoisted)
    xb = x_ref[...].astype(w_in_ref.dtype)
    h = jnp.dot(xb, w_in_ref[...], preferred_element_type=jnp.float32)
    h = jnp.maximum(h + b_in_ref[...], 0.0)
    g = jnp.dot(h.astype(w_ih_ref.dtype), w_ih_ref[...],
                preferred_element_type=jnp.float32)
    o_ref[...] = (g + b_ih_ref[...]).astype(o_ref.dtype)


def _gates_only_kernel(x_ref, w_ih_ref, b_ih_ref, o_ref):
    # o = x @ W_ih0 + b_ih0                            (has_input=False path)
    xb = x_ref[...].astype(w_ih_ref.dtype)
    g = jnp.dot(xb, w_ih_ref[...], preferred_element_type=jnp.float32)
    o_ref[...] = (g + b_ih_ref[...]).astype(o_ref.dtype)


def _row_tiled(kernel, x2d, consts, out_cols, out_dtype, block_rows=256):
    """Apply a rowwise kernel over (N, Din) with a parallel row grid."""
    n, din = x2d.shape
    blk = block_rows if n > block_rows else _round_up(n, 16)
    n_pad = _round_up(n, blk)
    if n_pad != n:
        x2d = jnp.pad(x2d, ((0, n_pad - n), (0, 0)))
    in_specs = [pl.BlockSpec((blk, din), lambda i: (i, 0))]
    for a in consts:
        in_specs.append(pl.BlockSpec(a.shape, lambda i: (0, 0)))
    out = pl.pallas_call(
        kernel,
        grid_spec=pltpu.PrefetchScalarGridSpec(
            num_scalar_prefetch=0,
            grid=(n_pad // blk,),
            in_specs=in_specs,
            out_specs=pl.BlockSpec((blk, out_cols), lambda i: (i, 0)),
        ),
        out_shape=jax.ShapeDtypeStruct((n_pad, out_cols), out_dtype),
        compiler_params=pltpu.CompilerParams(
            dimension_semantics=("parallel",)),
    )(x2d, *consts)
    return out[:n]


# ----------------------------------------------------------------------------
# Fused multi-layer GRU recurrence (+ fused output MLP) over time chunks
# ----------------------------------------------------------------------------
def _gru_stack_kernel(*refs, num_layers, chunk_steps, total_steps, hidden_pad,
                      batch_rows, out_pad, has_output, needs_mask):
    """Grid = (batch_blocks ['parallel'], time_chunks ['arbitrary'])."""
    L, Hp, Bb = num_layers, hidden_pad, batch_rows

    idx = 0
    gx0_ref = refs[idx]; idx += 1          # (chunk, Bb, 3Hp)  bf16
    h0_ref = refs[idx]; idx += 1           # (L, Bb, Hp)       f32
    w_hh_ref = refs[idx]; idx += 1         # (L, Hp, 3Hp)      bf16
    b_hh_ref = refs[idx]; idx += 1         # (L, 1, 3Hp)       f32
    if L > 1:
        w_ih_ref = refs[idx]; b_ih_ref = refs[idx + 1]; idx += 2
    else:
        w_ih_ref = b_ih_ref = None
    if has_output:
        w1_ref, b1_ref, w2_ref, b2_ref = refs[idx:idx + 4]; idx += 4
    out_ref = refs[idx]; idx += 1          # (chunk, Bb, Op) or (chunk, Bb, Hp)
    hT_ref = refs[idx]; idx += 1           # (L, Bb, Hp): output AND carry
    y_dst = refs[idx] if has_output else out_ref   # VMEM y scratch if MLP fused

    c = pl.program_id(1)
    mxu_dtype = w_hh_ref.dtype

    @pl.when(c == 0)
    def _():
        hT_ref[...] = h0_ref[...]          # resident accumulator = carry

    hs0 = tuple(hT_ref[l] for l in range(L))

    def step(i, hs):
        # Recurrent matmuls depend only on the previous step's hidden states,
        # so issue all of them first: the MXU pipelines L matmuls back-to-back
        # instead of each waiting behind the lower layer's sigmoid/tanh.
        ghs = [jnp.dot(hs[l].astype(mxu_dtype), w_hh_ref[l],
                       preferred_element_type=jnp.float32) + b_hh_ref[l]
               for l in range(L)]
        new_hs = []
        below = None
        for l in range(L):
            h_prev = hs[l]
            if l == 0:
                gx = gx0_ref[i].astype(jnp.float32)
            else:
                gx = (jnp.dot(below.astype(mxu_dtype), w_ih_ref[l - 1],
                              preferred_element_type=jnp.float32)
                      + b_ih_ref[l - 1])
            gh = ghs[l]
            # PyTorch gate order [reset, update, new]; each slice 128-aligned.
            r = jax.nn.sigmoid(gx[:, 0 * Hp:1 * Hp] + gh[:, 0 * Hp:1 * Hp])
            z = jax.nn.sigmoid(gx[:, 1 * Hp:2 * Hp] + gh[:, 1 * Hp:2 * Hp])
            n = jnp.tanh(gx[:, 2 * Hp:3 * Hp] + r * gh[:, 2 * Hp:3 * Hp])
            h_new = (1.0 - z) * n + z * h_prev
            if needs_mask:   # only compiled in when T % chunk_steps != 0
                valid = (c * chunk_steps + i) < total_steps
                h_new = jnp.where(valid, h_new, h_prev)
            new_hs.append(h_new)
            below = h_new
        y_dst[i] = new_hs[-1]
        return tuple(new_hs)

    hs = lax.fori_loop(0, chunk_steps, step, hs0,
                       unroll=min(8, chunk_steps))

    for l in range(L):
        hT_ref[l] = hs[l]

    if has_output:
        # Fused output MLP over the whole chunk (chunk*Bb rows -> MXU
        # efficient); output is lane-dense (out_pad = multiple of 128).
        y2 = y_dst[...].reshape(chunk_steps * Bb, Hp).astype(mxu_dtype)
        h1 = jnp.dot(y2, w1_ref[...], preferred_element_type=jnp.float32)
        h1 = jnp.maximum(h1 + b1_ref[...], 0.0).astype(mxu_dtype)
        o = jnp.dot(h1, w2_ref[...], preferred_element_type=jnp.float32)
        o = o + b2_ref[...]
        out_ref[...] = o.reshape(chunk_steps, Bb, out_pad).astype(out_ref.dtype)


def _gru_stack_vmem_bytes(chunk, Bb, Hp, L, Ep, Op, has_output):
    """Resident VMEM estimate for one gru_stack grid iteration (with 2x bufs)."""
    G3 = 3 * Hp
    est = 2 * chunk * Bb * G3 * 2                    # gx0 chunk (bf16, 2 bufs)
    est += 2 * L * Bb * Hp * 4                       # h0
    est += 2 * L * Bb * Hp * 4                       # hT carry/output
    est += 2 * (L * Hp * G3 * 2 + L * G3 * 4)        # w_hh + b_hh
    if L > 1:
        est += 2 * ((L - 1) * Hp * G3 * 2 + (L - 1) * G3 * 4)
    if has_output:
        est += 2 * chunk * Bb * Op * 4               # fused MLP output chunk
        est += 2 * (Hp * Ep * 2 + Ep * Op * 2 + Ep * 4 + Op * 4)
        est += chunk * Bb * Hp * 4                   # y scratch
    else:
        est += 2 * chunk * Bb * Hp * 4               # y output chunk
    return est


def gru_stack(packed, gx0, h0, *, chunk_steps, total_steps, batch_blocks=1):
    """Fused multi-layer GRU (+ optional fused MLP) over time."""
    Tp, Bp, G3 = gx0.shape
    L, _, Hp = h0.shape
    nb = batch_blocks
    Bb = Bp // nb
    nc = Tp // chunk_steps
    has_output = packed["has_output"]
    Op = packed["Op"] if has_output else Hp
    Ep = packed["Ep"] if has_output else 0

    inputs = [gx0, h0, packed["w_hh_all"], packed["b_hh_all"]]
    in_specs = [
        pl.BlockSpec((chunk_steps, Bb, G3), lambda b, c: (c, b, 0)),
        pl.BlockSpec((L, Bb, Hp), lambda b, c: (0, b, 0)),
        pl.BlockSpec((L, Hp, G3), lambda b, c: (0, 0, 0)),
        pl.BlockSpec((L, 1, G3), lambda b, c: (0, 0, 0)),
    ]
    if L > 1:
        inputs += [packed["w_ih_rest"], packed["b_ih_rest"]]
        in_specs += [
            pl.BlockSpec((L - 1, Hp, G3), lambda b, c: (0, 0, 0)),
            pl.BlockSpec((L - 1, 1, G3), lambda b, c: (0, 0, 0)),
        ]
    if has_output:
        inputs += [packed["out_w1_t"], packed["out_b1"],
                   packed["out_w2_t"], packed["out_b2"]]
        in_specs += [
            pl.BlockSpec((Hp, Ep), lambda b, c: (0, 0)),
            pl.BlockSpec((1, Ep), lambda b, c: (0, 0)),
            pl.BlockSpec((Ep, Op), lambda b, c: (0, 0)),
            pl.BlockSpec((1, Op), lambda b, c: (0, 0)),
        ]

    scratch = []
    if has_output:
        scratch.append(pltpu.VMEM((chunk_steps, Bb, Hp), jnp.float32))

    kernel = functools.partial(
        _gru_stack_kernel, num_layers=L, chunk_steps=chunk_steps,
        total_steps=total_steps, hidden_pad=Hp, batch_rows=Bb, out_pad=Op,
        has_output=has_output, needs_mask=(Tp != total_steps))

    est = _gru_stack_vmem_bytes(chunk_steps, Bb, Hp, L, Ep, Op, has_output)
    vmem_limit = int(max(2 * est, 32 * 2**20))       # >= scoped defaults

    out, hT = pl.pallas_call(
        kernel,
        grid_spec=pltpu.PrefetchScalarGridSpec(
            num_scalar_prefetch=0,
            grid=(nb, nc),
            in_specs=in_specs,
            out_specs=[
                pl.BlockSpec((chunk_steps, Bb, Op), lambda b, c: (c, b, 0)),
                pl.BlockSpec((L, Bb, Hp), lambda b, c: (0, b, 0)),
            ],
            scratch_shapes=scratch,
        ),
        out_shape=(
            jax.ShapeDtypeStruct((Tp, Bp, Op), jnp.float32),
            jax.ShapeDtypeStruct((L, Bp, Hp), jnp.float32),
        ),
        compiler_params=pltpu.CompilerParams(
            dimension_semantics=("parallel", "arbitrary"),
            vmem_limit_bytes=vmem_limit),
    )(*inputs)
    return out, hT


# ----------------------------------------------------------------------------
# Parameter init (mirrors GRUPlain.__init__ shapes / inits) and TPU packing
# ----------------------------------------------------------------------------
def _xavier_uniform(key, shape, gain):
    fan_out, fan_in = shape        # torch Linear/GRU weight layout (out, in)
    a = gain * math.sqrt(6.0 / (fan_in + fan_out))
    return jax.random.uniform(key, shape, jnp.float32, -a, a)


def init_gru_plain_params(key, *, input_size, embedding_size, hidden_size,
                          num_layers, has_input, has_output, output_size):
    params = {}
    keys = list(jax.random.split(key, 8 + 2 * num_layers))

    def nk():
        return keys.pop()

    gain_relu = math.sqrt(2.0)     # calculate_gain('relu')
    gain_sig = 1.0                 # calculate_gain('sigmoid')

    if has_input:
        w = _xavier_uniform(nk(), (embedding_size, input_size), gain_relu)
        params["input_w_t"] = w.T                                   # (in, emb)
        bound = 1.0 / math.sqrt(input_size)
        params["input_b"] = jax.random.uniform(
            nk(), (embedding_size,), jnp.float32, -bound, bound)
        rnn_in = embedding_size
    else:
        rnn_in = input_size

    H = hidden_size
    params["gru"] = []
    for layer in range(num_layers):
        din = rnn_in if layer == 0 else H
        w_ih = _xavier_uniform(nk(), (3 * H, din), gain_sig)
        w_hh = _xavier_uniform(nk(), (3 * H, H), gain_sig)
        params["gru"].append(dict(
            w_ih_t=w_ih.T,                                  # (din, 3H)
            w_hh_t=w_hh.T,                                  # (H, 3H)
            b_ih=jnp.full((3 * H,), 0.25, jnp.float32),     # constant_(0.25)
            b_hh=jnp.full((3 * H,), 0.25, jnp.float32),
        ))

    if has_output:
        w1 = _xavier_uniform(nk(), (embedding_size, hidden_size), gain_relu)
        w2 = _xavier_uniform(nk(), (output_size, embedding_size), gain_relu)
        params["out_w1_t"] = w1.T                           # (H, emb)
        params["out_w2_t"] = w2.T                           # (emb, O)
        b1_bound = 1.0 / math.sqrt(hidden_size)
        b2_bound = 1.0 / math.sqrt(embedding_size)
        params["out_b1"] = jax.random.uniform(nk(), (embedding_size,),
                                              jnp.float32, -b1_bound, b1_bound)
        params["out_b2"] = jax.random.uniform(nk(), (output_size,),
                                              jnp.float32, -b2_bound, b2_bound)
    return params


def pack_gru_plain_params(params, *, hidden_size, num_layers, has_input,
                          has_output, mxu_dtype=jnp.bfloat16):
    """Pad/stack parameters into lane-aligned, bf16 MXU-operand layouts."""
    H = hidden_size
    Hp = _round_up(H, 128)
    packed = {"H": H, "Hp": Hp, "L": num_layers,
              "has_input": has_input, "has_output": has_output}

    def pad_gate_cols(w_t):   # (Din, 3H) -> (Din, 3Hp), per-gate zero padding
        parts = [jnp.pad(w_t[:, g * H:(g + 1) * H], ((0, 0), (0, Hp - H)))
                 for g in range(3)]
        return jnp.concatenate(parts, axis=1)

    def pad_gate_bias(b):     # (3H,) -> (1, 3Hp)
        parts = [jnp.pad(b[g * H:(g + 1) * H], (0, Hp - H)) for g in range(3)]
        return jnp.concatenate(parts).reshape(1, -1)

    g0 = params["gru"][0]
    w_ih0 = pad_gate_cols(g0["w_ih_t"])                      # (rnn_in, 3Hp)
    if has_input:
        E = params["input_w_t"].shape[1]
        Ein = _round_up(E, 128)
        packed["input_w_t"] = jnp.pad(
            params["input_w_t"], ((0, 0), (0, Ein - E))).astype(mxu_dtype)
        packed["input_b"] = jnp.pad(
            params["input_b"], (0, Ein - E)).reshape(1, -1)
        w_ih0 = jnp.pad(w_ih0, ((0, Ein - E), (0, 0)))       # rows emb -> Ein
    packed["w_ih0_t"] = w_ih0.astype(mxu_dtype)
    packed["b_ih0"] = pad_gate_bias(g0["b_ih"])

    w_hh, b_hh, w_ih, b_ih = [], [], [], []
    for l, g in enumerate(params["gru"]):
        w_hh.append(jnp.pad(pad_gate_cols(g["w_hh_t"]), ((0, Hp - H), (0, 0))))
        b_hh.append(pad_gate_bias(g["b_hh"]))
        if l > 0:
            w_ih.append(jnp.pad(pad_gate_cols(g["w_ih_t"]),
                                ((0, Hp - H), (0, 0))))
            b_ih.append(pad_gate_bias(g["b_ih"]))
    packed["w_hh_all"] = jnp.stack(w_hh).astype(mxu_dtype)   # (L, Hp, 3Hp)
    packed["b_hh_all"] = jnp.stack(b_hh)                     # (L, 1, 3Hp)
    if num_layers > 1:
        packed["w_ih_rest"] = jnp.stack(w_ih).astype(mxu_dtype)
        packed["b_ih_rest"] = jnp.stack(b_ih)

    if has_output:
        E = params["out_w1_t"].shape[1]
        O = params["out_w2_t"].shape[1]
        Ep = _round_up(E, 128)
        Op = _round_up(O, 128)                               # lane-dense output
        packed["out_w1_t"] = jnp.pad(
            params["out_w1_t"], ((0, Hp - H), (0, Ep - E))).astype(mxu_dtype)
        packed["out_b1"] = jnp.pad(params["out_b1"], (0, Ep - E)).reshape(1, -1)
        packed["out_w2_t"] = jnp.pad(
            params["out_w2_t"], ((0, Ep - E), (0, Op - O))).astype(mxu_dtype)
        packed["out_b2"] = jnp.pad(params["out_b2"], (0, Op - O)).reshape(1, -1)
        packed["O"], packed["Op"], packed["Ep"] = O, Op, Ep
    return packed


# ----------------------------------------------------------------------------
# Forward (GRUPlain.forward, pack=False, hidden defaults to init_hidden)
# ----------------------------------------------------------------------------
def gru_plain_forward(packed, input_raw, *, hidden=None, time_chunk=64,
                      batch_blocks=1, vmem_budget_bytes=24 * 2**20):
    B, T, Din = input_raw.shape
    H, Hp, L = packed["H"], packed["Hp"], packed["L"]
    has_output = packed["has_output"]
    nb = max(1, batch_blocks)          # pass 2 on v7x (needs Bp >= 16) to use both TCs
    Bp = _round_up(B, 8 * nb)
    Bb = Bp // nb
    Ep = packed.get("Ep", 0)
    Op = packed.get("Op", Hp)

    # Generation-aware chunking: start large (amortize grid-step overhead on
    # v5e/v6e 128 MiB VMEM) and shrink until the estimate fits the budget
    # (keeps double buffering alive on v7x's 64 MiB VMEM).
    chunk = max(1, min(time_chunk, T))
    while chunk > 8 and _gru_stack_vmem_bytes(
            chunk, Bb, Hp, L, Ep, Op, has_output) > vmem_budget_bytes:
        chunk = max(8, chunk // 2)
    nc = _cdiv(T, chunk)
    Tp = nc * chunk

    if hidden is None:
        hidden = jnp.zeros((L, B, H), jnp.float32)
    h0 = jnp.zeros((L, Bp, Hp), jnp.float32).at[:, :B, :H].set(
        hidden.astype(jnp.float32))

    x = input_raw.astype(jnp.float32)
    x = jnp.pad(x, ((0, Bp - B), (0, Tp - T), (0, 0)))
    x2d = jnp.transpose(x, (1, 0, 2)).reshape(Tp * Bp, Din)  # time-major rows

    # Hoisted layer-0 gate precompute (fused with the input Linear+ReLU);
    # stored bf16 to halve HBM traffic into the recurrence.
    if packed["has_input"]:
        gx0 = _row_tiled(_input_gates_kernel, x2d,
                         (packed["input_w_t"], packed["input_b"],
                          packed["w_ih0_t"], packed["b_ih0"]),
                         3 * Hp, jnp.bfloat16)
    else:
        gx0 = _row_tiled(_gates_only_kernel, x2d,
                         (packed["w_ih0_t"], packed["b_ih0"]),
                         3 * Hp, jnp.bfloat16)
    gx0 = gx0.reshape(Tp, Bp, 3 * Hp)

    out_p, hT = gru_stack(packed, gx0, h0, chunk_steps=chunk,
                          total_steps=T, batch_blocks=nb)
    new_hidden = hT[:, :B, :H]
    if has_output:
        out = jnp.transpose(out_p[:T, :B, :packed["O"]], (1, 0, 2))
    else:
        out = jnp.transpose(out_p[:T, :B, :H], (1, 0, 2))
    return out, new_hidden


# ----------------------------------------------------------------------------
# Pure-JAX f32 reference (for correctness check)
# ----------------------------------------------------------------------------
def _reference_forward(params, input_raw, *, num_layers, hidden_size,
                       has_input, has_output):
    B, T, _ = input_raw.shape
    H = hidden_size
    x = input_raw.astype(jnp.float32)
    if has_input:
        x = jnp.maximum(x @ params["input_w_t"] + params["input_b"], 0.0)
    h = [jnp.zeros((B, H), jnp.float32) for _ in range(num_layers)]
    ys = []
    for t in range(T):
        below = x[:, t, :]
        for l in range(num_layers):
            p = params["gru"][l]
            gx = below @ p["w_ih_t"] + p["b_ih"]
            gh = h[l] @ p["w_hh_t"] + p["b_hh"]
            r = jax.nn.sigmoid(gx[:, :H] + gh[:, :H])
            z = jax.nn.sigmoid(gx[:, H:2 * H] + gh[:, H:2 * H])
            n = jnp.tanh(gx[:, 2 * H:] + r * gh[:, 2 * H:])
            h[l] = (1.0 - z) * n + z * h[l]
            below = h[l]
        ys.append(below)
    y = jnp.stack(ys, axis=1)
    if has_output:
        mid = jnp.maximum(y @ params["out_w1_t"] + params["out_b1"], 0.0)
        y = mid @ params["out_w2_t"] + params["out_b2"]
    return y, jnp.stack(h, axis=0)


# ----------------------------------------------------------------------------
if __name__ == "__main__":
    B, T = 2, 8
    INPUT_SIZE = 4
    EMBEDDING_SIZE = 16
    HIDDEN_SIZE = 32
    NUM_LAYERS = 2
    OUTPUT_SIZE = 16
    HAS_INPUT, HAS_OUTPUT = True, True

    key = jax.random.PRNGKey(0)
    k_param, k_data = jax.random.split(key)
    params = init_gru_plain_params(
        k_param, input_size=INPUT_SIZE, embedding_size=EMBEDDING_SIZE,
        hidden_size=HIDDEN_SIZE, num_layers=NUM_LAYERS,
        has_input=HAS_INPUT, has_output=HAS_OUTPUT, output_size=OUTPUT_SIZE)
    packed = pack_gru_plain_params(
        params, hidden_size=HIDDEN_SIZE, num_layers=NUM_LAYERS,
        has_input=HAS_INPUT, has_output=HAS_OUTPUT)

    # Binary adjacency-style input, (B, T, input_size), batch_first.
    input_raw = jax.random.bernoulli(
        k_data, 0.5, (B, T, INPUT_SIZE)).astype(jnp.float32)

    fwd = jax.jit(lambda xin: gru_plain_forward(packed, xin))
    out, hidden = fwd(input_raw)
    jax.block_until_ready(out)
    jax.block_until_ready(hidden)

    assert out.shape == (B, T, OUTPUT_SIZE), out.shape
    assert hidden.shape == (NUM_LAYERS, B, HIDDEN_SIZE), hidden.shape

    # Numerical check vs pure-JAX f32 reference. Kernel uses bf16 MXU operands
    # and bf16 gx0 storage throughout, so the tolerance is correspondingly loose.
    ref_out, ref_hidden = _reference_forward(
        params, input_raw, num_layers=NUM_LAYERS, hidden_size=HIDDEN_SIZE,
        has_input=HAS_INPUT, has_output=HAS_OUTPUT)
    assert jnp.allclose(out, ref_out, atol=1e-1, rtol=1e-1), \
        float(jnp.max(jnp.abs(out - ref_out)))
    assert jnp.allclose(hidden, ref_hidden, atol=1e-1, rtol=1e-1), \
        float(jnp.max(jnp.abs(hidden - ref_hidden)))

    print("KERNEL_OK")
</pallas_src>

<mosaic_0001>
module attributes {stable_mosaic.version = 11 : i64} {
  func.func @_input_gates_kernel(%arg0: i32, %arg1: memref<64x4xf32, #tpu.memory_space<vmem>>, %arg2: memref<4x128xbf16, #tpu.memory_space<vmem>>, %arg3: memref<1x128xf32, #tpu.memory_space<vmem>>, %arg4: memref<128x384xbf16, #tpu.memory_space<vmem>>, %arg5: memref<1x384xf32, #tpu.memory_space<vmem>>, %arg6: memref<64x384xbf16, #tpu.memory_space<vmem>>) attributes {dimension_semantics = [#tpu.dimension_semantics<parallel>], iteration_bounds = array<i64: 1>, scalar_prefetch = 0 : i64, scratch_operands = 0 : i64, tpu.core_type = #tpu.core_type<tc>, window_params = [{transform_indices = @transform_0, window_bounds = array<i64: 64, 4>}, {pipeline_mode = #tpu.pipeline_mode<synchronous>, transform_indices = @transform_1, window_bounds = array<i64: 4, 128>}, {pipeline_mode = #tpu.pipeline_mode<synchronous>, transform_indices = @transform_2, window_bounds = array<i64: 1, 128>}, {pipeline_mode = #tpu.pipeline_mode<synchronous>, transform_indices = @transform_3, window_bounds = array<i64: 128, 384>}, {pipeline_mode = #tpu.pipeline_mode<synchronous>, transform_indices = @transform_4, window_bounds = array<i64: 1, 384>}, {transform_indices = @transform_5, window_bounds = array<i64: 64, 384>}]} {
    %c0 = arith.constant 0 : index
    %c0_0 = arith.constant 0 : index
    %0 = vector.load %arg1[%c0, %c0_0] : memref<64x4xf32, #tpu.memory_space<vmem>>, vector<64x4xf32>
    %1 = arith.truncf %0 : vector<64x4xf32> to vector<64x4xbf16>
    %c0_1 = arith.constant 0 : index
    %c0_2 = arith.constant 0 : index
    %2 = vector.load %arg2[%c0_1, %c0_2] : memref<4x128xbf16, #tpu.memory_space<vmem>>, vector<4x128xbf16>
    %cst = arith.constant dense<0.000000e+00> : vector<64x128xf32>
    %3 = tpu.matmul %1, %2, %cst {dimension_numbers = #tpu.dot_dimension_numbers<[1], [0], [0], [1], [0, 0, 1, 1], [], []>} : vector<64x4xbf16>, vector<4x128xbf16>, vector<64x128xf32> -> vector<64x128xf32>
    %c0_3 = arith.constant 0 : index
    %c0_4 = arith.constant 0 : index
    %4 = vector.load %arg3[%c0_3, %c0_4] : memref<1x128xf32, #tpu.memory_space<vmem>>, vector<1x128xf32>
    %5 = vector.broadcast %4 : vector<1x128xf32> to vector<64x128xf32>
    %6 = arith.addf %3, %5 : vector<64x128xf32>
    %cst_5 = arith.constant 0.000000e+00 : f32
    %7 = vector.broadcast %cst_5 : f32 to vector<64x128xf32>
    %8 = arith.maximumf %6, %7 : vector<64x128xf32>
    %9 = arith.truncf %8 : vector<64x128xf32> to vector<64x128xbf16>
    %c0_6 = arith.constant 0 : index
    %c0_7 = arith.constant 0 : index
    %10 = vector.load %arg4[%c0_6, %c0_7] : memref<128x384xbf16, #tpu.memory_space<vmem>>, vector<128x384xbf16>
    %cst_8 = arith.constant dense<0.000000e+00> : vector<64x384xf32>
    %11 = tpu.matmul %9, %10, %cst_8 {dimension_numbers = #tpu.dot_dimension_numbers<[1], [0], [0], [1], [0, 0, 1, 1], [], []>} : vector<64x128xbf16>, vector<128x384xbf16>, vector<64x384xf32> -> vector<64x384xf32>
    %c0_9 = arith.constant 0 : index
    %c0_10 = arith.constant 0 : index
    %12 = vector.load %arg5[%c0_9, %c0_10] : memref<1x384xf32, #tpu.memory_space<vmem>>, vector<1x384xf32>
    %13 = vector.broadcast %12 : vector<1x384xf32> to vector<64x384xf32>
    %14 = arith.addf %11, %13 : vector<64x384xf32>
    %15 = arith.truncf %14 : vector<64x384xf32> to vector<64x384xbf16>
    %c0_11 = arith.constant 0 : index
    %c0_12 = arith.constant 0 : index
    %16 = vector.load %arg6[%c0_11, %c0_12] : memref<64x384xbf16, #tpu.memory_space<vmem>>, vector<64x384xbf16>
    tpu.vector_store %arg6[%c0_11, %c0_12], %15 {strides = array<i32>} : memref<64x384xbf16, #tpu.memory_space<vmem>>, vector<64x384xbf16>,
    return
  }
  func.func @transform_0(%arg0: i32) -> (i32, i32) {
    %c0_i32 = arith.constant 0 : i32
    %c0_i32_0 = arith.constant 0 : i32
    return %arg0, %c0_i32 : i32, i32
  }
  func.func @transform_1(%arg0: i32) -> (i32, i32) {
    %c0_i32 = arith.constant 0 : i32
    %c0_i32_0 = arith.constant 0 : i32
    %c0_i32_1 = arith.constant 0 : i32
    return %c0_i32, %c0_i32_0 : i32, i32
  }
  func.func @transform_2(%arg0: i32) -> (i32, i32) {
    %c0_i32 = arith.constant 0 : i32
    %c0_i32_0 = arith.constant 0 : i32
    %c0_i32_1 = arith.constant 0 : i32
    return %c0_i32, %c0_i32_0 : i32, i32
  }
  func.func @transform_3(%arg0: i32) -> (i32, i32) {
    %c0_i32 = arith.constant 0 : i32
    %c0_i32_0 = arith.constant 0 : i32
    %c0_i32_1 = arith.constant 0 : i32
    return %c0_i32, %c0_i32_0 : i32, i32
  }
  func.func @transform_4(%arg0: i32) -> (i32, i32) {
    %c0_i32 = arith.constant 0 : i32
    %c0_i32_0 = arith.constant 0 : i32
    %c0_i32_1 = arith.constant 0 : i32
    return %c0_i32, %c0_i32_0 : i32, i32
  }
  func.func @transform_5(%arg0: i32) -> (i32, i32) {
    %c0_i32 = arith.constant 0 : i32
    %c0_i32_0 = arith.constant 0 : i32
    return %arg0, %c0_i32 : i32, i32
  }
}

module attributes {stable_mosaic.version = 11 : i64} {
  func.func @_gru_stack_kernel(%arg0: i32, %arg1: i32, %arg2: memref<8x8x384xbf16, #tpu.memory_space<vmem>>, %arg3: memref<2x8x128xf32, #tpu.memory_space<vmem>>, %arg4: memref<2x128x384xbf16, #tpu.memory_space<vmem>>, %arg5: memref<2x1x384xf32, #tpu.memory_space<vmem>>, %arg6: memref<1x128x384xbf16, #tpu.memory_space<vmem>>, %arg7: memref<1x1x384xf32, #tpu.memory_space<vmem>>, %arg8: memref<128x128xbf16, #tpu.memory_space<vmem>>, %arg9: memref<1x128xf32, #tpu.memory_space<vmem>>, %arg10: memref<128x128xbf16, #tpu.memory_space<vmem>>, %arg11: memref<1x128xf32, #tpu.memory_space<vmem>>, %arg12: memref<8x8x128xf32, #tpu.memory_space<vmem>>, %arg13: memref<2x8x128xf32, #tpu.memory_space<vmem>>, %arg14: memref<8x8x128xf32, #tpu.memory_space<vmem>>) attributes {dimension_semantics = [#tpu.dimension_semantics<parallel>, #tpu.dimension_semantics<arbitrary>], iteration_bounds = array<i64: 1, 1>, scalar_prefetch = 0 : i64, scratch_operands = 1 : i64, tpu.core_type = #tpu.core_type<tc>, window_params = [{transform_indices = @transform_0, window_bounds = array<i64: 8, 8, 384>}, {transform_indices = @transform_1, window_bounds = array<i64: 2, 8, 128>}, {pipeline_mode = #tpu.pipeline_mode<synchronous>, transform_indices = @transform_2, window_bounds = array<i64: 2, 128, 384>}, {pipeline_mode = #tpu.pipeline_mode<synchronous>, transform_indices = @transform_3, window_bounds = array<i64: 2, 1, 384>}, {pipeline_mode = #tpu.pipeline_mode<synchronous>, transform_indices = @transform_4, window_bounds = array<i64: 1, 128, 384>}, {pipeline_mode = #tpu.pipeline_mode<synchronous>, transform_indices = @transform_5, window_bounds = array<i64: 1, 1, 384>}, {pipeline_mode = #tpu.pipeline_mode<synchronous>, transform_indices = @transform_6, window_bounds = array<i64: 128, 128>}, {pipeline_mode = #tpu.pipeline_mode<synchronous>, transform_indices = @transform_7, window_bounds = array<i64: 1, 128>}, {pipeline_mode = #tpu.pipeline_mode<synchronous>, transform_indices = @transform_8, window_bounds = array<i64: 128, 128>}, {pipeline_mode = #tpu.pipeline_mode<synchronous>, transform_indices = @transform_9, window_bounds = array<i64: 1, 128>}, {transform_indices = @transform_10, window_bounds = array<i64: 8, 8, 128>}, {transform_indices = @transform_11, window_bounds = array<i64: 2, 8, 128>}]} {
    %c0_i32 = arith.constant 0 : i32
    %0 = arith.cmpi eq, %arg1, %c0_i32 : i32
    %1 = arith.extui %0 : i1 to i32
    %c0_i32_0 = arith.constant 0 : i32
    %2 = arith.cmpi ne, %1, %c0_i32_0 : i32
    scf.if %2 {
      %c0_276 = arith.constant 0 : index
      %c0_277 = arith.constant 0 : index
      %c0_278 = arith.constant 0 : index
      %703 = vector.load %arg3[%c0_276, %c0_277, %c0_278] : memref<2x8x128xf32, #tpu.memory_space<vmem>>, vector<2x8x128xf32>
      %c0_279 = arith.constant 0 : index
      %c0_280 = arith.constant 0 : index
      %c0_281 = arith.constant 0 : index
      %704 = vector.load %arg13[%c0_279, %c0_280, %c0_281] : memref<2x8x128xf32, #tpu.memory_space<vmem>>, vector<2x8x128xf32>
      tpu.vector_store %arg13[%c0_279, %c0_280, %c0_281], %703 {strides = array<i32>} : memref<2x8x128xf32, #tpu.memory_space<vmem>>, vector<2x8x128xf32>,
    } else {
    }
    %c0 = arith.constant 0 : index
    %c0_1 = arith.constant 0 : index
    %c0_2 = arith.constant 0 : index
    %3 = vector.load %arg13[%c0, %c0_1, %c0_2] : memref<2x8x128xf32, #tpu.memory_space<vmem>>, vector<1x8x128xf32>
    %4 = vector.shape_cast %3 : vector<1x8x128xf32> to vector<8x128xf32>
    %c1 = arith.constant 1 : index
    %c0_3 = arith.constant 0 : index
    %c0_4 = arith.constant 0 : index
    %5 = vector.load %arg13[%c1, %c0_3, %c0_4] : memref<2x8x128xf32, #tpu.memory_space<vmem>>, vector<1x8x128xf32>
    %6 = vector.shape_cast %5 : vector<1x8x128xf32> to vector<8x128xf32>
    %c0_i32_5 = arith.constant 0 : i32
    %7 = arith.truncf %4 : vector<8x128xf32> to vector<8x128xbf16>
    %c0_6 = arith.constant 0 : index
    %c0_7 = arith.constant 0 : index
    %c0_8 = arith.constant 0 : index
    %8 = vector.load %arg4[%c0_6, %c0_7, %c0_8] : memref<2x128x384xbf16, #tpu.memory_space<vmem>>, vector<1x128x384xbf16>
    %9 = vector.shape_cast %8 : vector<1x128x384xbf16> to vector<128x384xbf16>
    %cst = arith.constant dense<0.000000e+00> : vector<8x384xf32>
    %10 = tpu.matmul %7, %9, %cst {dimension_numbers = #tpu.dot_dimension_numbers<[1], [0], [0], [1], [0, 0, 1, 1], [], []>} : vector<8x128xbf16>, vector<128x384xbf16>, vector<8x384xf32> -> vector<8x384xf32>
    %c0_9 = arith.constant 0 : index
    %c0_10 = arith.constant 0 : index
    %c0_11 = arith.constant 0 : index
    %11 = vector.load %arg5[%c0_9, %c0_10, %c0_11] : memref<2x1x384xf32, #tpu.memory_space<vmem>>, vector<1x1x384xf32>
    %12 = vector.shape_cast %11 : vector<1x1x384xf32> to vector<1x384xf32>
    %13 = vector.broadcast %12 : vector<1x384xf32> to vector<8x384xf32>
    %14 = arith.addf %10, %13 : vector<8x384xf32>
    %15 = arith.truncf %6 : vector<8x128xf32> to vector<8x128xbf16>
    %c1_12 = arith.constant 1 : index
    %c0_13 = arith.constant 0 : index
    %c0_14 = arith.constant 0 : index
    %16 = vector.load %arg4[%c1_12, %c0_13, %c0_14] : memref<2x128x384xbf16, #tpu.memory_space<vmem>>, vector<1x128x384xbf16>
    %17 = vector.shape_cast %16 : vector<1x128x384xbf16> to vector<128x384xbf16>
    %cst_15 = arith.constant dense<0.000000e+00> : vector<8x384xf32>
    %18 = tpu.matmul %15, %17, %cst_15 {dimension_numbers = #tpu.dot_dimension_numbers<[1], [0], [0], [1], [0, 0, 1, 1], [], []>} : vector<8x128xbf16>, vector<128x384xbf16>, vector<8x384xf32> -> vector<8x384xf32>
    %c1_16 = arith.constant 1 : index
    %c0_17 = arith.constant 0 : index
    %c0_18 = arith.constant 0 : index
    %19 = vector.load %arg5[%c1_16, %c0_17, %c0_18] : memref<2x1x384xf32, #tpu.memory_space<vmem>>, vector<1x1x384xf32>
    %20 = vector.shape_cast %19 : vector<1x1x384xf32> to vector<1x384xf32>
    %21 = vector.broadcast %20 : vector<1x384xf32> to vector<8x384xf32>
    %22 = arith.addf %18, %21 : vector<8x384xf32>
    %23 = arith.index_cast %c0_i32_5 : i32 to index
    %c0_19 = arith.constant 0 : index
    %c0_20 = arith.constant 0 : index
    %24 = vector.load %arg2[%23, %c0_19, %c0_20] : memref<8x8x384xbf16, #tpu.memory_space<vmem>>, vector<1x8x384xbf16>
    %25 = vector.shape_cast %24 : vector<1x8x384xbf16> to vector<8x384xbf16>
    %26 = arith.extf %25 : vector<8x384xbf16> to vector<8x384xf32>
    %27 = vector.extract_strided_slice %26 {offsets = [0, 0], sizes = [8, 128], strides = [1, 1]} : vector<8x384xf32> to vector<8x128xf32>
    %28 = vector.extract_strided_slice %14 {offsets = [0, 0], sizes = [8, 128], strides = [1, 1]} : vector<8x384xf32> to vector<8x128xf32>
    %29 = arith.addf %27, %28 : vector<8x128xf32>
    %30 = arith.negf %29 : vector<8x128xf32>
    %31 = math.exp %30 : vector<8x128xf32>
    %cst_21 = arith.constant 1.000000e+00 : f32
    %32 = vector.broadcast %cst_21 : f32 to vector<8x128xf32>
    %33 = arith.addf %32, %31 : vector<8x128xf32>
    %34 = arith.divf %32, %33 : vector<8x128xf32>
    %35 = vector.extract_strided_slice %26 {offsets = [0, 128], sizes = [8, 128], strides = [1, 1]} : vector<8x384xf32> to vector<8x128xf32>
    %36 = vector.extract_strided_slice %14 {offsets = [0, 128], sizes = [8, 128], strides = [1, 1]} : vector<8x384xf32> to vector<8x128xf32>
    %37 = arith.addf %35, %36 : vector<8x128xf32>
    %38 = arith.negf %37 : vector<8x128xf32>
    %39 = math.exp %38 : vector<8x128xf32>
    %cst_22 = arith.constant 1.000000e+00 : f32
    %40 = vector.broadcast %cst_22 : f32 to vector<8x128xf32>
    %41 = arith.addf %40, %39 : vector<8x128xf32>
    %42 = arith.divf %40, %41 : vector<8x128xf32>
    %43 = vector.extract_strided_slice %26 {offsets = [0, 256], sizes = [8, 128], strides = [1, 1]} : vector<8x384xf32> to vector<8x128xf32>
    %44 = vector.extract_strided_slice %14 {offsets = [0, 256], sizes = [8, 128], strides = [1, 1]} : vector<8x384xf32> to vector<8x128xf32>
    %45 = arith.mulf %34, %44 : vector<8x128xf32>
    %46 = arith.addf %43, %45 : vector<8x128xf32>
    %47 = math.tanh %46 : vector<8x128xf32>
    %cst_23 = arith.constant 1.000000e+00 : f32
    %48 = vector.broadcast %cst_23 : f32 to vector<8x128xf32>
    %49 = arith.subf %48, %42 : vector<8x128xf32>
    %50 = arith.mulf %49, %47 : vector<8x128xf32>
    %51 = arith.mulf %42, %4 : vector<8x128xf32>
    %52 = arith.addf %50, %51 : vector<8x128xf32>
    %53 = arith.truncf %52 : vector<8x128xf32> to vector<8x128xbf16>
    %c0_24 = arith.constant 0 : index
    %c0_25 = arith.constant 0 : index
    %c0_26 = arith.constant 0 : index
    %54 = vector.load %arg6[%c0_24, %c0_25, %c0_26] : memref<1x128x384xbf16, #tpu.memory_space<vmem>>, vector<1x128x384xbf16>
    %55 = vector.shape_cast %54 : vector<1x128x384xbf16> to vector<128x384xbf16>
    %cst_27 = arith.constant dense<0.000000e+00> : vector<8x384xf32>
    %56 = tpu.matmul %53, %55, %cst_27 {dimension_numbers = #tpu.dot_dimension_numbers<[1], [0], [0], [1], [0, 0, 1, 1], [], []>} : vector<8x128xbf16>, vector<128x384xbf16>, vector<8x384xf32> -> vector<8x384xf32>
    %c0_28 = arith.constant 0 : index
    %c0_29 = arith.constant 0 : index
    %c0_30 = arith.constant 0 : index
    %57 = vector.load %arg7[%c0_28, %c0_29, %c0_30] : memref<1x1x384xf32, #tpu.memory_space<vmem>>, vector<1x1x384xf32>
    %58 = vector.shape_cast %57 : vector<1x1x384xf32> to vector<1x384xf32>
    %59 = vector.broadcast %58 : vector<1x384xf32> to vector<8x384xf32>
    %60 = arith.addf %56, %59 : vector<8x384xf32>
    %61 = vector.extract_strided_slice %60 {offsets = [0, 0], sizes = [8, 128], strides = [1, 1]} : vector<8x384xf32> to vector<8x128xf32>
    %62 = vector.extract_strided_slice %22 {offsets = [0, 0], sizes = [8, 128], strides = [1, 1]} : vector<8x384xf32> to vector<8x128xf32>
    %63 = arith.addf %61, %62 : vector<8x128xf32>
    %64 = arith.negf %63 : vector<8x128xf32>
    %65 = math.exp %64 : vector<8x128xf32>
    %cst_31 = arith.constant 1.000000e+00 : f32
    %66 = vector.broadcast %cst_31 : f32 to vector<8x128xf32>
    %67 = arith.addf %66, %65 : vector<8x128xf32>
    %68 = arith.divf %66, %67 : vector<8x128xf32>
    %69 = vector.extract_strided_slice %60 {offsets = [0, 128], sizes = [8, 128], strides = [1, 1]} : vector<8x384xf32> to vector<8x128xf32>
    %70 = vector.extract_strided_slice %22 {offsets = [0, 128], sizes = [8, 128], strides = [1, 1]} : vector<8x384xf32> to vector<8x128xf32>
    %71 = arith.addf %69, %70 : vector<8x128xf32>
    %72 = arith.negf %71 : vector<8x128xf32>
    %73 = math.exp %72 : vector<8x128xf32>
    %cst_32 = arith.constant 1.000000e+00 : f32
    %74 = vector.broadcast %cst_32 : f32 to vector<8x128xf32>
    %75 = arith.addf %74, %73 : vector<8x128xf32>
    %76 = arith.divf %74, %75 : vector<8x128xf32>
    %77 = vector.extract_strided_slice %60 {offsets = [0, 256], sizes = [8, 128], strides = [1, 1]} : vector<8x384xf32> to vector<8x128xf32>
    %78 = vector.extract_strided_slice %22 {offsets = [0, 256], sizes = [8, 128], strides = [1, 1]} : vector<8x384xf32> to vector<8x128xf32>
    %79 = arith.mulf %68, %78 : vector<8x128xf32>
    %80 = arith.addf %77, %79 : vector<8x128xf32>
    %81 = math.tanh %80 : vector<8x128xf32>
    %cst_33 = arith.constant 1.000000e+00 : f32
    %82 = vector.broadcast %cst_33 : f32 to vector<8x128xf32>
    %83 = arith.subf %82, %76 : vector<8x128xf32>
    %84 = arith.mulf %83, %81 : vector<8x128xf32>
    %85 = arith.mulf %76, %6 : vector<8x128xf32>
    %86 = arith.addf %84, %85 : vector<8x128xf32>
    %87 = arith.index_cast %c0_i32_5 : i32 to index
    %c0_34 = arith.constant 0 : index
    %c0_35 = arith.constant 0 : index
    %88 = vector.load %arg14[%87, %c0_34, %c0_35] : memref<8x8x128xf32, #tpu.memory_space<vmem>>, vector<1x8x128xf32>
    %89 = vector.shape_cast %88 : vector<1x8x128xf32> to vector<8x128xf32>
    %90 = vector.shape_cast %86 : vector<8x128xf32> to vector<1x8x128xf32>
    tpu.vector_store %arg14[%87, %c0_34, %c0_35], %90 {strides = array<i32>} : memref<8x8x128xf32, #tpu.memory_space<vmem>>, vector<1x8x128xf32>,
    %c1_i32 = arith.constant 1 : i32
    %91 = arith.truncf %52 : vector<8x128xf32> to vector<8x128xbf16>
    %c0_36 = arith.constant 0 : index
    %c0_37 = arith.constant 0 : index
    %c0_38 = arith.constant 0 : index
    %92 = vector.load %arg4[%c0_36, %c0_37, %c0_38] : memref<2x128x384xbf16, #tpu.memory_space<vmem>>, vector<1x128x384xbf16>
    %93 = vector.shape_cast %92 : vector<1x128x384xbf16> to vector<128x384xbf16>
    %cst_39 = arith.constant dense<0.000000e+00> : vector<8x384xf32>
    %94 = tpu.matmul %91, %93, %cst_39 {dimension_numbers = #tpu.dot_dimension_numbers<[1], [0], [0], [1], [0, 0, 1, 1], [], []>} : vector<8x128xbf16>, vector<128x384xbf16>, vector<8x384xf32> -> vector<8x384xf32>
    %c0_40 = arith.constant 0 : index
    %c0_41 = arith.constant 0 : index
    %c0_42 = arith.constant 0 : index
    %95 = vector.load %arg5[%c0_40, %c0_41, %c0_42] : memref<2x1x384xf32, #tpu.memory_space<vmem>>, vector<1x1x384xf32>
    %96 = vector.shape_cast %95 : vector<1x1x384xf32> to vector<1x384xf32>
    %97 = vector.broadcast %96 : vector<1x384xf32> to vector<8x384xf32>
    %98 = arith.addf %94, %97 : vector<8x384xf32>
    %99 = arith.truncf %86 : vector<8x128xf32> to vector<8x128xbf16>
    %c1_43 = arith.constant 1 : index
    %c0_44 = arith.constant 0 : index
    %c0_45 = arith.constant 0 : index
    %100 = vector.load %arg4[%c1_43, %c0_44, %c0_45] : memref<2x128x384xbf16, #tpu.memory_space<vmem>>, vector<1x128x384xbf16>
    %101 = vector.shape_cast %100 : vector<1x128x384xbf16> to vector<128x384xbf16>
    %cst_46 = arith.constant dense<0.000000e+00> : vector<8x384xf32>
    %102 = tpu.matmul %99, %101, %cst_46 {dimension_numbers = #tpu.dot_dimension_numbers<[1], [0], [0], [1], [0, 0, 1, 1], [], []>} : vector<8x128xbf16>, vector<128x384xbf16>, vector<8x384xf32> -> vector<8x384xf32>
    %c1_47 = arith.constant 1 : index
    %c0_48 = arith.constant 0 : index
    %c0_49 = arith.constant 0 : index
    %103 = vector.load %arg5[%c1_47, %c0_48, %c0_49] : memref<2x1x384xf32, #tpu.memory_space<vmem>>, vector<1x1x384xf32>
    %104 = vector.shape_cast %103 : vector<1x1x384xf32> to vector<1x384xf32>
    %105 = vector.broadcast %104 : vector<1x384xf32> to vector<8x384xf32>
    %106 = arith.addf %102, %105 : vector<8x384xf32>
    %107 = arith.index_cast %c1_i32 : i32 to index
    %c0_50 = arith.constant 0 : index
    %c0_51 = arith.constant 0 : index
    %108 = vector.load %arg2[%107, %c0_50, %c0_51] : memref<8x8x384xbf16, #tpu.memory_space<vmem>>, vector<1x8x384xbf16>
    %109 = vector.shape_cast %108 : vector<1x8x384xbf16> to vector<8x384xbf16>
    %110 = arith.extf %109 : vector<8x384xbf16> to vector<8x384xf32>
    %111 = vector.extract_strided_slice %110 {offsets = [0, 0], sizes = [8, 128], strides = [1, 1]} : vector<8x384xf32> to vector<8x128xf32>
    %112 = vector.extract_strided_slice %98 {offsets = [0, 0], sizes = [8, 128], strides = [1, 1]} : vector<8x384xf32> to vector<8x128xf32>
    %113 = arith.addf %111, %112 : vector<8x128xf32>
    %114 = arith.negf %113 : vector<8x128xf32>
    %115 = math.exp %114 : vector<8x128xf32>
    %cst_52 = arith.constant 1.000000e+00 : f32
    %116 = vector.broadcast %cst_52 : f32 to vector<8x128xf32>
    %117 = arith.addf %116, %115 : vector<8x128xf32>
    %118 = arith.divf %116, %117 : vector<8x128xf32>
    %119 = vector.extract_strided_slice %110 {offsets = [0, 128], sizes = [8, 128], strides = [1, 1]} : vector<8x384xf32> to vector<8x128xf32>
    %120 = vector.extract_strided_slice %98 {offsets = [0, 128], sizes = [8, 128], strides = [1, 1]} : vector<8x384xf32> to vector<8x128xf32>
    %121 = arith.addf %119, %120 : vector<8x128xf32>
    %122 = arith.negf %121 : vector<8x128xf32>
    %123 = math.exp %122 : vector<8x128xf32>
    %cst_53 = arith.constant 1.000000e+00 : f32
    %124 = vector.broadcast %cst_53 : f32 to vector<8x128xf32>
    %125 = arith.addf %124, %123 : vector<8x128xf32>
    %126 = arith.divf %124, %125 : vector<8x128xf32>
    %127 = vector.extract_strided_slice %110 {offsets = [0, 256], sizes = [8, 128], strides = [1, 1]} : vector<8x384xf32> to vector<8x128xf32>
    %128 = vector.extract_strided_slice %98 {offsets = [0, 256], sizes = [8, 128], strides = [1, 1]} : vector<8x384xf32> to vector<8x128xf32>
    %129 = arith.mulf %118, %128 : vector<8x128xf32>
    %130 = arith.addf %127, %129 : vector<8x128xf32>
    %131 = math.tanh %130 : vector<8x128xf32>
    %cst_54 = arith.constant 1.000000e+00 : f32
    %132 = vector.broadcast %cst_54 : f32 to vector<8x128xf32>
    %133 = arith.subf %132, %126 : vector<8x128xf32>
    %134 = arith.mulf %133, %131 : vector<8x128xf32>
    %135 = arith.mulf %126, %52 : vector<8x128xf32>
    %136 = arith.addf %134, %135 : vector<8x128xf32>
    %137 = arith.truncf %136 : vector<8x128xf32> to vector<8x128xbf16>
    %c0_55 = arith.constant 0 : index
    %c0_56 = arith.constant 0 : index
    %c0_57 = arith.constant 0 : index
    %138 = vector.load %arg6[%c0_55, %c0_56, %c0_57] : memref<1x128x384xbf16, #tpu.memory_space<vmem>>, vector<1x128x384xbf16>
    %139 = vector.shape_cast %138 : vector<1x128x384xbf16> to vector<128x384xbf16>
    %cst_58 = arith.constant dense<0.000000e+00> : vector<8x384xf32>
    %140 = tpu.matmul %137, %139, %cst_58 {dimension_numbers = #tpu.dot_dimension_numbers<[1], [0], [0], [1], [0, 0, 1, 1], [], []>} : vector<8x128xbf16>, vector<128x384xbf16>, vector<8x384xf32> -> vector<8x384xf32>
    %c0_59 = arith.constant 0 : index
    %c0_60 = arith.constant 0 : index
    %c0_61 = arith.constant 0 : index
    %141 = vector.load %arg7[%c0_59, %c0_60, %c0_61] : memref<1x1x384xf32, #tpu.memory_space<vmem>>, vector<1x1x384xf32>
    %142 = vector.shape_cast %141 : vector<1x1x384xf32> to vector<1x384xf32>
    %143 = vector.broadcast %142 : vector<1x384xf32> to vector<8x384xf32>
    %144 = arith.addf %140, %143 : vector<8x384xf32>
    %145 = vector.extract_strided_slice %144 {offsets = [0, 0], sizes = [8, 128], strides = [1, 1]} : vector<8x384xf32> to vector<8x128xf32>
    %146 = vector.extract_strided_slice %106 {offsets = [0, 0], sizes = [8, 128], strides = [1, 1]} : vector<8x384xf32> to vector<8x128xf32>
    %147 = arith.addf %145, %146 : vector<8x128xf32>
    %148 = arith.negf %147 : vector<8x128xf32>
    %149 = math.exp %148 : vector<8x128xf32>
    %cst_62 = arith.constant 1.000000e+00 : f32
    %150 = vector.broadcast %cst_62 : f32 to vector<8x128xf32>
    %151 = arith.addf %150, %149 : vector<8x128xf32>
    %152 = arith.divf %150, %151 : vector<8x128xf32>
    %153 = vector.extract_strided_slice %144 {offsets = [0, 128], sizes = [8, 128], strides = [1, 1]} : vector<8x384xf32> to vector<8x128xf32>
    %154 = vector.extract_strided_slice %106 {offsets = [0, 128], sizes = [8, 128], strides = [1, 1]} : vector<8x384xf32> to vector<8x128xf32>
    %155 = arith.addf %153, %154 : vector<8x128xf32>
    %156 = arith.negf %155 : vector<8x128xf32>
    %157 = math.exp %156 : vector<8x128xf32>
    %cst_63 = arith.constant 1.000000e+00 : f32
    %158 = vector.broadcast %cst_63 : f32 to vector<8x128xf32>
    %159 = arith.addf %158, %157 : vector<8x128xf32>
    %160 = arith.divf %158, %159 : vector<8x128xf32>
    %161 = vector.extract_strided_slice %144 {offsets = [0, 256], sizes = [8, 128], strides = [1, 1]} : vector<8x384xf32> to vector<8x128xf32>
    %162 = vector.extract_strided_slice %106 {offsets = [0, 256], sizes = [8, 128], strides = [1, 1]} : vector<8x384xf32> to vector<8x128xf32>
    %163 = arith.mulf %152, %162 : vector<8x128xf32>
    %164 = arith.addf %161, %163 : vector<8x128xf32>
    %165 = math.tanh %164 : vector<8x128xf32>
    %cst_64 = arith.constant 1.000000e+00 : f32
    %166 = vector.broadcast %cst_64 : f32 to vector<8x128xf32>
    %167 = arith.subf %166, %160 : vector<8x128xf32>
    %168 = arith.mulf %167, %165 : vector<8x128xf32>
    %169 = arith.mulf %160, %86 : vector<8x128xf32>
    %170 = arith.addf %168, %169 : vector<8x128xf32>
    %171 = arith.index_cast %c1_i32 : i32 to index
    %c0_65 = arith.constant 0 : index
    %c0_66 = arith.constant 0 : index
    %172 = vector.load %arg14[%171, %c0_65, %c0_66] : memref<8x8x128xf32, #tpu.memory_space<vmem>>, vector<1x8x128xf32>
    %173 = vector.shape_cast %172 : vector<1x8x128xf32> to vector<8x128xf32>
    %174 = vector.shape_cast %170 : vector<8x128xf32> to vector<1x8x128xf32>
    tpu.vector_store %arg14[%171, %c0_65, %c0_66], %174 {strides = array<i32>} : memref<8x8x128xf32, #tpu.memory_space<vmem>>, vector<1x8x128xf32>,
    %c2_i32 = arith.constant 2 : i32
    %175 = arith.truncf %136 : vector<8x128xf32> to vector<8x128xbf16>
    %c0_67 = arith.constant 0 : index
    %c0_68 = arith.constant 0 : index
    %c0_69 = arith.constant 0 : index
    %176 = vector.load %arg4[%c0_67, %c0_68, %c0_69] : memref<2x128x384xbf16, #tpu.memory_space<vmem>>, vector<1x128x384xbf16>
    %177 = vector.shape_cast %176 : vector<1x128x384xbf16> to vector<128x384xbf16>
    %cst_70 = arith.constant dense<0.000000e+00> : vector<8x384xf32>
    %178 = tpu.matmul %175, %177, %cst_70 {dimension_numbers = #tpu.dot_dimension_numbers<[1], [0], [0], [1], [0, 0, 1, 1], [], []>} : vector<8x128xbf16>, vector<128x384xbf16>, vector<8x384xf32> -> vector<8x384xf32>
    %c0_71 = arith.constant 0 : index
    %c0_72 = arith.constant 0 : index
    %c0_73 = arith.constant 0 : index
    %179 = vector.load %arg5[%c0_71, %c0_72, %c0_73] : memref<2x1x384xf32, #tpu.memory_space<vmem>>, vector<1x1x384xf32>
    %180 = vector.shape_cast %179 : vector<1x1x384xf32> to vector<1x384xf32>
    %181 = vector.broadcast %180 : vector<1x384xf32> to vector<8x384xf32>
    %182 = arith.addf %178, %181 : vector<8x384xf32>
    %183 = arith.truncf %170 : vector<8x128xf32> to vector<8x128xbf16>
    %c1_74 = arith.constant 1 : index
    %c0_75 = arith.constant 0 : index
    %c0_76 = arith.constant 0 : index
    %184 = vector.load %arg4[%c1_74, %c0_75, %c0_76] : memref<2x128x384xbf16, #tpu.memory_space<vmem>>, vector<1x128x384xbf16>
    %185 = vector.shape_cast %184 : vector<1x128x384xbf16> to vector<128x384xbf16>
    %cst_77 = arith.constant dense<0.000000e+00> : vector<8x384xf32>
    %186 = tpu.matmul %183, %185, %cst_77 {dimension_numbers = #tpu.dot_dimension_numbers<[1], [0], [0], [1], [0, 0, 1, 1], [], []>} : vector<8x128xbf16>, vector<128x384xbf16>, vector<8x384xf32> -> vector<8x384xf32>
    %c1_78 = arith.constant 1 : index
    %c0_79 = arith.constant 0 : index
    %c0_80 = arith.constant 0 : index
    %187 = vector.load %arg5[%c1_78, %c0_79, %c0_80] : memref<2x1x384xf32, #tpu.memory_space<vmem>>, vector<1x1x384xf32>
    %188 = vector.shape_cast %187 : vector<1x1x384xf32> to vector<1x384xf32>
    %189 = vector.broadcast %188 : vector<1x384xf32> to vector<8x384xf32>
    %190 = arith.addf %186, %189 : vector<8x384xf32>
    %191 = arith.index_cast %c2_i32 : i32 to index
    %c0_81 = arith.constant 0 : index
    %c0_82 = arith.constant 0 : index
    %192 = vector.load %arg2[%191, %c0_81, %c0_82] : memref<8x8x384xbf16, #tpu.memory_space<vmem>>, vector<1x8x384xbf16>
    %193 = vector.shape_cast %192 : vector<1x8x384xbf16> to vector<8x384xbf16>
    %194 = arith.extf %193 : vector<8x384xbf16> to vector<8x384xf32>
    %195 = vector.extract_strided_slice %194 {offsets = [0, 0], sizes = [8, 128], strides = [1, 1]} : vector<8x384xf32> to vector<8x128xf32>
    %196 = vector.extract_strided_slice %182 {offsets = [0, 0], sizes = [8, 128], strides = [1, 1]} : vector<8x384xf32> to vector<8x128xf32>
    %197 = arith.addf %195, %196 : vector<8x128xf32>
    %198 = arith.negf %197 : vector<8x128xf32>
    %199 = math.exp %198 : vector<8x128xf32>
    %cst_83 = arith.constant 1.000000e+00 : f32
    %200 = vector.broadcast %cst_83 : f32 to vector<8x128xf32>
    %201 = arith.addf %200, %199 : vector<8x128xf32>
    %202 = arith.divf %200, %201 : vector<8x128xf32>
    %203 = vector.extract_strided_slice %194 {offsets = [0, 128], sizes = [8, 128], strides = [1, 1]} : vector<8x384xf32> to vector<8x128xf32>
    %204 = vector.extract_strided_slice %182 {offsets = [0, 128], sizes = [8, 128], strides = [1, 1]} : vector<8x384xf32> to vector<8x128xf32>
    %205 = arith.addf %203, %204 : vector<8x128xf32>
    %206 = arith.negf %205 : vector<8x128xf32>
    %207 = math.exp %206 : vector<8x128xf32>
    %cst_84 = arith.constant 1.000000e+00 : f32
    %208 = vector.broadcast %cst_84 : f32 to vector<8x128xf32>
    %209 = arith.addf %208, %207 : vector<8x128xf32>
    %210 = arith.divf %208, %209 : vector<8x128xf32>
    %211 = vector.extract_strided_slice %194 {offsets = [0, 256], sizes = [8, 128], strides = [1, 1]} : vector<8x384xf32> to vector<8x128xf32>
    %212 = vector.extract_strided_slice %182 {offsets = [0, 256], sizes = [8, 128], strides = [1, 1]} : vector<8x384xf32> to vector<8x128xf32>
    %213 = arith.mulf %202, %212 : vector<8x128xf32>
    %214 = arith.addf %211, %213 : vector<8x128xf32>
    %215 = math.tanh %214 : vector<8x128xf32>
    %cst_85 = arith.constant 1.000000e+00 : f32
    %216 = vector.broadcast %cst_85 : f32 to vector<8x128xf32>
    %217 = arith.subf %216, %210 : vector<8x128xf32>
    %218 = arith.mulf %217, %215 : vector<8x128xf32>
    %219 = arith.mulf %210, %136 : vector<8x128xf32>
    %220 = arith.addf %218, %219 : vector<8x128xf32>
    %221 = arith.truncf %220 : vector<8x128xf32> to vector<8x128xbf16>
    %c0_86 = arith.constant 0 : index
    %c0_87 = arith.constant 0 : index
    %c0_88 = arith.constant 0 : index
    %222 = vector.load %arg6[%c0_86, %c0_87, %c0_88] : memref<1x128x384xbf16, #tpu.memory_space<vmem>>, vector<1x128x384xbf16>
    %223 = vector.shape_cast %222 : vector<1x128x384xbf16> to vector<128x384xbf16>
    %cst_89 = arith.constant dense<0.000000e+00> : vector<8x384xf32>
    %224 = tpu.matmul %221, %223, %cst_89 {dimension_numbers = #tpu.dot_dimension_numbers<[1], [0], [0], [1], [0, 0, 1, 1], [], []>} : vector<8x128xbf16>, vector<128x384xbf16>, vector<8x384xf32> -> vector<8x384xf32>
    %c0_90 = arith.constant 0 : index
    %c0_91 = arith.constant 0 : index
    %c0_92 = arith.constant 0 : index
    %225 = vector.load %arg7[%c0_90, %c0_91, %c0_92] : memref<1x1x384xf32, #tpu.memory_space<vmem>>, vector<1x1x384xf32>
    %226 = vector.shape_cast %225 : vector<1x1x384xf32> to vector<1x384xf32>
    %227 = vector.broadcast %226 : vector<1x384xf32> to vector<8x384xf32>
    %228 = arith.addf %224, %227 : vector<8x384xf32>
    %229 = vector.extract_strided_slice %228 {offsets = [0, 0], sizes = [8, 128], strides = [1, 1]} : vector<8x384xf32> to vector<8x128xf32>
    %230 = vector.extract_strided_slice %190 {offsets = [0, 0], sizes = [8, 128], strides = [1, 1]} : vector<8x384xf32> to vector<8x128xf32>
    %231 = arith.addf %229, %230 : vector<8x128xf32>
    %232 = arith.negf %231 : vector<8x128xf32>
    %233 = math.exp %232 : vector<8x128xf32>
    %cst_93 = arith.constant 1.000000e+00 : f32
    %234 = vector.broadcast %cst_93 : f32 to vector<8x128xf32>
    %235 = arith.addf %234, %233 : vector<8x128xf32>
    %236 = arith.divf %234, %235 : vector<8x128xf32>
    %237 = vector.extract_strided_slice %228 {offsets = [0, 128], sizes = [8, 128], strides = [1, 1]} : vector<8x384xf32> to vector<8x128xf32>
    %238 = vector.extract_strided_slice %190 {offsets = [0, 128], sizes = [8, 128], strides = [1, 1]} : vector<8x384xf32> to vector<8x128xf32>
    %239 = arith.addf %237, %238 : vector<8x128xf32>
    %240 = arith.negf %239 : vector<8x128xf32>
    %241 = math.exp %240 : vector<8x128xf32>
    %cst_94 = arith.constant 1.000000e+00 : f32
    %242 = vector.broadcast %cst_94 : f32 to vector<8x128xf32>
    %243 = arith.addf %242, %241 : vector<8x128xf32>
    %244 = arith.divf %242, %243 : vector<8x128xf32>
    %245 = vector.extract_strided_slice %228 {offsets = [0, 256], sizes = [8, 128], strides = [1, 1]} : vector<8x384xf32> to vector<8x128xf32>
    %246 = vector.extract_strided_slice %190 {offsets = [0, 256], sizes = [8, 128], strides = [1, 1]} : vector<8x384xf32> to vector<8x128xf32>
    %247 = arith.mulf %236, %246 : vector<8x128xf32>
    %248 = arith.addf %245, %247 : vector<8x128xf32>
    %249 = math.tanh %248 : vector<8x128xf32>
    %cst_95 = arith.constant 1.000000e+00 : f32
    %250 = vector.broadcast %cst_95 : f32 to vector<8x128xf32>
    %251 = arith.subf %250, %244 : vector<8x128xf32>
    %252 = arith.mulf %251, %249 : vector<8x128xf32>
    %253 = arith.mulf %244, %170 : vector<8x128xf32>
    %254 = arith.addf %252, %253 : vector<8x128xf32>
    %255 = arith.index_cast %c2_i32 : i32 to index
    %c0_96 = arith.constant 0 : index
    %c0_97 = arith.constant 0 : index
    %256 = vector.load %arg14[%255, %c0_96, %c0_97] : memref<8x8x128xf32, #tpu.memory_space<vmem>>, vector<1x8x128xf32>
    %257 = vector.shape_cast %256 : vector<1x8x128xf32> to vector<8x128xf32>
    %258 = vector.shape_cast %254 : vector<8x128xf32> to vector<1x8x128xf32>
    tpu.vector_store %arg14[%255, %c0_96, %c0_97], %258 {strides = array<i32>} : memref<8x8x128xf32, #tpu.memory_space<vmem>>, vector<1x8x128xf32>,
    %c3_i32 = arith.constant 3 : i32
    %259 = arith.truncf %220 : vector<8x128xf32> to vector<8x128xbf16>
    %c0_98 = arith.constant 0 : index
    %c0_99 = arith.constant 0 : index
    %c0_100 = arith.constant 0 : index
    %260 = vector.load %arg4[%c0_98, %c0_99, %c0_100] : memref<2x128x384xbf16, #tpu.memory_space<vmem>>, vector<1x128x384xbf16>
    %261 = vector.shape_cast %260 : vector<1x128x384xbf16> to vector<128x384xbf16>
    %cst_101 = arith.constant dense<0.000000e+00> : vector<8x384xf32>
    %262 = tpu.matmul %259, %261, %cst_101 {dimension_numbers = #tpu.dot_dimension_numbers<[1], [0], [0], [1], [0, 0, 1, 1], [], []>} : vector<8x128xbf16>, vector<128x384xbf16>, vector<8x384xf32> -> vector<8x384xf32>
    %c0_102 = arith.constant 0 : index
    %c0_103 = arith.constant 0 : index
    %c0_104 = arith.constant 0 : index
    %263 = vector.load %arg5[%c0_102, %c0_103, %c0_104] : memref<2x1x384xf32, #tpu.memory_space<vmem>>, vector<1x1x384xf32>
    %264 = vector.shape_cast %263 : vector<1x1x384xf32> to vector<1x384xf32>
    %265 = vector.broadcast %264 : vector<1x384xf32> to vector<8x384xf32>
    %266 = arith.addf %262, %265 : vector<8x384xf32>
    %267 = arith.truncf %254 : vector<8x128xf32> to vector<8x128xbf16>
    %c1_105 = arith.constant 1 : index
    %c0_106 = arith.constant 0 : index
    %c0_107 = arith.constant 0 : index
    %268 = vector.load %arg4[%c1_105, %c0_106, %c0_107] : memref<2x128x384xbf16, #tpu.memory_space<vmem>>, vector<1x128x384xbf16>
    %269 = vector.shape_cast %268 : vector<1x128x384xbf16> to vector<128x384xbf16>
    %cst_108 = arith.constant dense<0.000000e+00> : vector<8x384xf32>
    %270 = tpu.matmul %267, %269, %cst_108 {dimension_numbers = #tpu.dot_dimension_numbers<[1], [0], [0], [1], [0, 0, 1, 1], [], []>} : vector<8x128xbf16>, vector<128x384xbf16>, vector<8x384xf32> -> vector<8x384xf32>
    %c1_109 = arith.constant 1 : index
    %c0_110 = arith.constant 0 : index
    %c0_111 = arith.constant 0 : index
    %271 = vector.load %arg5[%c1_109, %c0_110, %c0_111] : memref<2x1x384xf32, #tpu.memory_space<vmem>>, vector<1x1x384xf32>
    %272 = vector.shape_cast %271 : vector<1x1x384xf32> to vector<1x384xf32>
    %273 = vector.broadcast %272 : vector<1x384xf32> to vector<8x384xf32>
    %274 = arith.addf %270, %273 : vector<8x384xf32>
    %275 = arith.index_cast %c3_i32 : i32 to index
    %c0_112 = arith.constant 0 : index
    %c0_113 = arith.constant 0 : index
    %276 = vector.load %arg2[%275, %c0_112, %c0_113] : memref<8x8x384xbf16, #tpu.memory_space<vmem>>, vector<1x8x384xbf16>
    %277 = vector.shape_cast %276 : vector<1x8x384xbf16> to vector<8x384xbf16>
    %278 = arith.extf %277 : vector<8x384xbf16> to vector<8x384xf32>
    %279 = vector.extract_strided_slice %278 {offsets = [0, 0], sizes = [8, 128], strides = [1, 1]} : vector<8x384xf32> to vector<8x128xf32>
    %280 = vector.extract_strided_slice %266 {offsets = [0, 0], sizes = [8, 128], strides = [1, 1]} : vector<8x384xf32> to vector<8x128xf32>
    %281 = arith.addf %279, %280 : vector<8x128xf32>
    %282 = arith.negf %281 : vector<8x128xf32>
    %283 = math.exp %282 : vector<8x128xf32>
    %cst_114 = arith.constant 1.000000e+00 : f32
    %284 = vector.broadcast %cst_114 : f32 to vector<8x128xf32>
    %285 = arith.addf %284, %283 : vector<8x128xf32>
    %286 = arith.divf %284, %285 : vector<8x128xf32>
    %287 = vector.extract_strided_slice %278 {offsets = [0, 128], sizes = [8, 128], strides = [1, 1]} : vector<8x384xf32> to vector<8x128xf32>
    %288 = vector.extract_strided_slice %266 {offsets = [0, 128], sizes = [8, 128], strides = [1, 1]} : vector<8x384xf32> to vector<8x128xf32>
    %289 = arith.addf %287, %288 : vector<8x128xf32>
    %290 = arith.negf %289 : vector<8x128xf32>
    %291 = math.exp %290 : vector<8x128xf32>
    %cst_115 = arith.constant 1.000000e+00 : f32
    %292 = vector.broadcast %cst_115 : f32 to vector<8x128xf32>
    %293 = arith.addf %292, %291 : vector<8x128xf32>
    %294 = arith.divf %292, %293 : vector<8x128xf32>
    %295 = vector.extract_strided_slice %278 {offsets = [0, 256], sizes = [8, 128], strides = [1, 1]} : vector<8x384xf32> to vector<8x128xf32>
    %296 = vector.extract_strided_slice %266 {offsets = [0, 256], sizes = [8, 128], strides = [1, 1]} : vector<8x384xf32> to vector<8x128xf32>
    %297 = arith.mulf %286, %296 : vector<8x128xf32>
    %298 = arith.addf %295, %297 : vector<8x128xf32>
    %299 = math.tanh %298 : vector<8x128xf32>
    %cst_116 = arith.constant 1.000000e+00 : f32
    %300 = vector.broadcast %cst_116 : f32 to vector<8x128xf32>
    %301 = arith.subf %300, %294 : vector<8x128xf32>
    %302 = arith.mulf %301, %299 : vector<8x128xf32>
    %303 = arith.mulf %294, %220 : vector<8x128xf32>
    %304 = arith.addf %302, %303 : vector<8x128xf32>
    %305 = arith.truncf %304 : vector<8x128xf32> to vector<8x128xbf16>
    %c0_117 = arith.constant 0 : index
    %c0_118 = arith.constant 0 : index
    %c0_119 = arith.constant 0 : index
    %306 = vector.load %arg6[%c0_117, %c0_118, %c0_119] : memref<1x128x384xbf16, #tpu.memory_space<vmem>>, vector<1x128x384xbf16>
    %307 = vector.shape_cast %306 : vector<1x128x384xbf16> to vector<128x384xbf16>
    %cst_120 = arith.constant dense<0.000000e+00> : vector<8x384xf32>
    %308 = tpu.matmul %305, %307, %cst_120 {dimension_numbers = #tpu.dot_dimension_numbers<[1], [0], [0], [1], [0, 0, 1, 1], [], []>} : vector<8x128xbf16>, vector<128x384xbf16>, vector<8x384xf32> -> vector<8x384xf32>
    %c0_121 = arith.constant 0 : index
    %c0_122 = arith.constant 0 : index
    %c0_123 = arith.constant 0 : index
    %309 = vector.load %arg7[%c0_121, %c0_122, %c0_123] : memref<1x1x384xf32, #tpu.memory_space<vmem>>, vector<1x1x384xf32>
    %310 = vector.shape_cast %309 : vector<1x1x384xf32> to vector<1x384xf32>
    %311 = vector.broadcast %310 : vector<1x384xf32> to vector<8x384xf32>
    %312 = arith.addf %308, %311 : vector<8x384xf32>
    %313 = vector.extract_strided_slice %312 {offsets = [0, 0], sizes = [8, 128], strides = [1, 1]} : vector<8x384xf32> to vector<8x128xf32>
    %314 = vector.extract_strided_slice %274 {offsets = [0, 0], sizes = [8, 128], strides = [1, 1]} : vector<8x384xf32> to vector<8x128xf32>
    %315 = arith.addf %313, %314 : vector<8x128xf32>
    %316 = arith.negf %315 : vector<8x128xf32>
    %317 = math.exp %316 : vector<8x128xf32>
    %cst_124 = arith.constant 1.000000e+00 : f32
    %318 = vector.broadcast %cst_124 : f32 to vector<8x128xf32>
    %319 = arith.addf %318, %317 : vector<8x128xf32>
    %320 = arith.divf %318, %319 : vector<8x128xf32>
    %321 = vector.extract_strided_slice %312 {offsets = [0, 128], sizes = [8, 128], strides = [1, 1]} : vector<8x384xf32> to vector<8x128xf32>
    %322 = vector.extract_strided_slice %274 {offsets = [0, 128], sizes = [8, 128], strides = [1, 1]} : vector<8x384xf32> to vector<8x128xf32>
    %323 = arith.addf %321, %322 : vector<8x128xf32>
    %324 = arith.negf %323 : vector<8x128xf32>
    %325 = math.exp %324 : vector<8x128xf32>
    %cst_125 = arith.constant 1.000000e+00 : f32
    %326 = vector.broadcast %cst_125 : f32 to vector<8x128xf32>
    %327 = arith.addf %326, %325 : vector<8x128xf32>
    %328 = arith.divf %326, %327 : vector<8x128xf32>
    %329 = vector.extract_strided_slice %312 {offsets = [0, 256], sizes = [8, 128], strides = [1, 1]} : vector<8x384xf32> to vector<8x128xf32>
    %330 = vector.extract_strided_slice %274 {offsets = [0, 256], sizes = [8, 128], strides = [1, 1]} : vector<8x384xf32> to vector<8x128xf32>
    %331 = arith.mulf %320, %330 : vector<8x128xf32>
    %332 = arith.addf %329, %331 : vector<8x128xf32>
    %333 = math.tanh %332 : vector<8x128xf32>
    %cst_126 = arith.constant 1.000000e+00 : f32
    %334 = vector.broadcast %cst_126 : f32 to vector<8x128xf32>
    %335 = arith.subf %334, %328 : vector<8x128xf32>
    %336 = arith.mulf %335, %333 : vector<8x128xf32>
    %337 = arith.mulf %328, %254 : vector<8x128xf32>
    %338 = arith.addf %336, %337 : vector<8x128xf32>
    %339 = arith.index_cast %c3_i32 : i32 to index
    %c0_127 = arith.constant 0 : index
    %c0_128 = arith.constant 0 : index
    %340 = vector.load %arg14[%339, %c0_127, %c0_128] : memref<8x8x128xf32, #tpu.memory_space<vmem>>, vector<1x8x128xf32>
    %341 = vector.shape_cast %340 : vector<1x8x128xf32> to vector<8x128xf32>
    %342 = vector.shape_cast %338 : vector<8x128xf32> to vector<1x8x128xf32>
    tpu.vector_store %arg14[%339, %c0_127, %c0_128], %342 {strides = array<i32>} : memref<8x8x128xf32, #tpu.memory_space<vmem>>, vector<1x8x128xf32>,
    %c4_i32 = arith.constant 4 : i32
    %343 = arith.truncf %304 : vector<8x128xf32> to vector<8x128xbf16>
    %c0_129 = arith.constant 0 : index
    %c0_130 = arith.constant 0 : index
    %c0_131 = arith.constant 0 : index
    %344 = vector.load %arg4[%c0_129, %c0_130, %c0_131] : memref<2x128x384xbf16, #tpu.memory_space<vmem>>, vector<1x128x384xbf16>
    %345 = vector.shape_cast %344 : vector<1x128x384xbf16> to vector<128x384xbf16>
    %cst_132 = arith.constant dense<0.000000e+00> : vector<8x384xf32>
    %346 = tpu.matmul %343, %345, %cst_132 {dimension_numbers = #tpu.dot_dimension_numbers<[1], [0], [0], [1], [0, 0, 1, 1], [], []>} : vector<8x128xbf16>, vector<128x384xbf16>, vector<8x384xf32> -> vector<8x384xf32>
    %c0_133 = arith.constant 0 : index
    %c0_134 = arith.constant 0 : index
    %c0_135 = arith.constant 0 : index
    %347 = vector.load %arg5[%c0_133, %c0_134, %c0_135] : memref<2x1x384xf32, #tpu.memory_space<vmem>>, vector<1x1x384xf32>
    %348 = vector.shape_cast %347 : vector<1x1x384xf32> to vector<1x384xf32>
    %349 = vector.broadcast %348 : vector<1x384xf32> to vector<8x384xf32>
    %350 = arith.addf %346, %349 : vector<8x384xf32>
    %351 = arith.truncf %338 : vector<8x128xf32> to vector<8x128xbf16>
    %c1_136 = arith.constant 1 : index
    %c0_137 = arith.constant 0 : index
    %c0_138 = arith.constant 0 : index
    %352 = vector.load %arg4[%c1_136, %c0_137, %c0_138] : memref<2x128x384xbf16, #tpu.memory_space<vmem>>, vector<1x128x384xbf16>
    %353 = vector.shape_cast %352 : vector<1x128x384xbf16> to vector<128x384xbf16>
    %cst_139 = arith.constant dense<0.000000e+00> : vector<8x384xf32>
    %354 = tpu.matmul %351, %353, %cst_139 {dimension_numbers = #tpu.dot_dimension_numbers<[1], [0], [0], [1], [0, 0, 1, 1], [], []>} : vector<8x128xbf16>, vector<128x384xbf16>, vector<8x384xf32> -> vector<8x384xf32>
    %c1_140 = arith.constant 1 : index
    %c0_141 = arith.constant 0 : index
    %c0_142 = arith.constant 0 : index
    %355 = vector.load %arg5[%c1_140, %c0_141, %c0_142] : memref<2x1x384xf32, #tpu.memory_space<vmem>>, vector<1x1x384xf32>
    %356 = vector.shape_cast %355 : vector<1x1x384xf32> to vector<1x384xf32>
    %357 = vector.broadcast %356 : vector<1x384xf32> to vector<8x384xf32>
    %358 = arith.addf %354, %357 : vector<8x384xf32>
    %359 = arith.index_cast %c4_i32 : i32 to index
    %c0_143 = arith.constant 0 : index
    %c0_144 = arith.constant 0 : index
    %360 = vector.load %arg2[%359, %c0_143, %c0_144] : memref<8x8x384xbf16, #tpu.memory_space<vmem>>, vector<1x8x384xbf16>
    %361 = vector.shape_cast %360 : vector<1x8x384xbf16> to vector<8x384xbf16>
    %362 = arith.extf %361 : vector<8x384xbf16> to vector<8x384xf32>
    %363 = vector.extract_strided_slice %362 {offsets = [0, 0], sizes = [8, 128], strides = [1, 1]} : vector<8x384xf32> to vector<8x128xf32>
    %364 = vector.extract_strided_slice %350 {offsets = [0, 0], sizes = [8, 128], strides = [1, 1]} : vector<8x384xf32> to vector<8x128xf32>
    %365 = arith.addf %363, %364 : vector<8x128xf32>
    %366 = arith.negf %365 : vector<8x128xf32>
    %367 = math.exp %366 : vector<8x128xf32>
    %cst_145 = arith.constant 1.000000e+00 : f32
    %368 = vector.broadcast %cst_145 : f32 to vector<8x128xf32>
    %369 = arith.addf %368, %367 : vector<8x128xf32>
    %370 = arith.divf %368, %369 : vector<8x128xf32>
    %371 = vector.extract_strided_slice %362 {offsets = [0, 128], sizes = [8, 128], strides = [1, 1]} : vector<8x384xf32> to vector<8x128xf32>
    %372 = vector.extract_strided_slice %350 {offsets = [0, 128], sizes = [8, 128], strides = [1, 1]} : vector<8x384xf32> to vector<8x128xf32>
    %373 = arith.addf %371, %372 : vector<8x128xf32>
    %374 = arith.negf %373 : vector<8x128xf32>
    %375 = math.exp %374 : vector<8x128xf32>
    %cst_146 = arith.constant 1.000000e+00 : f32
    %376 = vector.broadcast %cst_146 : f32 to vector<8x128xf32>
    %377 = arith.addf %376, %375 : vector<8x128xf32>
    %378 = arith.divf %376, %377 : vector<8x128xf32>
    %379 = vector.extract_strided_slice %362 {offsets = [0, 256], sizes = [8, 128], strides = [1, 1]} : vector<8x384xf32> to vector<8x128xf32>
    %380 = vector.extract_strided_slice %350 {offsets = [0, 256], sizes = [8, 128], strides = [1, 1]} : vector<8x384xf32> to vector<8x128xf32>
    %381 = arith.mulf %370, %380 : vector<8x128xf32>
    %382 = arith.addf %379, %381 : vector<8x128xf32>
    %383 = math.tanh %382 : vector<8x128xf32>
    %cst_147 = arith.constant 1.000000e+00 : f32
    %384 = vector.broadcast %cst_147 : f32 to vector<8x128xf32>
    %385 = arith.subf %384, %378 : vector<8x128xf32>
    %386 = arith.mulf %385, %383 : vector<8x128xf32>
    %387 = arith.mulf %378, %304 : vector<8x128xf32>
    %388 = arith.addf %386, %387 : vector<8x128xf32>
    %389 = arith.truncf %388 : vector<8x128xf32> to vector<8x128xbf16>
    %c0_148 = arith.constant 0 : index
    %c0_149 = arith.constant 0 : index
    %c0_150 = arith.constant 0 : index
    %390 = vector.load %arg6[%c0_148, %c0_149, %c0_150] : memref<1x128x384xbf16, #tpu.memory_space<vmem>>, vector<1x128x384xbf16>
    %391 = vector.shape_cast %390 : vector<1x128x384xbf16> to vector<128x384xbf16>
    %cst_151 = arith.constant dense<0.000000e+00> : vector<8x384xf32>
    %392 = tpu.matmul %389, %391, %cst_151 {dimension_numbers = #tpu.dot_dimension_numbers<[1], [0], [0], [1], [0, 0, 1, 1], [], []>} : vector<8x128xbf16>, vector<128x384xbf16>, vector<8x384xf32> -> vector<8x384xf32>
    %c0_152 = arith.constant 0 : index
    %c0_153 = arith.constant 0 : index
    %c0_154 = arith.constant 0 : index
    %393 = vector.load %arg7[%c0_152, %c0_153, %c0_154] : memref<1x1x384xf32, #tpu.memory_space<vmem>>, vector<1x1x384xf32>
    %394 = vector.shape_cast %393 : vector<1x1x384xf32> to vector<1x384xf32>
    %395 = vector.broadcast %394 : vector<1x384xf32> to vector<8x384xf32>
    %396 = arith.addf %392, %395 : vector<8x384xf32>
    %397 = vector.extract_strided_slice %396 {offsets = [0, 0], sizes = [8, 128], strides = [1, 1]} : vector<8x384xf32> to vector<8x128xf32>
    %398 = vector.extract_strided_slice %358 {offsets = [0, 0], sizes = [8, 128], strides = [1, 1]} : vector<8x384xf32> to vector<8x128xf32>
    %399 = arith.addf %397, %398 : vector<8x128xf32>
    %400 = arith.negf %399 : vector<8x128xf32>
    %401 = math.exp %400 : vector<8x128xf32>
    %cst_155 = arith.constant 1.000000e+00 : f32
    %402 = vector.broadcast %cst_155 : f32 to vector<8x128xf32>
    %403 = arith.addf %402, %401 : vector<8x128xf32>
    %404 = arith.divf %402, %403 : vector<8x128xf32>
    %405 = vector.extract_strided_slice %396 {offsets = [0, 128], sizes = [8, 128], strides = [1, 1]} : vector<8x384xf32> to vector<8x128xf32>
    %406 = vector.extract_strided_slice %358 {offsets = [0, 128], sizes = [8, 128], strides = [1, 1]} : vector<8x384xf32> to vector<8x128xf32>
    %407 = arith.addf %405, %406 : vector<8x128xf32>
    %408 = arith.negf %407 : vector<8x128xf32>
    %409 = math.exp %408 : vector<8x128xf32>
    %cst_156 = arith.constant 1.000000e+00 : f32
    %410 = vector.broadcast %cst_156 : f32 to vector<8x128xf32>
    %411 = arith.addf %410, %409 : vector<8x128xf32>
    %412 = arith.divf %410, %411 : vector<8x128xf32>
    %413 = vector.extract_strided_slice %396 {offsets = [0, 256], sizes = [8, 128], strides = [1, 1]} : vector<8x384xf32> to vector<8x128xf32>
    %414 = vector.extract_strided_slice %358 {offsets = [0, 256], sizes = [8, 128], strides = [1, 1]} : vector<8x384xf32> to vector<8x128xf32>
    %415 = arith.mulf %404, %414 : vector<8x128xf32>
    %416 = arith.addf %413, %415 : vector<8x128xf32>
    %417 = math.tanh %416 : vector<8x128xf32>
    %cst_157 = arith.constant 1.000000e+00 : f32
    %418 = vector.broadcast %cst_157 : f32 to vector<8x128xf32>
    %419 = arith.subf %418, %412 : vector<8x128xf32>
    %420 = arith.mulf %419, %417 : vector<8x128xf32>
    %421 = arith.mulf %412, %338 : vector<8x128xf32>
    %422 = arith.addf %420, %421 : vector<8x128xf32>
    %423 = arith.index_cast %c4_i32 : i32 to index
    %c0_158 = arith.constant 0 : index
    %c0_159 = arith.constant 0 : index
    %424 = vector.load %arg14[%423, %c0_158, %c0_159] : memref<8x8x128xf32, #tpu.memory_space<vmem>>, vector<1x8x128xf32>
    %425 = vector.shape_cast %424 : vector<1x8x128xf32> to vector<8x128xf32>
    %426 = vector.shape_cast %422 : vector<8x128xf32> to vector<1x8x128xf32>
    tpu.vector_store %arg14[%423, %c0_158, %c0_159], %426 {strides = array<i32>} : memref<8x8x128xf32, #tpu.memory_space<vmem>>, vector<1x8x128xf32>,
    %c5_i32 = arith.constant 5 : i32
    %427 = arith.truncf %388 : vector<8x128xf32> to vector<8x128xbf16>
    %c0_160 = arith.constant 0 : index
    %c0_161 = arith.constant 0 : index
    %c0_162 = arith.constant 0 : index
    %428 = vector.load %arg4[%c0_160, %c0_161, %c0_162] : memref<2x128x384xbf16, #tpu.memory_space<vmem>>, vector<1x128x384xbf16>
    %429 = vector.shape_cast %428 : vector<1x128x384xbf16> to vector<128x384xbf16>
    %cst_163 = arith.constant dense<0.000000e+00> : vector<8x384xf32>
    %430 = tpu.matmul %427, %429, %cst_163 {dimension_numbers = #tpu.dot_dimension_numbers<[1], [0], [0], [1], [0, 0, 1, 1], [], []>} : vector<8x128xbf16>, vector<128x384xbf16>, vector<8x384xf32> -> vector<8x384xf32>
    %c0_164 = arith.constant 0 : index
    %c0_165 = arith.constant 0 : index
    %c0_166 = arith.constant 0 : index
    %431 = vector.load %arg5[%c0_164, %c0_165, %c0_166] : memref<2x1x384xf32, #tpu.memory_space<vmem>>, vector<1x1x384xf32>
    %432 = vector.shape_cast %431 : vector<1x1x384xf32> to vector<1x384xf32>
    %433 = vector.broadcast %432 : vector<1x384xf32> to vector<8x384xf32>
    %434 = arith.addf %430, %433 : vector<8x384xf32>
    %435 = arith.truncf %422 : vector<8x128xf32> to vector<8x128xbf16>
    %c1_167 = arith.constant 1 : index
    %c0_168 = arith.constant 0 : index
    %c0_169 = arith.constant 0 : index
    %436 = vector.load %arg4[%c1_167, %c0_168, %c0_169] : memref<2x128x384xbf16, #tpu.memory_space<vmem>>, vector<1x128x384xbf16>
    %437 = vector.shape_cast %436 : vector<1x128x384xbf16> to vector<128x384xbf16>
    %cst_170 = arith.constant dense<0.000000e+00> : vector<8x384xf32>
    %438 = tpu.matmul %435, %437, %cst_170 {dimension_numbers = #tpu.dot_dimension_numbers<[1], [0], [0], [1], [0, 0, 1, 1], [], []>} : vector<8x128xbf16>, vector<128x384xbf16>, vector<8x384xf32> -> vector<8x384xf32>
    %c1_171 = arith.constant 1 : index
    %c0_172 = arith.constant 0 : index
    %c0_173 = arith.constant 0 : index
    %439 = vector.load %arg5[%c1_171, %c0_172, %c0_173] : memref<2x1x384xf32, #tpu.memory_space<vmem>>, vector<1x1x384xf32>
    %440 = vector.shape_cast %439 : vector<1x1x384xf32> to vector<1x384xf32>
    %441 = vector.broadcast %440 : vector<1x384xf32> to vector<8x384xf32>
    %442 = arith.addf %438, %441 : vector<8x384xf32>
    %443 = arith.index_cast %c5_i32 : i32 to index
    %c0_174 = arith.constant 0 : index
    %c0_175 = arith.constant 0 : index
    %444 = vector.load %arg2[%443, %c0_174, %c0_175] : memref<8x8x384xbf16, #tpu.memory_space<vmem>>, vector<1x8x384xbf16>
    %445 = vector.shape_cast %444 : vector<1x8x384xbf16> to vector<8x384xbf16>
    %446 = arith.extf %445 : vector<8x384xbf16> to vector<8x384xf32>
    %447 = vector.extract_strided_slice %446 {offsets = [0, 0], sizes = [8, 128], strides = [1, 1]} : vector<8x384xf32> to vector<8x128xf32>
    %448 = vector.extract_strided_slice %434 {offsets = [0, 0], sizes = [8, 128], strides = [1, 1]} : vector<8x384xf32> to vector<8x128xf32>
    %449 = arith.addf %447, %448 : vector<8x128xf32>
    %450 = arith.negf %449 : vector<8x128xf32>
    %451 = math.exp %450 : vector<8x128xf32>
    %cst_176 = arith.constant 1.000000e+00 : f32
    %452 = vector.broadcast %cst_176 : f32 to vector<8x128xf32>
    %453 = arith.addf %452, %451 : vector<8x128xf32>
    %454 = arith.divf %452, %453 : vector<8x128xf32>
    %455 = vector.extract_strided_slice %446 {offsets = [0, 128], sizes = [8, 128], strides = [1, 1]} : vector<8x384xf32> to vector<8x128xf32>
    %456 = vector.extract_strided_slice %434 {offsets = [0, 128], sizes = [8, 128], strides = [1, 1]} : vector<8x384xf32> to vector<8x128xf32>
    %457 = arith.addf %455, %456 : vector<8x128xf32>
    %458 = arith.negf %457 : vector<8x128xf32>
    %459 = math.exp %458 : vector<8x128xf32>
    %cst_177 = arith.constant 1.000000e+00 : f32
    %460 = vector.broadcast %cst_177 : f32 to vector<8x128xf32>
    %461 = arith.addf %460, %459 : vector<8x128xf32>
    %462 = arith.divf %460, %461 : vector<8x128xf32>
    %463 = vector.extract_strided_slice %446 {offsets = [0, 256], sizes = [8, 128], strides = [1, 1]} : vector<8x384xf32> to vector<8x128xf32>
    %464 = vector.extract_strided_slice %434 {offsets = [0, 256], sizes = [8, 128], strides = [1, 1]} : vector<8x384xf32> to vector<8x128xf32>
    %465 = arith.mulf %454, %464 : vector<8x128xf32>
    %466 = arith.addf %463, %465 : vector<8x128xf32>
    %467 = math.tanh %466 : vector<8x128xf32>
    %cst_178 = arith.constant 1.000000e+00 : f32
    %468 = vector.broadcast %cst_178 : f32 to vector<8x128xf32>
    %469 = arith.subf %468, %462 : vector<8x128xf32>
    %470 = arith.mulf %469, %467 : vector<8x128xf32>
    %471 = arith.mulf %462, %388 : vector<8x128xf32>
    %472 = arith.addf %470, %471 : vector<8x128xf32>
    %473 = arith.truncf %472 : vector<8x128xf32> to vector<8x128xbf16>
    %c0_179 = arith.constant 0 : index
    %c0_180 = arith.constant 0 : index
    %c0_181 = arith.constant 0 : index
    %474 = vector.load %arg6[%c0_179, %c0_180, %c0_181] : memref<1x128x384xbf16, #tpu.memory_space<vmem>>, vector<1x128x384xbf16>
    %475 = vector.shape_cast %474 : vector<1x128x384xbf16> to vector<128x384xbf16>
    %cst_182 = arith.constant dense<0.000000e+00> : vector<8x384xf32>
    %476 = tpu.matmul %473, %475, %cst_182 {dimension_numbers = #tpu.dot_dimension_numbers<[1], [0], [0], [1], [0, 0, 1, 1], [], []>} : vector<8x128xbf16>, vector<128x384xbf16>, vector<8x384xf32> -> vector<8x384xf32>
    %c0_183 = arith.constant 0 : index
    %c0_184 = arith.constant 0 : index
    %c0_185 = arith.constant 0 : index
    %477 = vector.load %arg7[%c0_183, %c0_184, %c0_185] : memref<1x1x384xf32, #tpu.memory_space<vmem>>, vector<1x1x384xf32>
    %478 = vector.shape_cast %477 : vector<1x1x384xf32> to vector<1x384xf32>
    %479 = vector.broadcast %478 : vector<1x384xf32> to vector<8x384xf32>
    %480 = arith.addf %476, %479 : vector<8x384xf32>
    %481 = vector.extract_strided_slice %480 {offsets = [0, 0], sizes = [8, 128], strides = [1, 1]} : vector<8x384xf32> to vector<8x128xf32>
    %482 = vector.extract_strided_slice %442 {offsets = [0, 0], sizes = [8, 128], strides = [1, 1]} : vector<8x384xf32> to vector<8x128xf32>
    %483 = arith.addf %481, %482 : vector<8x128xf32>
    %484 = arith.negf %483 : vector<8x128xf32>
    %485 = math.exp %484 : vector<8x128xf32>
    %cst_186 = arith.constant 1.000000e+00 : f32
    %486 = vector.broadcast %cst_186 : f32 to vector<8x128xf32>
    %487 = arith.addf %486, %485 : vector<8x128xf32>
    %488 = arith.divf %486, %487 : vector<8x128xf32>
    %489 = vector.extract_strided_slice %480 {offsets = [0, 128], sizes = [8, 128], strides = [1, 1]} : vector<8x384xf32> to vector<8x128xf32>
    %490 = vector.extract_strided_slice %442 {offsets = [0, 128], sizes = [8, 128], strides = [1, 1]} : vector<8x384xf32> to vector<8x128xf32>
    %491 = arith.addf %489, %490 : vector<8x128xf32>
    %492 = arith.negf %491 : vector<8x128xf32>
    %493 = math.exp %492 : vector<8x128xf32>
    %cst_187 = arith.constant 1.000000e+00 : f32
    %494 = vector.broadcast %cst_187 : f32 to vector<8x128xf32>
    %495 = arith.addf %494, %493 : vector<8x128xf32>
    %496 = arith.divf %494, %495 : vector<8x128xf32>
    %497 = vector.extract_strided_slice %480 {offsets = [0, 256], sizes = [8, 128], strides = [1, 1]} : vector<8x384xf32> to vector<8x128xf32>
    %498 = vector.extract_strided_slice %442 {offsets = [0, 256], sizes = [8, 128], strides = [1, 1]} : vector<8x384xf32> to vector<8x128xf32>
    %499 = arith.mulf %488, %498 : vector<8x128xf32>
    %500 = arith.addf %497, %499 : vector<8x128xf32>
    %501 = math.tanh %500 : vector<8x128xf32>
    %cst_188 = arith.constant 1.000000e+00 : f32
    %502 = vector.broadcast %cst_188 : f32 to vector<8x128xf32>
    %503 = arith.subf %502, %496 : vector<8x128xf32>
    %504 = arith.mulf %503, %501 : vector<8x128xf32>
    %505 = arith.mulf %496, %422 : vector<8x128xf32>
    %506 = arith.addf %504, %505 : vector<8x128xf32>
    %507 = arith.index_cast %c5_i32 : i32 to index
    %c0_189 = arith.constant 0 : index
    %c0_190 = arith.constant 0 : index
    %508 = vector.load %arg14[%507, %c0_189, %c0_190] : memref<8x8x128xf32, #tpu.memory_space<vmem>>, vector<1x8x128xf32>
    %509 = vector.shape_cast %508 : vector<1x8x128xf32> to vector<8x128xf32>
    %510 = vector.shape_cast %506 : vector<8x128xf32> to vector<1x8x128xf32>
    tpu.vector_store %arg14[%507, %c0_189, %c0_190], %510 {strides = array<i32>} : memref<8x8x128xf32, #tpu.memory_space<vmem>>, vector<1x8x128xf32>,
    %c6_i32 = arith.constant 6 : i32
    %511 = arith.truncf %472 : vector<8x128xf32> to vector<8x128xbf16>
    %c0_191 = arith.constant 0 : index
    %c0_192 = arith.constant 0 : index
    %c0_193 = arith.constant 0 : index
    %512 = vector.load %arg4[%c0_191, %c0_192, %c0_193] : memref<2x128x384xbf16, #tpu.memory_space<vmem>>, vector<1x128x384xbf16>
    %513 = vector.shape_cast %512 : vector<1x128x384xbf16> to vector<128x384xbf16>
    %cst_194 = arith.constant dense<0.000000e+00> : vector<8x384xf32>
    %514 = tpu.matmul %511, %513, %cst_194 {dimension_numbers = #tpu.dot_dimension_numbers<[1], [0], [0], [1], [0, 0, 1, 1], [], []>} : vector<8x128xbf16>, vector<128x384xbf16>, vector<8x384xf32> -> vector<8x384xf32>
    %c0_195 = arith.constant 0 : index
    %c0_196 = arith.constant 0 : index
    %c0_197 = arith.constant 0 : index
    %515 = vector.load %arg5[%c0_195, %c0_196, %c0_197] : memref<2x1x384xf32, #tpu.memory_space<vmem>>, vector<1x1x384xf32>
    %516 = vector.shape_cast %515 : vector<1x1x384xf32> to vector<1x384xf32>
    %517 = vector.broadcast %516 : vector<1x384xf32> to vector<8x384xf32>
    %518 = arith.addf %514, %517 : vector<8x384xf32>
    %519 = arith.truncf %506 : vector<8x128xf32> to vector<8x128xbf16>
    %c1_198 = arith.constant 1 : index
    %c0_199 = arith.constant 0 : index
    %c0_200 = arith.constant 0 : index
    %520 = vector.load %arg4[%c1_198, %c0_199, %c0_200] : memref<2x128x384xbf16, #tpu.memory_space<vmem>>, vector<1x128x384xbf16>
    %521 = vector.shape_cast %520 : vector<1x128x384xbf16> to vector<128x384xbf16>
    %cst_201 = arith.constant dense<0.000000e+00> : vector<8x384xf32>
    %522 = tpu.matmul %519, %521, %cst_201 {dimension_numbers = #tpu.dot_dimension_numbers<[1], [0], [0], [1], [0, 0, 1, 1], [], []>} : vector<8x128xbf16>, vector<128x384xbf16>, vector<8x384xf32> -> vector<8x384xf32>
    %c1_202 = arith.constant 1 : index
    %c0_203 = arith.constant 0 : index
    %c0_204 = arith.constant 0 : index
    %523 = vector.load %arg5[%c1_202, %c0_203, %c0_204] : memref<2x1x384xf32, #tpu.memory_space<vmem>>, vector<1x1x384xf32>
    %524 = vector.shape_cast %523 : vector<1x1x384xf32> to vector<1x384xf32>
    %525 = vector.broadcast %524 : vector<1x384xf32> to vector<8x384xf32>
    %526 = arith.addf %522, %525 : vector<8x384xf32>
    %527 = arith.index_cast %c6_i32 : i32 to index
    %c0_205 = arith.constant 0 : index
    %c0_206 = arith.constant 0 : index
    %528 = vector.load %arg2[%527, %c0_205, %c0_206] : memref<8x8x384xbf16, #tpu.memory_space<vmem>>, vector<1x8x384xbf16>
    %529 = vector.shape_cast %528 : vector<1x8x384xbf16> to vector<8x384xbf16>
    %530 = arith.extf %529 : vector<8x384xbf16> to vector<8x384xf32>
    %531 = vector.extract_strided_slice %530 {offsets = [0, 0], sizes = [8, 128], strides = [1, 1]} : vector<8x384xf32> to vector<8x128xf32>
    %532 = vector.extract_strided_slice %518 {offsets = [0, 0], sizes = [8, 128], strides = [1, 1]} : vector<8x384xf32> to vector<8x128xf32>
    %533 = arith.addf %531, %532 : vector<8x128xf32>
    %534 = arith.negf %533 : vector<8x128xf32>
    %535 = math.exp %534 : vector<8x128xf32>
    %cst_207 = arith.constant 1.000000e+00 : f32
    %536 = vector.broadcast %cst_207 : f32 to vector<8x128xf32>
    %537 = arith.addf %536, %535 : vector<8x128xf32>
    %538 = arith.divf %536, %537 : vector<8x128xf32>
    %539 = vector.extract_strided_slice %530 {offsets = [0, 128], sizes = [8, 128], strides = [1, 1]} : vector<8x384xf32> to vector<8x128xf32>
    %540 = vector.extract_strided_slice %518 {offsets = [0, 128], sizes = [8, 128], strides = [1, 1]} : vector<8x384xf32> to vector<8x128xf32>
    %541 = arith.addf %539, %540 : vector<8x128xf32>
    %542 = arith.negf %541 : vector<8x128xf32>
    %543 = math.exp %542 : vector<8x128xf32>
    %cst_208 = arith.constant 1.000000e+00 : f32
    %544 = vector.broadcast %cst_208 : f32 to vector<8x128xf32>
    %545 = arith.addf %544, %543 : vector<8x128xf32>
    %546 = arith.divf %544, %545 : vector<8x128xf32>
    %547 = vector.extract_strided_slice %530 {offsets = [0, 256], sizes = [8, 128], strides = [1, 1]} : vector<8x384xf32> to vector<8x128xf32>
    %548 = vector.extract_strided_slice %518 {offsets = [0, 256], sizes = [8, 128], strides = [1, 1]} : vector<8x384xf32> to vector<8x128xf32>
    %549 = arith.mulf %538, %548 : vector<8x128xf32>
    %550 = arith.addf %547, %549 : vector<8x128xf32>
    %551 = math.tanh %550 : vector<8x128xf32>
    %cst_209 = arith.constant 1.000000e+00 : f32
    %552 = vector.broadcast %cst_209 : f32 to vector<8x128xf32>
    %553 = arith.subf %552, %546 : vector<8x128xf32>
    %554 = arith.mulf %553, %551 : vector<8x128xf32>
    %555 = arith.mulf %546, %472 : vector<8x128xf32>
    %556 = arith.addf %554, %555 : vector<8x128xf32>
    %557 = arith.truncf %556 : vector<8x128xf32> to vector<8x128xbf16>
    %c0_210 = arith.constant 0 : index
    %c0_211 = arith.constant 0 : index
    %c0_212 = arith.constant 0 : index
    %558 = vector.load %arg6[%c0_210, %c0_211, %c0_212] : memref<1x128x384xbf16, #tpu.memory_space<vmem>>, vector<1x128x384xbf16>
    %559 = vector.shape_cast %558 : vector<1x128x384xbf16> to vector<128x384xbf16>
    %cst_213 = arith.constant dense<0.000000e+00> : vector<8x384xf32>
    %560 = tpu.matmul %557, %559, %cst_213 {dimension_numbers = #tpu.dot_dimension_numbers<[1], [0], [0], [1], [0, 0, 1, 1], [], []>} : vector<8x128xbf16>, vector<128x384xbf16>, vector<8x384xf32> -> vector<8x384xf32>
    %c0_214 = arith.constant 0 : index
    %c0_215 = arith.constant 0 : index
    %c0_216 = arith.constant 0 : index
    %561 = vector.load %arg7[%c0_214, %c0_215, %c0_216] : memref<1x1x384xf32, #tpu.memory_space<vmem>>, vector<1x1x384xf32>
    %562 = vector.shape_cast %561 : vector<1x1x384xf32> to vector<1x384xf32>
    %563 = vector.broadcast %562 : vector<1x384xf32> to vector<8x384xf32>
    %564 = arith.addf %560, %563 : vector<8x384xf32>
    %565 = vector.extract_strided_slice %564 {offsets = [0, 0], sizes = [8, 128], strides = [1, 1]} : vector<8x384xf32> to vector<8x128xf32>
    %566 = vector.extract_strided_slice %526 {offsets = [0, 0], sizes = [8, 128], strides = [1, 1]} : vector<8x384xf32> to vector<8x128xf32>
    %567 = arith.addf %565, %566 : vector<8x128xf32>
    %568 = arith.negf %567 : vector<8x128xf32>
    %569 = math.exp %568 : vector<8x128xf32>
    %cst_217 = arith.constant 1.000000e+00 : f32
    %570 = vector.broadcast %cst_217 : f32 to vector<8x128xf32>
    %571 = arith.addf %570, %569 : vector<8x128xf32>
    %572 = arith.divf %570, %571 : vector<8x128xf32>
    %573 = vector.extract_strided_slice %564 {offsets = [0, 128], sizes = [8, 128], strides = [1, 1]} : vector<8x384xf32> to vector<8x128xf32>
    %574 = vector.extract_strided_slice %526 {offsets = [0, 128], sizes = [8, 128], strides = [1, 1]} : vector<8x384xf32> to vector<8x128xf32>
    %575 = arith.addf %573, %574 : vector<8x128xf32>
    %576 = arith.negf %575 : vector<8x128xf32>
    %577 = math.exp %576 : vector<8x128xf32>
    %cst_218 = arith.constant 1.000000e+00 : f32
    %578 = vector.broadcast %cst_218 : f32 to vector<8x128xf32>
    %579 = arith.addf %578, %577 : vector<8x128xf32>
    %580 = arith.divf %578, %579 : vector<8x128xf32>
    %581 = vector.extract_strided_slice %564 {offsets = [0, 256], sizes = [8, 128], strides = [1, 1]} : vector<8x384xf32> to vector<8x128xf32>
    %582 = vector.extract_strided_slice %526 {offsets = [0, 256], sizes = [8, 128], strides = [1, 1]} : vector<8x384xf32> to vector<8x128xf32>
    %583 = arith.mulf %572, %582 : vector<8x128xf32>
    %584 = arith.addf %581, %583 : vector<8x128xf32>
    %585 = math.tanh %584 : vector<8x128xf32>
    %cst_219 = arith.constant 1.000000e+00 : f32
    %586 = vector.broadcast %cst_219 : f32 to vector<8x128xf32>
    %587 = arith.subf %586, %580 : vector<8x128xf32>
    %588 = arith.mulf %587, %585 : vector<8x128xf32>
    %589 = arith.mulf %580, %506 : vector<8x128xf32>
    %590 = arith.addf %588, %589 : vector<8x128xf32>
    %591 = arith.index_cast %c6_i32 : i32 to index
    %c0_220 = arith.constant 0 : index
    %c0_221 = arith.constant 0 : index
    %592 = vector.load %arg14[%591, %c0_220, %c0_221] : memref<8x8x128xf32, #tpu.memory_space<vmem>>, vector<1x8x128xf32>
    %593 = vector.shape_cast %592 : vector<1x8x128xf32> to vector<8x128xf32>
    %594 = vector.shape_cast %590 : vector<8x128xf32> to vector<1x8x128xf32>
    tpu.vector_store %arg14[%591, %c0_220, %c0_221], %594 {strides = array<i32>} : memref<8x8x128xf32, #tpu.memory_space<vmem>>, vector<1x8x128xf32>,
    %c7_i32 = arith.constant 7 : i32
    %595 = arith.truncf %556 : vector<8x128xf32> to vector<8x128xbf16>
    %c0_222 = arith.constant 0 : index
    %c0_223 = arith.constant 0 : index
    %c0_224 = arith.constant 0 : index
    %596 = vector.load %arg4[%c0_222, %c0_223, %c0_224] : memref<2x128x384xbf16, #tpu.memory_space<vmem>>, vector<1x128x384xbf16>
    %597 = vector.shape_cast %596 : vector<1x128x384xbf16> to vector<128x384xbf16>
    %cst_225 = arith.constant dense<0.000000e+00> : vector<8x384xf32>
    %598 = tpu.matmul %595, %597, %cst_225 {dimension_numbers = #tpu.dot_dimension_numbers<[1], [0], [0], [1], [0, 0, 1, 1], [], []>} : vector<8x128xbf16>, vector<128x384xbf16>, vector<8x384xf32> -> vector<8x384xf32>
    %c0_226 = arith.constant 0 : index
    %c0_227 = arith.constant 0 : index
    %c0_228 = arith.constant 0 : index
    %599 = vector.load %arg5[%c0_226, %c0_227, %c0_228] : memref<2x1x384xf32, #tpu.memory_space<vmem>>, vector<1x1x384xf32>
    %600 = vector.shape_cast %599 : vector<1x1x384xf32> to vector<1x384xf32>
    %601 = vector.broadcast %600 : vector<1x384xf32> to vector<8x384xf32>
    %602 = arith.addf %598, %601 : vector<8x384xf32>
    %603 = arith.truncf %590 : vector<8x128xf32> to vector<8x128xbf16>
    %c1_229 = arith.constant 1 : index
    %c0_230 = arith.constant 0 : index
    %c0_231 = arith.constant 0 : index
    %604 = vector.load %arg4[%c1_229, %c0_230, %c0_231] : memref<2x128x384xbf16, #tpu.memory_space<vmem>>, vector<1x128x384xbf16>
    %605 = vector.shape_cast %604 : vector<1x128x384xbf16> to vector<128x384xbf16>
    %cst_232 = arith.constant dense<0.000000e+00> : vector<8x384xf32>
    %606 = tpu.matmul %603, %605, %cst_232 {dimension_numbers = #tpu.dot_dimension_numbers<[1], [0], [0], [1], [0, 0, 1, 1], [], []>} : vector<8x128xbf16>, vector<128x384xbf16>, vector<8x384xf32> -> vector<8x384xf32>
    %c1_233 = arith.constant 1 : index
    %c0_234 = arith.constant 0 : index
    %c0_235 = arith.constant 0 : index
    %607 = vector.load %arg5[%c1_233, %c0_234, %c0_235] : memref<2x1x384xf32, #tpu.memory_space<vmem>>, vector<1x1x384xf32>
    %608 = vector.shape_cast %607 : vector<1x1x384xf32> to vector<1x384xf32>
    %609 = vector.broadcast %608 : vector<1x384xf32> to vector<8x384xf32>
    %610 = arith.addf %606, %609 : vector<8x384xf32>
    %611 = arith.index_cast %c7_i32 : i32 to index
    %c0_236 = arith.constant 0 : index
    %c0_237 = arith.constant 0 : index
    %612 = vector.load %arg2[%611, %c0_236, %c0_237] : memref<8x8x384xbf16, #tpu.memory_space<vmem>>, vector<1x8x384xbf16>
    %613 = vector.shape_cast %612 : vector<1x8x384xbf16> to vector<8x384xbf16>
    %614 = arith.extf %613 : vector<8x384xbf16> to vector<8x384xf32>
    %615 = vector.extract_strided_slice %614 {offsets = [0, 0], sizes = [8, 128], strides = [1, 1]} : vector<8x384xf32> to vector<8x128xf32>
    %616 = vector.extract_strided_slice %602 {offsets = [0, 0], sizes = [8, 128], strides = [1, 1]} : vector<8x384xf32> to vector<8x128xf32>
    %617 = arith.addf %615, %616 : vector<8x128xf32>
    %618 = arith.negf %617 : vector<8x128xf32>
    %619 = math.exp %618 : vector<8x128xf32>
    %cst_238 = arith.constant 1.000000e+00 : f32
    %620 = vector.broadcast %cst_238 : f32 to vector<8x128xf32>
    %621 = arith.addf %620, %619 : vector<8x128xf32>
    %622 = arith.divf %620, %621 : vector<8x128xf32>
    %623 = vector.extract_strided_slice %614 {offsets = [0, 128], sizes = [8, 128], strides = [1, 1]} : vector<8x384xf32> to vector<8x128xf32>
    %624 = vector.extract_strided_slice %602 {offsets = [0, 128], sizes = [8, 128], strides = [1, 1]} : vector<8x384xf32> to vector<8x128xf32>
    %625 = arith.addf %623, %624 : vector<8x128xf32>
    %626 = arith.negf %625 : vector<8x128xf32>
    %627 = math.exp %626 : vector<8x128xf32>
    %cst_239 = arith.constant 1.000000e+00 : f32
    %628 = vector.broadcast %cst_239 : f32 to vector<8x128xf32>
    %629 = arith.addf %628, %627 : vector<8x128xf32>
    %630 = arith.divf %628, %629 : vector<8x128xf32>
    %631 = vector.extract_strided_slice %614 {offsets = [0, 256], sizes = [8, 128], strides = [1, 1]} : vector<8x384xf32> to vector<8x128xf32>
    %632 = vector.extract_strided_slice %602 {offsets = [0, 256], sizes = [8, 128], strides = [1, 1]} : vector<8x384xf32> to vector<8x128xf32>
    %633 = arith.mulf %622, %632 : vector<8x128xf32>
    %634 = arith.addf %631, %633 : vector<8x128xf32>
    %635 = math.tanh %634 : vector<8x128xf32>
    %cst_240 = arith.constant 1.000000e+00 : f32
    %636 = vector.broadcast %cst_240 : f32 to vector<8x128xf32>
    %637 = arith.subf %636, %630 : vector<8x128xf32>
    %638 = arith.mulf %637, %635 : vector<8x128xf32>
    %639 = arith.mulf %630, %556 : vector<8x128xf32>
    %640 = arith.addf %638, %639 : vector<8x128xf32>
    %641 = arith.truncf %640 : vector<8x128xf32> to vector<8x128xbf16>
    %c0_241 = arith.constant 0 : index
    %c0_242 = arith.constant 0 : index
    %c0_243 = arith.constant 0 : index
    %642 = vector.load %arg6[%c0_241, %c0_242, %c0_243] : memref<1x128x384xbf16, #tpu.memory_space<vmem>>, vector<1x128x384xbf16>
    %643 = vector.shape_cast %642 : vector<1x128x384xbf16> to vector<128x384xbf16>
    %cst_244 = arith.constant dense<0.000000e+00> : vector<8x384xf32>
    %644 = tpu.matmul %641, %643, %cst_244 {dimension_numbers = #tpu.dot_dimension_numbers<[1], [0], [0], [1], [0, 0, 1, 1], [], []>} : vector<8x128xbf16>, vector<128x384xbf16>, vector<8x384xf32> -> vector<8x384xf32>
    %c0_245 = arith.constant 0 : index
    %c0_246 = arith.constant 0 : index
    %c0_247 = arith.constant 0 : index
    %645 = vector.load %arg7[%c0_245, %c0_246, %c0_247] : memref<1x1x384xf32, #tpu.memory_space<vmem>>, vector<1x1x384xf32>
    %646 = vector.shape_cast %645 : vector<1x1x384xf32> to vector<1x384xf32>
    %647 = vector.broadcast %646 : vector<1x384xf32> to vector<8x384xf32>
    %648 = arith.addf %644, %647 : vector<8x384xf32>
    %649 = vector.extract_strided_slice %648 {offsets = [0, 0], sizes = [8, 128], strides = [1, 1]} : vector<8x384xf32> to vector<8x128xf32>
    %650 = vector.extract_strided_slice %610 {offsets = [0, 0], sizes = [8, 128], strides = [1, 1]} : vector<8x384xf32> to vector<8x128xf32>
    %651 = arith.addf %649, %650 : vector<8x128xf32>
    %652 = arith.negf %651 : vector<8x128xf32>
    %653 = math.exp %652 : vector<8x128xf32>
    %cst_248 = arith.constant 1.000000e+00 : f32
    %654 = vector.broadcast %cst_248 : f32 to vector<8x128xf32>
    %655 = arith.addf %654, %653 : vector<8x128xf32>
    %656 = arith.divf %654, %655 : vector<8x128xf32>
    %657 = vector.extract_strided_slice %648 {offsets = [0, 128], sizes = [8, 128], strides = [1, 1]} : vector<8x384xf32> to vector<8x128xf32>
    %658 = vector.extract_strided_slice %610 {offsets = [0, 128], sizes = [8, 128], strides = [1, 1]} : vector<8x384xf32> to vector<8x128xf32>
    %659 = arith.addf %657, %658 : vector<8x128xf32>
    %660 = arith.negf %659 : vector<8x128xf32>
    %661 = math.exp %660 : vector<8x128xf32>
    %cst_249 = arith.constant 1.000000e+00 : f32
    %662 = vector.broadcast %cst_249 : f32 to vector<8x128xf32>
    %663 = arith.addf %662, %661 : vector<8x128xf32>
    %664 = arith.divf %662, %663 : vector<8x128xf32>
    %665 = vector.extract_strided_slice %648 {offsets = [0, 256], sizes = [8, 128], strides = [1, 1]} : vector<8x384xf32> to vector<8x128xf32>
    %666 = vector.extract_strided_slice %610 {offsets = [0, 256], sizes = [8, 128], strides = [1, 1]} : vector<8x384xf32> to vector<8x128xf32>
    %667 = arith.mulf %656, %666 : vector<8x128xf32>
    %668 = arith.addf %665, %667 : vector<8x128xf32>
    %669 = math.tanh %668 : vector<8x128xf32>
    %cst_250 = arith.constant 1.000000e+00 : f32
    %670 = vector.broadcast %cst_250 : f32 to vector<8x128xf32>
    %671 = arith.subf %670, %664 : vector<8x128xf32>
    %672 = arith.mulf %671, %669 : vector<8x128xf32>
    %673 = arith.mulf %664, %590 : vector<8x128xf32>
    %674 = arith.addf %672, %673 : vector<8x128xf32>
    %675 = arith.index_cast %c7_i32 : i32 to index
    %c0_251 = arith.constant 0 : index
    %c0_252 = arith.constant 0 : index
    %676 = vector.load %arg14[%675, %c0_251, %c0_252] : memref<8x8x128xf32, #tpu.memory_space<vmem>>, vector<1x8x128xf32>
    %677 = vector.shape_cast %676 : vector<1x8x128xf32> to vector<8x128xf32>
    %678 = vector.shape_cast %674 : vector<8x128xf32> to vector<1x8x128xf32>
    tpu.vector_store %arg14[%675, %c0_251, %c0_252], %678 {strides = array<i32>} : memref<8x8x128xf32, #tpu.memory_space<vmem>>, vector<1x8x128xf32>,
    %c8_i32 = arith.constant 8 : i32
    %c0_253 = arith.constant 0 : index
    %c0_254 = arith.constant 0 : index
    %c0_255 = arith.constant 0 : index
    %679 = vector.load %arg13[%c0_253, %c0_254, %c0_255] : memref<2x8x128xf32, #tpu.memory_space<vmem>>, vector<1x8x128xf32>
    %680 = vector.shape_cast %679 : vector<1x8x128xf32> to vector<8x128xf32>
    %681 = vector.shape_cast %640 : vector<8x128xf32> to vector<1x8x128xf32>
    tpu.vector_store %arg13[%c0_253, %c0_254, %c0_255], %681 {strides = array<i32>} : memref<2x8x128xf32, #tpu.memory_space<vmem>>, vector<1x8x128xf32>,
    %c1_256 = arith.constant 1 : index
    %c0_257 = arith.constant 0 : index
    %c0_258 = arith.constant 0 : index
    %682 = vector.load %arg13[%c1_256, %c0_257, %c0_258] : memref<2x8x128xf32, #tpu.memory_space<vmem>>, vector<1x8x128xf32>
    %683 = vector.shape_cast %682 : vector<1x8x128xf32> to vector<8x128xf32>
    %684 = vector.shape_cast %674 : vector<8x128xf32> to vector<1x8x128xf32>
    tpu.vector_store %arg13[%c1_256, %c0_257, %c0_258], %684 {strides = array<i32>} : memref<2x8x128xf32, #tpu.memory_space<vmem>>, vector<1x8x128xf32>,
    %c0_259 = arith.constant 0 : index
    %c0_260 = arith.constant 0 : index
    %c0_261 = arith.constant 0 : index
    %685 = vector.load %arg14[%c0_259, %c0_260, %c0_261] : memref<8x8x128xf32, #tpu.memory_space<vmem>>, vector<8x8x128xf32>
    %686 = vector.shape_cast %685 : vector<8x8x128xf32> to vector<64x128xf32>
    %687 = arith.truncf %686 : vector<64x128xf32> to vector<64x128xbf16>
    %c0_262 = arith.constant 0 : index
    %c0_263 = arith.constant 0 : index
    %688 = vector.load %arg8[%c0_262, %c0_263] : memref<128x128xbf16, #tpu.memory_space<vmem>>, vector<128x128xbf16>
    %cst_264 = arith.constant dense<0.000000e+00> : vector<64x128xf32>
    %689 = tpu.matmul %687, %688, %cst_264 {dimension_numbers = #tpu.dot_dimension_numbers<[1], [0], [0], [1], [0, 0, 1, 1], [], []>} : vector<64x128xbf16>, vector<128x128xbf16>, vector<64x128xf32> -> vector<64x128xf32>
    %c0_265 = arith.constant 0 : index
    %c0_266 = arith.constant 0 : index
    %690 = vector.load %arg9[%c0_265, %c0_266] : memref<1x128xf32, #tpu.memory_space<vmem>>, vector<1x128xf32>
    %691 = vector.broadcast %690 : vector<1x128xf32> to vector<64x128xf32>
    %692 = arith.addf %689, %691 : vector<64x128xf32>
    %cst_267 = arith.constant 0.000000e+00 : f32
    %693 = vector.broadcast %cst_267 : f32 to vector<64x128xf32>
    %694 = arith.maximumf %692, %693 : vector<64x128xf32>
    %695 = arith.truncf %694 : vector<64x128xf32> to vector<64x128xbf16>
    %c0_268 = arith.constant 0 : index
    %c0_269 = arith.constant 0 : index
    %696 = vector.load %arg10[%c0_268, %c0_269] : memref<128x128xbf16, #tpu.memory_space<vmem>>, vector<128x128xbf16>
    %cst_270 = arith.constant dense<0.000000e+00> : vector<64x128xf32>
    %697 = tpu.matmul %695, %696, %cst_270 {dimension_numbers = #tpu.dot_dimension_numbers<[1], [0], [0], [1], [0, 0, 1, 1], [], []>} : vector<64x128xbf16>, vector<128x128xbf16>, vector<64x128xf32> -> vector<64x128xf32>
    %c0_271 = arith.constant 0 : index
    %c0_272 = arith.constant 0 : index
    %698 = vector.load %arg11[%c0_271, %c0_272] : memref<1x128xf32, #tpu.memory_space<vmem>>, vector<1x128xf32>
    %699 = vector.broadcast %698 : vector<1x128xf32> to vector<64x128xf32>
    %700 = arith.addf %697, %699 : vector<64x128xf32>
    %701 = vector.shape_cast %700 : vector<64x128xf32> to vector<8x8x128xf32>
    %c0_273 = arith.constant 0 : index
    %c0_274 = arith.constant 0 : index
    %c0_275 = arith.constant 0 : index
    %702 = vector.load %arg12[%c0_273, %c0_274, %c0_275] : memref<8x8x128xf32, #tpu.memory_space<vmem>>, vector<8x8x128xf32>
    tpu.vector_store %arg12[%c0_273, %c0_274, %c0_275], %701 {strides = array<i32>} : memref<8x8x128xf32, #tpu.memory_space<vmem>>, vector<8x8x128xf32>,
    return
  }
  func.func @transform_0(%arg0: i32, %arg1: i32) -> (i32, i32, i32) {
    %c0_i32 = arith.constant 0 : i32
    %c0_i32_0 = arith.constant 0 : i32
    return %arg1, %arg0, %c0_i32 : i32, i32, i32
  }
  func.func @transform_1(%arg0: i32, %arg1: i32) -> (i32, i32, i32) {
    %c0_i32 = arith.constant 0 : i32
    %c0_i32_0 = arith.constant 0 : i32
    %c0_i32_1 = arith.constant 0 : i32
    return %c0_i32, %arg0, %c0_i32_0 : i32, i32, i32
  }
  func.func @transform_2(%arg0: i32, %arg1: i32) -> (i32, i32, i32) {
    %c0_i32 = arith.constant 0 : i32
    %c0_i32_0 = arith.constant 0 : i32
    %c0_i32_1 = arith.constant 0 : i32
    %c0_i32_2 = arith.constant 0 : i32
    return %c0_i32, %c0_i32_0, %c0_i32_1 : i32, i32, i32
  }
  func.func @transform_3(%arg0: i32, %arg1: i32) -> (i32, i32, i32) {
    %c0_i32 = arith.constant 0 : i32
    %c0_i32_0 = arith.constant 0 : i32
    %c0_i32_1 = arith.constant 0 : i32
    %c0_i32_2 = arith.constant 0 : i32
    return %c0_i32, %c0_i32_0, %c0_i32_1 : i32, i32, i32
  }
  func.func @transform_4(%arg0: i32, %arg1: i32) -> (i32, i32, i32) {
    %c0_i32 = arith.constant 0 : i32
    %c0_i32_0 = arith.constant 0 : i32
    %c0_i32_1 = arith.constant 0 : i32
    %c0_i32_2 = arith.constant 0 : i32
    return %c0_i32, %c0_i32_0, %c0_i32_1 : i32, i32, i32
  }
  func.func @transform_5(%arg0: i32, %arg1: i32) -> (i32, i32, i32) {
    %c0_i32 = arith.constant 0 : i32
    %c0_i32_0 = arith.constant 0 : i32
    %c0_i32_1 = arith.constant 0 : i32
    %c0_i32_2 = arith.constant 0 : i32
    return %c0_i32, %c0_i32_0, %c0_i32_1 : i32, i32, i32
  }
  func.func @transform_6(%arg0: i32, %arg1: i32) -> (i32, i32) {
    %c0_i32 = arith.constant 0 : i32
    %c0_i32_0 = arith.constant 0 : i32
    %c0_i32_1 = arith.constant 0 : i32
    return %c0_i32, %c0_i32_0 : i32, i32
  }
  func.func @transform_7(%arg0: i32, %arg1: i32) -> (i32, i32) {
    %c0_i32 = arith.constant 0 : i32
    %c0_i32_0 = arith.constant 0 : i32
    %c0_i32_1 = arith.constant 0 : i32
    return %c0_i32, %c0_i32_0 : i32, i32
  }
  func.func @transform_8(%arg0: i32, %arg1: i32) -> (i32, i32) {
    %c0_i32 = arith.constant 0 : i32
    %c0_i32_0 = arith.constant 0 : i32
    %c0_i32_1 = arith.constant 0 : i32
    return %c0_i32, %c0_i32_0 : i32, i32
  }
  func.func @transform_9(%arg0: i32, %arg1: i32) -> (i32, i32) {
    %c0_i32 = arith.constant 0 : i32
    %c0_i32_0 = arith.constant 0 : i32
    %c0_i32_1 = arith.constant 0 : i32
    return %c0_i32, %c0_i32_0 : i32, i32
  }
  func.func @transform_10(%arg0: i32, %arg1: i32) -> (i32, i32, i32) {
    %c0_i32 = arith.constant 0 : i32
    %c0_i32_0 = arith.constant 0 : i32
    return %arg1, %arg0, %c0_i32 : i32, i32, i32
  }
  func.func @transform_11(%arg0: i32, %arg1: i32) -> (i32, i32, i32) {
    %c0_i32 = arith.constant 0 : i32
    %c0_i32_0 = arith.constant 0 : i32
    %c0_i32_1 = arith.constant 0 : i32
    return %c0_i32, %arg0, %c0_i32_0 : i32, i32, i32
  }
}

</mosaic_0001>

<bundles_post_ra>
// kernel: _lambda_.2
= control target key start
LH: loop header
LB: loop body
LE: loop exit
PB: predicated region body
PF: predicated region fallthrough
CT: control target
= control target key end

     0   :  { %vm54_vm0 = vcmask 1041408   ;;  %vm41_vm1 = vcmask 31744   ;;  %v696_v38 = vmov 0   ;;  %s904_s1 = inlined_call_operand.vmem [shape: bf16[4,128], index: 1, kind: input, shape index: {}]   ;;  %s905_s0 = inlined_call_operand.vmem [shape: f32[64,4], index: 0, kind: input, shape index: {}]   ;;  %s906_s3 = inlined_call_operand.vmem [shape: bf16[128,384], index: 3, kind: input, shape index: {}]   ;;  %s907_s2 = inlined_call_operand.vmem [shape: f32[1,128], index: 2, kind: input, shape index: {}]   ;;  %s908_s4 = inlined_call_operand.vmem [shape: f32[1,384], index: 4, kind: input, shape index: {}]   ;;  %s909_s5 = inlined_call_operand.vmem [shape: bf16[64,384], index: 5, kind: output, shape index: {}]  }
   0x1   :  { %v33_v0 = vld [vmem:[%s904_s1] sm:$0x3]  ;;  %v22_v2 = vld [vmem:[%s905_s0 + $0x8] sm:$0xff]  ;;  %v23_v5 = vld [vmem:[%s905_s0 + $0x10] sm:$0xff]  ;;  %344 = vmatprep.mubr.bf16.mxu1 %v696_v38 }
   0x2   :  { %v21_v1 = vld [vmem:[%s905_s0] sm:$0xff]  ;;  %662 = vmatprep.subr.msk.bf16.mxu0 %vm54_vm0, %v33_v0  ;;  %v56_v3 = vsel %vm54_vm0, %v33_v0, 0  ;;  %v24_v6 = vld [vmem:[%s905_s0 + $0x18] sm:$0xff]  ;;  %v26_v9 = vld [vmem:[%s905_s0 + $0x28] sm:$0xff] }
   0x3   :  { %v29_v4 = vpack.c.bf16 %v22_v2, %v21_v1  ;;  %v25_v7 = vld [vmem:[%s905_s0 + $0x20] sm:$0xff]  ;;  %629 = vmatpush3.bf16.msra.mxu0 %v56_v3  ;;  %v30_v8 = vpack.c.bf16 %v24_v6, %v23_v5  ;;  %v27_v12 = vld [vmem:[%s905_s0 + $0x30] sm:$0xff]  ;;  %v28_v13 = vld [vmem:[%s905_s0 + $0x38] sm:$0xff] }
   0x4   :  { %v31_v10 = vpack.c.bf16 %v26_v9, %v25_v7  ;;  %v664_v11 = vld [vmem:[%s906_s3 + $0x4] ss:$12 sps:$4 sm:$0xff]   ;;  %v666_v14 = vld [vmem:[%s906_s3] ss:$12 sps:$4 sm:$0xff]   ;;  %v667_v15 = vld [vmem:[%s906_s3 + $0x8] ss:$12 sps:$4 sm:$0xff]   ;;  %v32_v20 = vpack.c.bf16 %v28_v13, %v27_v12 }
   0x5   :  { %630 = vmatprep.mubr.msk.bf16.mxu0 %vm41_vm1, %v29_v4  ;;  %312 = vmatprep.subr.bf16.mxu1 %v664_v11  ;;  %v668_v16 = vld [vmem:[%s906_s3 + $0x1c] ss:$12 sps:$4 sm:$0xff]   ;;  %v670_v17 = vld [vmem:[%s906_s3 + $0x18] ss:$12 sps:$4 sm:$0xff]   ;;  %v671_v18 = vld [vmem:[%s906_s3 + $0x20] ss:$12 sps:$4 sm:$0xff]   ;;  %v169_v4 = vlaneseq }
   0x6   :  { %631 = vmatmul.mubr.msk.bf16.vlgmr.msra.gmra.mrb[0].mxu0 %vm41_vm1, %v30_v8  ;;  %313 = vmatpush1.bf16.msra.mxu1 %v666_v14  ;;  %v672_v19 = vld [vmem:[%s906_s3 + $0x34] ss:$12 sps:$4 sm:$0xff]   ;;  %v675_v21 = vld [vmem:[%s906_s3 + $0x38] ss:$12 sps:$4 sm:$0xff]   ;;  %v674_v22 = vld [vmem:[%s906_s3 + $0x30] ss:$12 sps:$4 sm:$0xff]  }
   0x7   :  { %634 = vmatprep.mubr.msk.bf16.mxu0 %vm41_vm1, %v31_v10  ;;  %638 = vmatprep.subr.bf16.mxu0 %v667_v15  ;;  %v676_v23 = vld [vmem:[%s906_s3 + $0x4c] ss:$12 sps:$4 sm:$0xff]   ;;  %v679_v24 = vld [vmem:[%s906_s3 + $0x50] ss:$12 sps:$4 sm:$0xff]   ;;  %v678_v25 = vld [vmem:[%s906_s3 + $0x48] ss:$12 sps:$4 sm:$0xff]  }
   0x8   :  { %639 = vmatpush3.bf16.msra.mxu0 %v667_v15  ;;  %314 = vmatprep.subr.bf16.mxu1 %v668_v16  ;;  %v680_v26 = vld [vmem:[%s906_s3 + $0x64] ss:$12 sps:$4 sm:$0xff]   ;;  %v682_v27 = vld [vmem:[%s906_s3 + $0x60] ss:$12 sps:$4 sm:$0xff]   ;;  %v683_v28 = vld [vmem:[%s906_s3 + $0x68] ss:$12 sps:$4 sm:$0xff]  }
   0x9   :  { %640 = vmatprep.subr.bf16.mxu0 %v671_v18  ;;  %v684_v29 = vld [vmem:[%s906_s3 + $0x7c] ss:$12 sps:$4 sm:$0xff]   ;;  %v687_v30 = vld [vmem:[%s906_s3 + $0x80] ss:$12 sps:$4 sm:$0xff]   ;;  %v686_v31 = vld [vmem:[%s906_s3 + $0x78] ss:$12 sps:$4 sm:$0xff]  }
   0xa   :  { %315 = vmatpush1.bf16.msra.mxu1 %v670_v17  ;;  %v688_v32 = vld [vmem:[%s906_s3 + $0x94] ss:$12 sps:$4 sm:$0xff]   ;;  %v690_v33 = vld [vmem:[%s906_s3 + $0x90] ss:$12 sps:$4 sm:$0xff]   ;;  %v691_v34 = vld [vmem:[%s906_s3 + $0x98] ss:$12 sps:$4 sm:$0xff]  }
   0xb   :  { %316 = vmatprep.subr.bf16.mxu1 %v672_v19  ;;  %v692_v35 = vld [vmem:[%s906_s3 + $0xac] ss:$12 sps:$4 sm:$0xff]   ;;  %v694_v36 = vld [vmem:[%s906_s3 + $0xa8] ss:$12 sps:$4 sm:$0xff]   ;;  %v695_v37 = vld [vmem:[%s906_s3 + $0xb0] ss:$12 sps:$4 sm:$0xff]  }
   0xc   :  { %641 = vmatpush3.bf16.msra.mxu0 %v671_v18  ;;  %v550_v39 = vld [vmem:[%s907_s2] ss:$0 sm:$0xff]  ;;  %v170_v5 = vshrl.u32 %v169_v4, 7 }
   0xd   :  { %642 = vmatprep.subr.bf16.mxu0 %v675_v21  ;;  %v167_v7 = vld [vmem:[%s908_s4] sm:$0x7] }
   0xe   :  { %635 = vmatmul.mubr.msk.bf16.gmra.mrb[4].mxu0 %vm41_vm1, %v32_v20  ;;  %317 = vmatpush1.bf16.msra.mxu1 %v674_v22  ;;  %v171_v6 = vsub.s32 0, %v170_v5  ;;  %v175_v8 = vsub.s32 1, %v170_v5  ;;  %v179_v9 = vsub.s32 2, %v170_v5 }
   0xf   :  { %318 = vmatprep.subr.bf16.mxu1 %v676_v23 }
  0x10   :  { %643 = vmatpush3.bf16.msra.mxu0 %v675_v21  ;;  %v836_v10 = vrot.slane %v167_v7, %v171_v6  ;;  %v838_v11 = vrot.slane %v167_v7, %v175_v8  ;;  %v180_v12 = vrot.slane %v167_v7, %v179_v9 }
  0x11   :  { %644 = vmatprep.subr.bf16.mxu0 %v679_v24 }
  0x12   :  { %319 = vmatpush1.bf16.msra.mxu1 %v678_v25 }
  0x13   :  { %320 = vmatprep.subr.bf16.mxu1 %v680_v26 }
  0x14   :  { %645 = vmatpush3.bf16.msra.mxu0 %v679_v24 }
  0x15   :  { %646 = vmatprep.subr.bf16.mxu0 %v683_v28 }
  0x16   :  { %321 = vmatpush1.bf16.msra.mxu1 %v682_v27 }
  0x17   :  { %322 = vmatprep.subr.bf16.mxu1 %v684_v29 }
  0x18   :  { %647 = vmatpush3.bf16.msra.mxu0 %v683_v28 }
  0x19   :  { %648 = vmatprep.subr.bf16.mxu0 %v687_v30 }
  0x1a   :  { %323 = vmatpush1.bf16.msra.mxu1 %v686_v31 }
  0x1b   :  { %324 = vmatprep.subr.bf16.mxu1 %v688_v32 }
  0x1c   :  { %649 = vmatpush3.bf16.msra.mxu0 %v687_v30 }
  0x1d   :  { %650 = vmatprep.subr.bf16.mxu0 %v691_v34 }
  0x1e   :  { %325 = vmatpush1.bf16.msra.mxu1 %v690_v33 }
  0x1f   :  { %326 = vmatprep.subr.bf16.mxu1 %v692_v35 }
  0x20   :  { %651 = vmatpush3.bf16.msra.mxu0 %v691_v34 }
  0x21   :  { %652 = vmatprep.subr.bf16.mxu0 %v695_v37 }
  0x22   :  { %327 = vmatpush1.bf16.msra.mxu1 %v694_v36 }
  0x24   :  { %653 = vmatpush3.bf16.msra.mxu0 %v695_v37 }
  0xd9   :  { %v632_v40 = vpop.f32.mrb[0].mxu0 }
  0xda   :  { %v101_v41 = vadd.f32 %v632_v40, %v550_v39  ;;  %v92_v42 = vpop.f32.mrb[1].mxu0 }
  0xdb   :  { %v93_v43 = vadd.f32 %v550_v39, %v92_v42  ;;  %v633_v44 = vpop.f32.mrb[2].mxu0 }
  0xdc   :  { %v104_v45 = vadd.f32 %v633_v44, %v550_v39  ;;  %v95_v46 = vpop.f32.mrb[3].mxu0  ;;  %v125_v48 = vmax.f32 %v101_v41, 0.0 }
  0xdd   :  { %v96_v47 = vadd.f32 %v550_v39, %v95_v46  ;;  %v123_v50 = vmax.f32 %v93_v43, 0.0 }
  0xde   :  { %v126_v49 = vmax.f32 %v104_v45, 0.0 }
  0xdf   :  { %v124_v51 = vmax.f32 %v96_v47, 0.0 }
  0xe0   :  { %v132_v52 = vpack.c.bf16 %v126_v49, %v125_v48 }
  0xe1   :  { %v131_v53 = vpack.c.bf16 %v124_v51, %v123_v50  ;;  %v636_v54 = vpop.f32.mrb[4].mxu0 }
  0xe2   :  { %v117_v55 = vadd.f32 %v636_v54, %v550_v39  ;;  %v108_v56 = vpop.f32.mrb[5].mxu0 }
  0xe3   :  { %v109_v57 = vadd.f32 %v550_v39, %v108_v56  ;;  %345 = vmatmul.mubr.bf16.vlgmr.msra.gmra.mrb[0].mxu1 %v131_v53  ;;  %654 = vmatprep.mubr.bf16.mxu0 %v131_v53  ;;  %v637_v58 = vpop.f32.mrb[6].mxu0 }
  0xe4   :  { %v129_v59 = vmax.f32 %v117_v55, 0.0  ;;  %v120_v60 = vadd.f32 %v637_v58, %v550_v39  ;;  %655 = vmatmul.mubr.bf16.vlgmr.msra.gmra.mrb[8].mxu0 %v132_v52  ;;  %v111_v61 = vpop.f32.mrb[7].mxu0  ;;  %354 = vmatprep.mubr.bf16.mxu1 %v696_v38 }
  0xe5   :  { %v127_v62 = vmax.f32 %v109_v57, 0.0  ;;  %v112_v63 = vadd.f32 %v550_v39, %v111_v61 }
  0xe6   :  { %v130_v0 = vmax.f32 %v120_v60, 0.0 }
  0xe7   :  { %v128_v1 = vmax.f32 %v112_v63, 0.0 }
  0xe8   :  { %v134_v2 = vpack.c.bf16 %v130_v0, %v129_v59 }
  0xe9   :  { %v133_v3 = vpack.c.bf16 %v128_v1, %v127_v62 }
  0xeb   :  { %355 = vmatmul.mubr.bf16.gmra.mrb[4].mxu1 %v132_v52  ;;  %658 = vmatprep.mubr.bf16.mxu0 %v133_v3 }
  0xec   :  { %659 = vmatmul.mubr.bf16.gmra.mrb[12].mxu0 %v134_v2  ;;  %364 = vmatprep.mubr.bf16.mxu1 %v696_v38 }
  0xf3   :  { %365 = vmatmul.mubr.bf16.gmra.mrb[8].mxu1 %v133_v3 }
  0xf4   :  { %374 = vmatprep.mubr.bf16.mxu1 %v696_v38 }
  0xfb   :  { %375 = vmatmul.mubr.bf16.gmra.mrb[12].mxu1 %v134_v2 }
 0x1b6   :  { %v346_v13 = vpop.f32.mrb[0].mxu1 }
 0x1b7   :  { %v347_v14 = vadd.f32 %v346_v13, %v836_v10  ;;  %v348_v15 = vpop.f32.mrb[1].mxu1  ;;  %v656_v16 = vpop.f32.mrb[8].mxu0 }
 0x1b8   :  { %v349_v17 = vadd.f32 %v348_v15, %v838_v11  ;;  %v428_v18 = vadd.f32 %v656_v16, %v180_v12  ;;  %v350_v19 = vpop.f32.mrb[2].mxu1  ;;  %v419_v20 = vpop.f32.mrb[9].mxu0 }
 0x1b9   :  { %v351_v21 = vadd.f32 %v350_v19, %v836_v10  ;;  %v420_v22 = vadd.f32 %v419_v20, %v180_v12  ;;  %v352_v23 = vpop.f32.mrb[3].mxu1  ;;  %v657_v24 = vpop.f32.mrb[10].mxu0 }
 0x1ba   :  { %v595_v25 = vpack.c.bf16 %v349_v17, %v347_v14  ;;  %v600_v26 = vpack.c.bf16 %v428_v18, %v428_v18  ;;  %v353_v27 = vadd.f32 %v352_v23, %v838_v11  ;;  %v431_v28 = vadd.f32 %v657_v24, %v180_v12  ;;  %v422_v29 = vpop.f32.mrb[11].mxu0 }
 0x1bb   :  { %v596_v30 = vpack.c.bf16 %v420_v22, %v420_v22  ;;  %v423_v31 = vadd.f32 %v422_v29, %v180_v12 }
 0x1bc   :  { %530 = vst [vmem:[%s909_s5] sm:$0xff] %v595_v25  ;;  %535 = vst [vmem:[%s909_s5 + $0x20] sm:$0xf] %v600_v26  ;;  %v597_v32 = vpack.c.bf16 %v353_v27, %v351_v21  ;;  %v602_v33 = vpack.c.bf16 %v431_v28, %v431_v28 }
 0x1bd   :  { %531 = vst [vmem:[%s909_s5 + $0x8] sm:$0xf] %v596_v30  ;;  %v598_v34 = vpack.c.bf16 %v423_v31, %v423_v31 }
 0x1be   :  { %532 = vst [vmem:[%s909_s5 + $0xc] sm:$0xff] %v597_v32  ;;  %537 = vst [vmem:[%s909_s5 + $0x2c] sm:$0xf] %v602_v33  ;;  %v356_v35 = vpop.f32.mrb[4].mxu1 }
 0x1bf   :  { %533 = vst [vmem:[%s909_s5 + $0x14] sm:$0xf] %v598_v34  ;;  %v357_v36 = vadd.f32 %v356_v35, %v836_v10  ;;  %v358_v37 = vpop.f32.mrb[5].mxu1  ;;  %v660_v38 = vpop.f32.mrb[12].mxu0 }
 0x1c0   :  { %v359_v39 = vadd.f32 %v358_v37, %v838_v11  ;;  %v360_v40 = vpop.f32.mrb[6].mxu1  ;;  %v444_v41 = vadd.f32 %v660_v38, %v180_v12  ;;  %v435_v42 = vpop.f32.mrb[13].mxu0 }
 0x1c1   :  { %v361_v43 = vadd.f32 %v360_v40, %v836_v10  ;;  %v362_v44 = vpop.f32.mrb[7].mxu1  ;;  %v436_v45 = vadd.f32 %v435_v42, %v180_v12  ;;  %v661_v46 = vpop.f32.mrb[14].mxu0 }
 0x1c2   :  { %v599_v47 = vpack.c.bf16 %v359_v39, %v357_v36  ;;  %v608_v48 = vpack.c.bf16 %v444_v41, %v444_v41  ;;  %v363_v49 = vadd.f32 %v362_v44, %v838_v11  ;;  %v447_v50 = vadd.f32 %v661_v46, %v180_v12  ;;  %v438_v51 = vpop.f32.mrb[15].mxu0 }
 0x1c3   :  { %v604_v52 = vpack.c.bf16 %v436_v45, %v436_v45  ;;  %v439_v53 = vadd.f32 %v438_v51, %v180_v12 }
 0x1c4   :  { %534 = vst [vmem:[%s909_s5 + $0x18] sm:$0xff] %v599_v47  ;;  %543 = vst [vmem:[%s909_s5 + $0x50] sm:$0xf] %v608_v48  ;;  %v601_v54 = vpack.c.bf16 %v363_v49, %v361_v43  ;;  %v610_v55 = vpack.c.bf16 %v447_v50, %v447_v50 }
 0x1c5   :  { %539 = vst [vmem:[%s909_s5 + $0x38] sm:$0xf] %v604_v52  ;;  %v606_v56 = vpack.c.bf16 %v439_v53, %v439_v53 }
 0x1c6   :  { %536 = vst [vmem:[%s909_s5 + $0x24] sm:$0xff] %v601_v54  ;;  %545 = vst [vmem:[%s909_s5 + $0x5c] sm:$0xf] %v610_v55  ;;  %v366_v57 = vpop.f32.mrb[8].mxu1 }
 0x1c7   :  { %541 = vst [vmem:[%s909_s5 + $0x44] sm:$0xf] %v606_v56  ;;  %v367_v58 = vadd.f32 %v366_v57, %v836_v10  ;;  %v368_v59 = vpop.f32.mrb[9].mxu1 }
 0x1c8   :  { %v369_v60 = vadd.f32 %v368_v59, %v838_v11  ;;  %v370_v61 = vpop.f32.mrb[10].mxu1 }
 0x1c9   :  { %v371_v62 = vadd.f32 %v370_v61, %v836_v10  ;;  %v372_v63 = vpop.f32.mrb[11].mxu1 }
 0x1ca   :  { %v603_v0 = vpack.c.bf16 %v369_v60, %v367_v58  ;;  %v373_v1 = vadd.f32 %v372_v63, %v838_v11 }
 0x1cc   :  { %538 = vst [vmem:[%s909_s5 + $0x30] sm:$0xff] %v603_v0  ;;  %v605_v2 = vpack.c.bf16 %v373_v1, %v371_v62 }
 0x1ce   :  { %540 = vst [vmem:[%s909_s5 + $0x3c] sm:$0xff] %v605_v2  ;;  %v376_v3 = vpop.f32.mrb[12].mxu1 }
 0x1cf   :  { %v377_v4 = vadd.f32 %v376_v3, %v836_v10  ;;  %v378_v5 = vpop.f32.mrb[13].mxu1 }
 0x1d0   :  { %v379_v6 = vadd.f32 %v378_v5, %v838_v11  ;;  %v380_v7 = vpop.f32.mrb[14].mxu1 }
 0x1d1   :  { %v381_v8 = vadd.f32 %v380_v7, %v836_v10  ;;  %v382_v9 = vpop.f32.mrb[15].mxu1 }
 0x1d2   :  { %v607_v12 = vpack.c.bf16 %v379_v6, %v377_v4  ;;  %v383_v13 = vadd.f32 %v382_v9, %v838_v11 }
 0x1d4   :  { %542 = vst [vmem:[%s909_s5 + $0x48] sm:$0xff] %v607_v12  ;;  %v609_v14 = vpack.c.bf16 %v383_v13, %v381_v8 }
 0x1d6   :  { %544 = vst [vmem:[%s909_s5 + $0x54] sm:$0xff] %v609_v14 }

// kernel: _lambda_.3
= control target key start
LH: loop header
LB: loop body
LE: loop exit
PB: predicated region body
PF: predicated region fallthrough
CT: control target
= control target key end

     0   :  { %v12043_v1 = vmov 0.0   ;;  %v12040_v2 = vmov 0   ;;  %vm9396_vm0 = vmmov 0   ;;  %s12028_s2 = inlined_call_operand.vmem [shape: bf16[2,128,384], index: 2, kind: input, shape index: {}]   ;;  %s12029_s1 = inlined_call_operand.vmem [shape: f32[2,8,128], index: 1, kind: input, shape index: {}]   ;;  %s12030_s4 = inlined_call_operand.vmem [shape: bf16[1,128,384], index: 4, kind: input, shape index: {}]   ;;  %s12031_s3 = inlined_call_operand.vmem [shape: f32[2,1,384], index: 3, kind: input, shape index: {}]   ;;  %s12032_s0 = inlined_call_operand.vmem [shape: bf16[8,8,384], index: 0, kind: input, shape index: {}]   ;;  %s12033_s5 = inlined_call_operand.vmem [shape: f32[1,1,384], index: 5, kind: input, shape index: {}]   ;;  %s12034_s6 = inlined_call_operand.vmem [shape: bf16[128,128], index: 6, kind: input, shape index: {}]   ;;  %s12035_s11 = inlined_call_operand.vmem [shape: f32[2,8,128], index: 11, kind: output, shape index: {1}]   ;;  %s12036_s8 = inlined_call_operand.vmem [shape: bf16[128,128], index: 8, kind: input, shape index: {}]   ;;  %s12037_s7 = inlined_call_operand.vmem [shape: f32[1,128], index: 7, kind: input, shape index: {}]   ;;  %s12038_s9 = inlined_call_operand.vmem [shape: f32[1,128], index: 9, kind: input, shape index: {}]   ;;  %s12039_s10 = inlined_call_operand.vmem [shape: f32[8,8,128], index: 10, kind: output, shape index: {0}]  }
   0x1   :  { %v8713_v0 = vld [vmem:[%s12028_s2 + $0x4] ss:$12 sps:$4 sm:$0xff]   ;;  %8118 = vmatprep.subr.bf16.mxu1 %v12043_v1  ;;  %259 = vmatprep.mubr.bf16.mxu0 %v12040_v2  ;;  %v8715_v3 = vld [vmem:[%s12028_s2] ss:$12 sps:$4 sm:$0xff]   ;;  %v8716_v4 = vld [vmem:[%s12028_s2 + $0x1c] ss:$12 sps:$4 sm:$0xff]  }
   0x2   :  { %8134 = vmatprep.mubr.msk.bf16.mxu1 %vm9396_vm0, %v12043_v1  ;;  %227 = vmatprep.subr.bf16.mxu0 %v8713_v0  ;;  %v8718_v5 = vld [vmem:[%s12028_s2 + $0x18] ss:$12 sps:$4 sm:$0xff]   ;;  %v8719_v6 = vld [vmem:[%s12028_s2 + $0x34] ss:$12 sps:$4 sm:$0xff]   ;;  %v8721_v7 = vld [vmem:[%s12028_s2 + $0x30] ss:$12 sps:$4 sm:$0xff]  }
   0x3   :  { %228 = vmatpush1.bf16.msra.mxu0 %v8715_v3  ;;  %v8722_v8 = vld [vmem:[%s12028_s2 + $0x4c] ss:$12 sps:$4 sm:$0xff]   ;;  %v8734_v9 = vld [vmem:[%s12028_s2 + $0x8] ss:$12 sps:$4 sm:$0xff]   ;;  %v8725_v11 = vld [vmem:[%s12028_s2 + $0x64] ss:$12 sps:$4 sm:$0xff]  }
   0x4   :  { %229 = vmatprep.subr.bf16.mxu0 %v8716_v4  ;;  %v8724_v10 = vld [vmem:[%s12028_s2 + $0x48] ss:$12 sps:$4 sm:$0xff]   ;;  %8119 = vmatpush3.bf16.msra.mxu1 %v8734_v9  ;;  %v8738_v12 = vld [vmem:[%s12028_s2 + $0x20] ss:$12 sps:$4 sm:$0xff]   ;;  %v8739_v15 = vld [vmem:[%s12028_s2 + $0x38] ss:$12 sps:$4 sm:$0xff]  }
   0x5   :  { %8120 = vmatprep.subr.bf16.mxu1 %v12043_v1  ;;  %v8727_v13 = vld [vmem:[%s12028_s2 + $0x60] ss:$12 sps:$4 sm:$0xff]   ;;  %v8728_v14 = vld [vmem:[%s12028_s2 + $0x7c] ss:$12 sps:$4 sm:$0xff]   ;;  %v8730_v16 = vld [vmem:[%s12028_s2 + $0x78] ss:$12 sps:$4 sm:$0xff]  }
   0x6   :  { %v8731_v17 = vld [vmem:[%s12028_s2 + $0x94] ss:$12 sps:$4 sm:$0xff]   ;;  %v8740_v18 = vld [vmem:[%s12028_s2 + $0x50] ss:$12 sps:$4 sm:$0xff]   ;;  %v8735_v20 = vld [vmem:[%s12028_s2 + $0xac] ss:$12 sps:$4 sm:$0xff]  }
   0x7   :  { %230 = vmatpush1.bf16.msra.mxu0 %v8718_v5  ;;  %v8733_v19 = vld [vmem:[%s12028_s2 + $0x90] ss:$12 sps:$4 sm:$0xff]   ;;  %v8741_v21 = vld [vmem:[%s12028_s2 + $0x68] ss:$12 sps:$4 sm:$0xff]   ;;  %v42_v23 = vld [vmem:[%s12029_s1] sm:$0xff] }
   0x8   :  { %231 = vmatprep.subr.bf16.mxu0 %v8719_v6  ;;  %8121 = vmatpush3.bf16.msra.mxu1 %v8738_v12  ;;  %v8737_v22 = vld [vmem:[%s12028_s2 + $0xa8] ss:$12 sps:$4 sm:$0xff]   ;;  %v8742_v24 = vld [vmem:[%s12028_s2 + $0x80] ss:$12 sps:$4 sm:$0xff]   ;;  %v8747_v25 = vld [vmem:[%s12028_s2 + $0xc4] ss:$12 sps:$4 sm:$0xff]   ;;  %v49_v27 = vpack.c.bf16 %v42_v23, %v42_v23 }
   0x9   :  { %8122 = vmatprep.subr.bf16.mxu1 %v12043_v1  ;;  %v8745_v26 = vld [vmem:[%s12028_s2 + $0xc0] ss:$12 sps:$4 sm:$0xff]   ;;  %v8743_v28 = vld [vmem:[%s12028_s2 + $0x98] ss:$12 sps:$4 sm:$0xff]   ;;  %v8751_v29 = vld [vmem:[%s12028_s2 + $0xdc] ss:$12 sps:$4 sm:$0xff]  }
   0xa   :  { %v8749_v30 = vld [vmem:[%s12028_s2 + $0xd8] ss:$12 sps:$4 sm:$0xff]   ;;  %v8744_v31 = vld [vmem:[%s12028_s2 + $0xb0] ss:$12 sps:$4 sm:$0xff]   ;;  %v8755_v32 = vld [vmem:[%s12028_s2 + $0xf4] ss:$12 sps:$4 sm:$0xff]  }
   0xb   :  { %232 = vmatpush1.bf16.msra.mxu0 %v8721_v7  ;;  %v8753_v33 = vld [vmem:[%s12028_s2 + $0xf0] ss:$12 sps:$4 sm:$0xff]   ;;  %v8748_v34 = vld [vmem:[%s12028_s2 + $0xc8] ss:$12 sps:$4 sm:$0xff]   ;;  %v8759_v35 = vld [vmem:[%s12028_s2 + $0x10c] ss:$12 sps:$4 sm:$0xff]  }
   0xc   :  { %233 = vmatprep.subr.bf16.mxu0 %v8722_v8  ;;  %8123 = vmatpush3.bf16.msra.mxu1 %v8739_v15  ;;  %v8757_v36 = vld [vmem:[%s12028_s2 + $0x108] ss:$12 sps:$4 sm:$0xff]   ;;  %v8752_v37 = vld [vmem:[%s12028_s2 + $0xe0] ss:$12 sps:$4 sm:$0xff]   ;;  %v8756_v38 = vld [vmem:[%s12028_s2 + $0xf8] ss:$12 sps:$4 sm:$0xff]  }
   0xd   :  { %8124 = vmatprep.subr.bf16.mxu1 %v12043_v1  ;;  %v8760_v39 = vld [vmem:[%s12028_s2 + $0x110] ss:$12 sps:$4 sm:$0xff]   ;;  %v9595_v41 = vld [vmem:[%s12028_s2 + $0x120] ss:$12 sps:$4 sm:$0xff]   ;;  %v8764_v42 = vld [vmem:[%s12028_s2 + $0x128] ss:$12 sps:$4 sm:$0xff]  }
   0xe   :  { %v9589_v40 = vld [vmem:[%s12028_s2 + $0x124] ss:$12 sps:$4 sm:$0xff]   ;;  %v9605_v43 = vld [vmem:[%s12028_s2 + $0x13c] ss:$12 sps:$4 sm:$0xff]   ;;  %v8768_v45 = vld [vmem:[%s12028_s2 + $0x140] ss:$12 sps:$4 sm:$0xff]  }
   0xf   :  { %234 = vmatpush1.bf16.msra.mxu0 %v8724_v10  ;;  %v9611_v44 = vld [vmem:[%s12028_s2 + $0x138] ss:$12 sps:$4 sm:$0xff]   ;;  %v9621_v46 = vld [vmem:[%s12028_s2 + $0x154] ss:$12 sps:$4 sm:$0xff]   ;;  %v9627_v47 = vld [vmem:[%s12028_s2 + $0x150] ss:$12 sps:$4 sm:$0xff]  }
  0x10   :  { %235 = vmatprep.subr.bf16.mxu0 %v8725_v11  ;;  %8125 = vmatpush3.bf16.msra.mxu1 %v8740_v18  ;;  %v8772_v48 = vld [vmem:[%s12028_s2 + $0x158] ss:$12 sps:$4 sm:$0xff]   ;;  %v9637_v49 = vld [vmem:[%s12029_s1 + $0x8] sm:$0xff]  ;;  %v8776_v52 = vld [vmem:[%s12028_s2 + $0x170] ss:$12 sps:$4 sm:$0xff]  }
  0x11   :  { %8126 = vmatprep.subr.bf16.mxu1 %v12043_v1  ;;  %v9642_v50 = vld [vmem:[%s12028_s2 + $0x16c] ss:$12 sps:$4 sm:$0xff]   ;;  %v9648_v51 = vld [vmem:[%s12028_s2 + $0x168] ss:$12 sps:$4 sm:$0xff]   ;;  %v9658_v53 = vld [vmem:[%s12030_s4 + $0x4] ss:$12 sps:$4 sm:$0xff]   ;;  %v308_v55 = vpack.c.bf16 %v9637_v49, %v9637_v49 }
  0x12   :  { %v9664_v54 = vld [vmem:[%s12030_s4] ss:$12 sps:$4 sm:$0xff]   ;;  %v8780_v56 = vld [vmem:[%s12030_s4 + $0x8] ss:$12 sps:$4 sm:$0xff]   ;;  %v9676_v57 = vld [vmem:[%s12030_s4 + $0x18] ss:$12 sps:$4 sm:$0xff]  }
  0x13   :  { %236 = vmatpush1.bf16.msra.mxu0 %v8727_v13  ;;  %v9681_v58 = vld [vmem:[%s12030_s4 + $0x1c] ss:$12 sps:$4 sm:$0xff]   ;;  %v8784_v59 = vld [vmem:[%s12030_s4 + $0x20] ss:$12 sps:$4 sm:$0xff]   ;;  %v8788_v62 = vld [vmem:[%s12030_s4 + $0x38] ss:$12 sps:$4 sm:$0xff]  }
  0x14   :  { %237 = vmatprep.subr.bf16.mxu0 %v8728_v14  ;;  %8127 = vmatpush3.bf16.msra.mxu1 %v8741_v21  ;;  %v9695_v60 = vld [vmem:[%s12030_s4 + $0x34] ss:$12 sps:$4 sm:$0xff]   ;;  %v9700_v61 = vld [vmem:[%s12030_s4 + $0x30] ss:$12 sps:$4 sm:$0xff]   ;;  %v9711_v63 = vld [vmem:[%s12030_s4 + $0x4c] ss:$12 sps:$4 sm:$0xff]  }
  0x15   :  { %8128 = vmatprep.subr.bf16.mxu1 %v12043_v1  ;;  %v9716_v0 = vld [vmem:[%s12030_s4 + $0x48] ss:$12 sps:$4 sm:$0xff]   ;;  %v8792_v3 = vld [vmem:[%s12030_s4 + $0x50] ss:$12 sps:$4 sm:$0xff]   ;;  %v9732_v5 = vld [vmem:[%s12030_s4 + $0x60] ss:$12 sps:$4 sm:$0xff]  }
  0x16   :  { %v9727_v4 = vld [vmem:[%s12030_s4 + $0x64] ss:$12 sps:$4 sm:$0xff]   ;;  %v8796_v6 = vld [vmem:[%s12030_s4 + $0x68] ss:$12 sps:$4 sm:$0xff]   ;;  %v8800_v9 = vld [vmem:[%s12030_s4 + $0x80] ss:$12 sps:$4 sm:$0xff]  }
  0x17   :  { %238 = vmatpush1.bf16.msra.mxu0 %v8730_v16  ;;  %v9742_v7 = vld [vmem:[%s12030_s4 + $0x7c] ss:$12 sps:$4 sm:$0xff]   ;;  %v9748_v8 = vld [vmem:[%s12030_s4 + $0x78] ss:$12 sps:$4 sm:$0xff]   ;;  %v9756_v10 = vld [vmem:[%s12030_s4 + $0x94] ss:$12 sps:$4 sm:$0xff]  }
  0x18   :  { %239 = vmatprep.subr.bf16.mxu0 %v8731_v17  ;;  %8129 = vmatpush3.bf16.msra.mxu1 %v8742_v24  ;;  %v9763_v11 = vld [vmem:[%s12030_s4 + $0x90] ss:$12 sps:$4 sm:$0xff]   ;;  %v8804_v12 = vld [vmem:[%s12030_s4 + $0x98] ss:$12 sps:$4 sm:$0xff]   ;;  %v9779_v14 = vld [vmem:[%s12030_s4 + $0xa8] ss:$12 sps:$4 sm:$0xff]   ;;  %v84_v17 = vlaneseq }
  0x19   :  { %8130 = vmatprep.subr.bf16.mxu1 %v12043_v1  ;;  %v9771_v13 = vld [vmem:[%s12030_s4 + $0xac] ss:$12 sps:$4 sm:$0xff]   ;;  %v8808_v15 = vld [vmem:[%s12030_s4 + $0xb0] ss:$12 sps:$4 sm:$0xff]  }
  0x1a   :  { %v9369_v16 = vld [vmem:[%s12028_s2 + $0x4] ss:$12 sps:$4 sm:$0xff]   ;;  %v85_v18 = vshrl.u32 %v84_v17, 7 }
  0x1b   :  { %240 = vmatpush1.bf16.msra.mxu0 %v8733_v19 }
  0x1c   :  { %241 = vmatprep.subr.bf16.mxu0 %v8735_v20  ;;  %8131 = vmatpush3.bf16.msra.mxu1 %v8743_v28  ;;  %v9792_v19 = vsub.s32 0, %v85_v18  ;;  %v82_v20 = vld [vmem:[%s12031_s3] sm:$0x7]  ;;  %v9797_v21 = vsub.s32 1, %v85_v18 }
  0x1d   :  { %8132 = vmatprep.subr.bf16.mxu1 %v12043_v1 }
  0x1e   :  { %12050 = vst [vmem:[#allocation3_spill] sm:$0xff] %v9797_v21  ;;  %v87_v23 = vrot.slane %v82_v20, %v9792_v19  ;;  %v91_v24 = vrot.slane %v82_v20, %v9797_v21 }
  0x1f   :  { %242 = vmatpush1.bf16.msra.mxu0 %v8737_v22  ;;  %v569_v22 = vld [vmem:[%s12032_s0] sm:$0xff] }
  0x20   :  { %488 = vmatprep.subr.bf16.mxu0 %v8747_v25  ;;  %8133 = vmatpush3.bf16.msra.mxu1 %v8744_v31  ;;  %v571_v25 = vunpack.c.l.bf16 %v569_v22 }
  0x21   :  { %8138 = vmatprep.subr.bf16.mxu1 %v12043_v1 }
  0x22   :  { %260 = vmatmul.mubr.bf16.vlgmr.msra.gmra.mrb[0].mxu0 %v49_v27 }
  0x23   :  { %489 = vmatpush1.bf16.msra.mxu0 %v8745_v26  ;;  %520 = vmatprep.mubr.bf16.mxu0 %v12040_v2 }
  0x24   :  { %490 = vmatprep.subr.bf16.mxu0 %v8751_v29  ;;  %8135 = vmatmul.mubr.bf16.vlgmr.msra.gmra.mrb[0].mxu1 %v49_v27 }
  0x25   :  { %8139 = vmatpush3.bf16.msra.mxu1 %v8748_v34  ;;  %8154 = vmatprep.mubr.msk.bf16.mxu1 %vm9396_vm0, %v12043_v1 }
  0x26   :  { %8140 = vmatprep.subr.bf16.mxu1 %v12043_v1 }
  0x27   :  { %491 = vmatpush1.bf16.msra.mxu0 %v8749_v30  ;;  %v572_v30 = vunpack.c.h.bf16 %v569_v22 }
  0x28   :  { %492 = vmatprep.subr.bf16.mxu0 %v8755_v32 }
  0x29   :  { %8141 = vmatpush3.bf16.msra.mxu1 %v8752_v37 }
  0x2a   :  { %8142 = vmatprep.subr.bf16.mxu1 %v12043_v1 }
  0x2b   :  { %493 = vmatpush1.bf16.msra.mxu0 %v8753_v33 }
  0x2c   :  { %494 = vmatprep.subr.bf16.mxu0 %v8759_v35 }
  0x2d   :  { %8143 = vmatpush3.bf16.msra.mxu1 %v8756_v38 }
  0x2e   :  { %8144 = vmatprep.subr.bf16.mxu1 %v12043_v1 }
  0x2f   :  { %495 = vmatpush1.bf16.msra.mxu0 %v8757_v36 }
  0x30   :  { %496 = vmatprep.subr.bf16.mxu0 %v9589_v40 }
  0x31   :  { %8145 = vmatpush3.bf16.msra.mxu1 %v8760_v39 }
  0x32   :  { %8146 = vmatprep.subr.bf16.mxu1 %v12043_v1 }
  0x33   :  { %497 = vmatpush1.bf16.msra.mxu0 %v9595_v41 }
  0x34   :  { %498 = vmatprep.subr.bf16.mxu0 %v9605_v43 }
  0x35   :  { %8147 = vmatpush3.bf16.msra.mxu1 %v8764_v42 }
  0x36   :  { %8148 = vmatprep.subr.bf16.mxu1 %v12043_v1 }
  0x37   :  { %499 = vmatpush1.bf16.msra.mxu0 %v9611_v44 }
  0x38   :  { %500 = vmatprep.subr.bf16.mxu0 %v9621_v46 }
  0x39   :  { %8149 = vmatpush3.bf16.msra.mxu1 %v8768_v45 }
  0x3a   :  { %8150 = vmatprep.subr.bf16.mxu1 %v12043_v1 }
  0x3b   :  { %501 = vmatpush1.bf16.msra.mxu0 %v9627_v47 }
  0x3c   :  { %502 = vmatprep.subr.bf16.mxu0 %v9642_v50 }
  0x3d   :  { %8151 = vmatpush3.bf16.msra.mxu1 %v8772_v48 }
  0x3e   :  { %8152 = vmatprep.subr.bf16.mxu1 %v12043_v1 }
  0x3f   :  { %503 = vmatpush1.bf16.msra.mxu0 %v9648_v51 }
  0x40   :  { %773 = vmatprep.subr.bf16.mxu0 %v9658_v53 }
  0x41   :  { %8153 = vmatpush3.bf16.msra.mxu1 %v8776_v52  ;;  %v9804_v52 = vsub.s32 2, %v85_v18 }
  0x42   :  { %8158 = vmatprep.subr.bf16.mxu1 %v12043_v1  ;;  %521 = vmatmul.mubr.bf16.vlgmr.msra.gmra.mrb[4].mxu0 %v308_v55 }
  0x43   :  { %774 = vmatpush1.bf16.msra.mxu0 %v9664_v54  ;;  %805 = vmatprep.mubr.bf16.mxu0 %v12040_v2 }
  0x44   :  { %8155 = vmatmul.mubr.bf16.vlgmr.msra.gmra.mrb[4].mxu1 %v308_v55  ;;  %775 = vmatprep.subr.bf16.mxu0 %v9681_v58  ;;  %v95_v55 = vrot.slane %v82_v20, %v9804_v52  ;;  %v9370_v20 = vld [vmem:[%s12029_s1] sm:$0xff] }
  0x45   :  { %8159 = vmatpush3.bf16.msra.mxu1 %v8780_v56  ;;  %8174 = vmatprep.mubr.msk.bf16.mxu1 %vm9396_vm0, %v12043_v1 }
  0x46   :  { %8160 = vmatprep.subr.bf16.mxu1 %v12043_v1 }
  0x47   :  { %776 = vmatpush1.bf16.msra.mxu0 %v9676_v57 }
  0x48   :  { %777 = vmatprep.subr.bf16.mxu0 %v9695_v60 }
  0x49   :  { %8161 = vmatpush3.bf16.msra.mxu1 %v8784_v59  ;;  %v570_v59 = vld [vmem:[%s12032_s0 + $0x8] sm:$0xf] }
  0x4a   :  { %8162 = vmatprep.subr.bf16.mxu1 %v12043_v1 }
  0x4b   :  { %778 = vmatpush1.bf16.msra.mxu0 %v9700_v61 }
  0x4c   :  { %779 = vmatprep.subr.bf16.mxu0 %v9711_v63 }
  0x4d   :  { %8163 = vmatpush3.bf16.msra.mxu1 %v8788_v62 }
  0x4e   :  { %8164 = vmatprep.subr.bf16.mxu1 %v12043_v1 }
  0x4f   :  { %780 = vmatpush1.bf16.msra.mxu0 %v9716_v0 }
  0x50   :  { %781 = vmatprep.subr.bf16.mxu0 %v9727_v4 }
  0x51   :  { %8165 = vmatpush3.bf16.msra.mxu1 %v8792_v3 }
  0x52   :  { %8166 = vmatprep.subr.bf16.mxu1 %v12043_v1 }
  0x53   :  { %782 = vmatpush1.bf16.msra.mxu0 %v9732_v5 }
  0x54   :  { %783 = vmatprep.subr.bf16.mxu0 %v9742_v7 }
  0x55   :  { %8167 = vmatpush3.bf16.msra.mxu1 %v8796_v6  ;;  %v573_v6 = vunpack.c.l.bf16 %v570_v59  ;;  %v9383_v59 = vld [vmem:[%s12028_s2 + $0x90] ss:$12 sps:$4 sm:$0xff]  }
  0x56   :  { %8168 = vmatprep.subr.bf16.mxu1 %v12043_v1 }
  0x57   :  { %784 = vmatpush1.bf16.msra.mxu0 %v9748_v8 }
  0x58   :  { %785 = vmatprep.subr.bf16.mxu0 %v9756_v10 }
  0x59   :  { %8169 = vmatpush3.bf16.msra.mxu1 %v8800_v9 }
  0x5a   :  { %8170 = vmatprep.subr.bf16.mxu1 %v12043_v1 }
  0x5b   :  { %786 = vmatpush1.bf16.msra.mxu0 %v9763_v11 }
  0x5c   :  { %787 = vmatprep.subr.bf16.mxu0 %v9771_v13 }
  0x5d   :  { %8171 = vmatpush3.bf16.msra.mxu1 %v8804_v12 }
  0x5e   :  { %8172 = vmatprep.subr.bf16.mxu1 %v12043_v1 }
  0x5f   :  { %788 = vmatpush1.bf16.msra.mxu0 %v9779_v14 }
  0x60   :  { %1053 = vmatprep.subr.bf16.mxu0 %v9369_v16 }
  0x61   :  { %8173 = vmatpush3.bf16.msra.mxu1 %v8808_v15 }
  0x62   :  { %8178 = vmatprep.subr.bf16.mxu1 %v12043_v1 }
  0xf5   :  { %v261_v26 = vpop.f32.mrb[0].mxu0 }
  0xf6   :  { %v262_v27 = vadd.f32 %v261_v26, %v87_v23  ;;  %v263_v28 = vpop.f32.mrb[1].mxu0 }
  0xf7   :  { %v264_v29 = vadd.f32 %v263_v28, %v91_v24  ;;  %v265_v31 = vpop.f32.mrb[2].mxu0  ;;  %v302_v36 = vpop.f32.mrb[0].mxu1  ;;  %v8810_v28 = vld [vmem:[%s12028_s2 + $0x20] ss:$12 sps:$4 sm:$0xff]  }
  0xf8   :  { %v574_v32 = vadd.f32 %v571_v25, %v262_v27  ;;  %v266_v33 = vpop.f32.mrb[3].mxu0  ;;  %v8136_v38 = vpop.f32.mrb[1].mxu1  ;;  %v303_v3 = vadd.f32 %v302_v36, %v95_v55  ;;  %v8809_v25 = vld [vmem:[%s12028_s2 + $0x8] ss:$12 sps:$4 sm:$0xff]   ;;  %v9371_v27 = vld [vmem:[%s12028_s2] ss:$12 sps:$4 sm:$0xff]  }
  0xf9   :  { %v581_v35 = vadd.f32 %v572_v30, %v264_v29  ;;  %v305_v39 = vpop.f32.mrb[2].mxu1  ;;  %v9372_v29 = vld [vmem:[%s12028_s2 + $0x1c] ss:$12 sps:$4 sm:$0xff]   ;;  %v9373_v30 = vld [vmem:[%s12028_s2 + $0x18] ss:$12 sps:$4 sm:$0xff]  }
  0xfa   :  { %v7054_v34 = vmul.f32 -1.442695, %v574_v32  ;;  %v8137_v42 = vpop.f32.mrb[3].mxu1  ;;  %v8811_v31 = vld [vmem:[%s12028_s2 + $0x38] ss:$12 sps:$4 sm:$0xff]  }
  0xfb   :  { %v7055_v37 = vmul.f32 -1.442695, %v581_v35  ;;  %v9374_v32 = vld [vmem:[%s12028_s2 + $0x34] ss:$12 sps:$4 sm:$0xff]   ;;  %v9375_v33 = vld [vmem:[%s12028_s2 + $0x30] ss:$12 sps:$4 sm:$0xff]  }
  0xfc   :  { %9209 = vpow2.f32 %v7054_v34  ;;  %v8812_v34 = vld [vmem:[%s12028_s2 + $0x50] ss:$12 sps:$4 sm:$0xff]   ;;  %v9376_v35 = vld [vmem:[%s12028_s2 + $0x4c] ss:$12 sps:$4 sm:$0xff]   ;;  %v9377_v36 = vld [vmem:[%s12028_s2 + $0x48] ss:$12 sps:$4 sm:$0xff]  }
  0xfd   :  { %9211 = vpow2.f32 %v7055_v37  ;;  %v8813_v37 = vld [vmem:[%s12028_s2 + $0x68] ss:$12 sps:$4 sm:$0xff]   ;;  %v9378_v38 = vld [vmem:[%s12028_s2 + $0x64] ss:$12 sps:$4 sm:$0xff]   ;;  %v9379_v39 = vld [vmem:[%s12028_s2 + $0x60] ss:$12 sps:$4 sm:$0xff]  }
  0xfe   :  { %v8814_v42 = vld [vmem:[%s12028_s2 + $0x80] ss:$12 sps:$4 sm:$0xff]   ;;  %v8815_v55 = vld [vmem:[%s12028_s2 + $0x98] ss:$12 sps:$4 sm:$0xff]  }
 0x106   :  { %v9210_v45 = vpop.eup %9209 }
 0x107   :  { %v578_v48 = vadd.f32 1.0, %v9210_v45  ;;  %v9212_v56 = vpop.eup %9211  ;;  %v9380_v45 = vld [vmem:[%s12028_s2 + $0x7c] ss:$12 sps:$4 sm:$0xff]  }
 0x108   :  { %v585_v62 = vadd.f32 1.0, %v9212_v56  ;;  %v9382_v56 = vld [vmem:[%s12028_s2 + $0x94] ss:$12 sps:$4 sm:$0xff]  }
 0x109   :  { %9213 = vrcp.f32 %v578_v48  ;;  %v9381_v48 = vld [vmem:[%s12028_s2 + $0x78] ss:$12 sps:$4 sm:$0xff]  }
 0x10a   :  { %9215 = vrcp.f32 %v585_v62  ;;  %v8816_v62 = vld [vmem:[%s12028_s2 + $0xb0] ss:$12 sps:$4 sm:$0xff]  }
 0x113   :  { %v9214_v9 = vpop.eup %9213 }
 0x114   :  { %v588_v12 = vmul.f32 %v9214_v9, %v303_v3  ;;  %v9216_v16 = vpop.eup %9215  ;;  %v9384_v3 = vld [vmem:[%s12028_s2 + $0xac] ss:$12 sps:$4 sm:$0xff]   ;;  %v9386_v9 = vld [vmem:[%s12028_s2 + $0xc4] ss:$12 sps:$4 sm:$0xff]  }
 0x115   :  { %v591_v17 = vsub.f32 1.0, %v9216_v16  ;;  %v593_v23 = vmul.f32 %v9370_v20, %v9216_v16  ;;  %v9389_v16 = vld [vmem:[%s12028_s2 + $0xd8] ss:$12 sps:$4 sm:$0xff]   ;;  %v9393_v20 = vld [vmem:[%s12028_s2 + $0x108] ss:$12 sps:$4 sm:$0xff]  }
 0x116   :  { %v589_v15 = vadd.f32 %v588_v12, %v573_v6  ;;  %v9385_v6 = vld [vmem:[%s12028_s2 + $0xa8] ss:$12 sps:$4 sm:$0xff]   ;;  %v9387_v12 = vld [vmem:[%s12028_s2 + $0xc0] ss:$12 sps:$4 sm:$0xff]  }
 0x118   :  { %9217 = vtanh.f32 %v589_v15  ;;  %v9388_v15 = vld [vmem:[%s12028_s2 + $0xdc] ss:$12 sps:$4 sm:$0xff]  }
 0x122   :  { %v9218_v18 = vpop.eup %9217 }
 0x123   :  { %v592_v22 = vmul.f32 %v9218_v18, %v591_v17  ;;  %v9390_v17 = vld [vmem:[%s12028_s2 + $0xf4] ss:$12 sps:$4 sm:$0xff]   ;;  %v9391_v18 = vld [vmem:[%s12028_s2 + $0xf0] ss:$12 sps:$4 sm:$0xff]  }
 0x125   :  { %v9813_v24 = vadd.f32 %v593_v23, %v592_v22  ;;  %v9392_v22 = vld [vmem:[%s12028_s2 + $0x10c] ss:$12 sps:$4 sm:$0xff]   ;;  %v9927_v23 = vpop.f32.mrb[4].mxu1 }
 0x127   :  { %v595_v26 = vpack.c.bf16 %v9813_v24, %v9813_v24 }
 0x129   :  { %806 = vmatmul.mubr.bf16.vlgmr.msra.gmra.mrb[4].mxu0 %v595_v26  ;;  %8175 = vmatmul.mubr.bf16.vlgmr.msra.gmra.mrb[8].mxu1 %v595_v26 }
 0x12a   :  { %1054 = vmatpush1.bf16.msra.mxu0 %v9371_v27  ;;  %8179 = vmatpush3.bf16.msra.mxu1 %v8809_v25  ;;  %v8156_v25 = vpop.f32.mrb[5].mxu1 }
 0x12b   :  { %1055 = vmatprep.subr.bf16.mxu0 %v9372_v29  ;;  %8180 = vmatprep.subr.bf16.mxu1 %v12043_v1 }
 0x12c   :  { %1085 = vmatprep.mubr.bf16.mxu0 %v12040_v2  ;;  %8194 = vmatprep.mubr.msk.bf16.mxu1 %vm9396_vm0, %v12043_v1 }
 0x12e   :  { %1056 = vmatpush1.bf16.msra.mxu0 %v9373_v30  ;;  %8181 = vmatpush3.bf16.msra.mxu1 %v8810_v28  ;;  %v7029_v28 = vld [vmem:[%s12031_s3 + $0x3] sm:$0x7] }
 0x12f   :  { %1057 = vmatprep.subr.bf16.mxu0 %v9374_v32  ;;  %8182 = vmatprep.subr.bf16.mxu1 %v12043_v1  ;;  %v348_v29 = vrot.slane %v7029_v28, %v9792_v19 }
 0x132   :  { %1058 = vmatpush1.bf16.msra.mxu0 %v9375_v33  ;;  %8183 = vmatpush3.bf16.msra.mxu1 %v8811_v31  ;;  %v352_v31 = vrot.slane %v7029_v28, %v9797_v21 }
 0x133   :  { %1059 = vmatprep.subr.bf16.mxu0 %v9376_v35  ;;  %8184 = vmatprep.subr.bf16.mxu1 %v12043_v1 }
 0x136   :  { %1060 = vmatpush1.bf16.msra.mxu0 %v9377_v36  ;;  %8185 = vmatpush3.bf16.msra.mxu1 %v8812_v34 }
 0x137   :  { %1061 = vmatprep.subr.bf16.mxu0 %v9378_v38  ;;  %8186 = vmatprep.subr.bf16.mxu1 %v12043_v1 }
 0x13a   :  { %1062 = vmatpush1.bf16.msra.mxu0 %v9379_v39  ;;  %8187 = vmatpush3.bf16.msra.mxu1 %v8813_v37 }
 0x13b   :  { %1063 = vmatprep.subr.bf16.mxu0 %v9380_v45  ;;  %8188 = vmatprep.subr.bf16.mxu1 %v12043_v1 }
 0x13e   :  { %1064 = vmatpush1.bf16.msra.mxu0 %v9381_v48  ;;  %8189 = vmatpush3.bf16.msra.mxu1 %v8814_v42 }
 0x13f   :  { %1065 = vmatprep.subr.bf16.mxu0 %v9382_v56  ;;  %8190 = vmatprep.subr.bf16.mxu1 %v12043_v1 }
 0x142   :  { %1066 = vmatpush1.bf16.msra.mxu0 %v9383_v59  ;;  %8191 = vmatpush3.bf16.msra.mxu1 %v8815_v55 }
 0x143   :  { %1067 = vmatprep.subr.bf16.mxu0 %v9384_v3  ;;  %8192 = vmatprep.subr.bf16.mxu1 %v12043_v1 }
 0x146   :  { %1068 = vmatpush1.bf16.msra.mxu0 %v9385_v6  ;;  %8193 = vmatpush3.bf16.msra.mxu1 %v8816_v62 }
 0x147   :  { %1312 = vmatprep.subr.bf16.mxu0 %v9386_v9  ;;  %8198 = vmatprep.subr.bf16.mxu1 %v12043_v1 }
 0x149   :  { %1086 = vmatmul.mubr.bf16.vlgmr.msra.gmra.mrb[8].mxu0 %v595_v26  ;;  %8195 = vmatmul.mubr.bf16.vlgmr.msra.gmra.mrb[12].mxu1 %v595_v26  ;;  %v566_v26 = vpop.f32.mrb[6].mxu1 }
 0x14a   :  { %1313 = vmatpush1.bf16.msra.mxu0 %v9387_v12  ;;  %1344 = vmatprep.mubr.bf16.mxu0 %v12040_v2  ;;  %v8157_v27 = vpop.f32.mrb[7].mxu1  ;;  %v356_v12 = vrot.slane %v7029_v28, %v9804_v52 }
 0x14b   :  { %1314 = vmatprep.subr.bf16.mxu0 %v9388_v15  ;;  %8214 = vmatprep.mubr.msk.bf16.mxu1 %vm9396_vm0, %v12043_v1 }
 0x14e   :  { %1315 = vmatpush1.bf16.msra.mxu0 %v9389_v16 }
 0x14f   :  { %1316 = vmatprep.subr.bf16.mxu0 %v9390_v17  ;;  %v9982_v17 = vld [vmem:[%s12031_s3] sm:$0x7] }
 0x150   :  { %v913_v27 = vrot.slane %v9982_v17, %v9792_v19 }
 0x152   :  { %1317 = vmatpush1.bf16.msra.mxu0 %v9391_v18  ;;  %v564_v18 = vadd.f32 %v9927_v23, %v356_v12 }
 0x153   :  { %1318 = vmatprep.subr.bf16.mxu0 %v9392_v22 }
 0x156   :  { %1319 = vmatpush1.bf16.msra.mxu0 %v9393_v20  ;;  %v7163_v20 = vld [vmem:[%s12032_s0 + $0xc] sm:$0xff] }
 0x157   :  { %1320 = vmatprep.subr.bf16.mxu0 %v9589_v40  ;;  %v8817_v40 = vld [vmem:[%s12028_s2 + $0xc8] ss:$12 sps:$4 sm:$0xff]  }
 0x158   :  { %8199 = vmatpush3.bf16.msra.mxu1 %v8817_v40  ;;  %v917_v40 = vrot.slane %v9982_v17, %v9797_v21 }
 0x159   :  { %8200 = vmatprep.subr.bf16.mxu1 %v12043_v1 }
 0x15a   :  { %1321 = vmatpush1.bf16.msra.mxu0 %v9595_v41  ;;  %v8818_v41 = vld [vmem:[%s12028_s2 + $0xe0] ss:$12 sps:$4 sm:$0xff]  }
 0x15b   :  { %1322 = vmatprep.subr.bf16.mxu0 %v9605_v43  ;;  %v8819_v43 = vld [vmem:[%s12028_s2 + $0xf8] ss:$12 sps:$4 sm:$0xff]  }
 0x15c   :  { %8201 = vmatpush3.bf16.msra.mxu1 %v8818_v41 }
 0x15d   :  { %8202 = vmatprep.subr.bf16.mxu1 %v12043_v1 }
 0x15e   :  { %1323 = vmatpush1.bf16.msra.mxu0 %v9611_v44  ;;  %v8820_v44 = vld [vmem:[%s12028_s2 + $0x110] ss:$12 sps:$4 sm:$0xff]  }
 0x15f   :  { %1324 = vmatprep.subr.bf16.mxu0 %v9621_v46  ;;  %v8821_v46 = vld [vmem:[%s12028_s2 + $0x128] ss:$12 sps:$4 sm:$0xff]  }
 0x160   :  { %8203 = vmatpush3.bf16.msra.mxu1 %v8819_v43  ;;  %v1396_v43 = vunpack.c.l.bf16 %v7163_v20 }
 0x161   :  { %8204 = vmatprep.subr.bf16.mxu1 %v12043_v1 }
 0x162   :  { %1325 = vmatpush1.bf16.msra.mxu0 %v9627_v47  ;;  %v8822_v47 = vld [vmem:[%s12028_s2 + $0x140] ss:$12 sps:$4 sm:$0xff]  }
 0x163   :  { %1326 = vmatprep.subr.bf16.mxu0 %v9642_v50  ;;  %v8823_v50 = vld [vmem:[%s12028_s2 + $0x158] ss:$12 sps:$4 sm:$0xff]  }
 0x164   :  { %8205 = vmatpush3.bf16.msra.mxu1 %v8820_v44 }
 0x165   :  { %8206 = vmatprep.subr.bf16.mxu1 %v12043_v1 }
 0x166   :  { %1327 = vmatpush1.bf16.msra.mxu0 %v9648_v51  ;;  %v8824_v51 = vld [vmem:[%s12028_s2 + $0x170] ss:$12 sps:$4 sm:$0xff]  }
 0x167   :  { %1598 = vmatprep.subr.bf16.mxu0 %v9658_v53  ;;  %v628_v53 = vld [vmem:[%s12033_s5] sm:$0x7] }
 0x168   :  { %8207 = vmatpush3.bf16.msra.mxu1 %v8821_v46  ;;  %v633_v30 = vrot.slane %v628_v53, %v9792_v19  ;;  %v637_v32 = vrot.slane %v628_v53, %v9797_v21  ;;  %v641_v15 = vrot.slane %v628_v53, %v9804_v52  ;;  %v1397_v53 = vunpack.c.h.bf16 %v7163_v20  ;;  %v10080_v20 = vld [vmem:[%s12028_s2 + $0x18] ss:$12 sps:$4 sm:$0xff]  }
 0x169   :  { %8208 = vmatprep.subr.bf16.mxu1 %v12043_v1 }
 0x16a   :  { %v8646_v33 = vadd.f32 %v633_v30, %v348_v29  ;;  %v8648_v36 = vadd.f32 %v637_v32, %v352_v31 }
 0x16c   :  { %8209 = vmatpush3.bf16.msra.mxu1 %v8822_v47 }
 0x16d   :  { %8210 = vmatprep.subr.bf16.mxu1 %v12043_v1 }
 0x170   :  { %8211 = vmatpush3.bf16.msra.mxu1 %v8823_v50 }
 0x171   :  { %8212 = vmatprep.subr.bf16.mxu1 %v12043_v1 }
 0x174   :  { %8213 = vmatpush3.bf16.msra.mxu1 %v8824_v51 }
 0x175   :  { %8218 = vmatprep.subr.bf16.mxu1 %v12043_v1 }
 0x1fc   :  { %v807_v34 = vpop.f32.mrb[4].mxu0  ;;  %v848_v35 = vpop.f32.mrb[8].mxu1 }
 0x1fd   :  { %v8647_v37 = vadd.f32 %v8646_v33, %v807_v34  ;;  %v809_v38 = vpop.f32.mrb[5].mxu0  ;;  %v8176_v39 = vpop.f32.mrb[9].mxu1  ;;  %v849_v25 = vadd.f32 %v848_v35, %v641_v15 }
 0x1fe   :  { %v811_v42 = vpop.f32.mrb[6].mxu0  ;;  %v851_v45 = vpop.f32.mrb[10].mxu1  ;;  %v8649_v59 = vadd.f32 %v8648_v36, %v809_v38 }
 0x1ff   :  { %v7080_v48 = vmul.f32 -1.442695, %v8647_v37  ;;  %v812_v55 = vpop.f32.mrb[7].mxu0  ;;  %v8177_v56 = vpop.f32.mrb[11].mxu1 }
 0x200   :  { %v7081_v62 = vmul.f32 -1.442695, %v8649_v59 }
 0x201   :  { %9219 = vpow2.f32 %v7080_v48  ;;  %v8825_v48 = vld [vmem:[%s12030_s4 + $0x8] ss:$12 sps:$4 sm:$0xff]  }
 0x202   :  { %9221 = vpow2.f32 %v7081_v62 }
 0x20b   :  { %v9220_v3 = vpop.eup %9219 }
 0x20c   :  { %v858_v6 = vadd.f32 1.0, %v9220_v3  ;;  %v9222_v9 = vpop.eup %9221  ;;  %v7164_v3 = vld [vmem:[%s12032_s0 + $0x14] sm:$0xf] }
 0x20d   :  { %v865_v16 = vadd.f32 1.0, %v9222_v9  ;;  %v1398_v9 = vunpack.c.l.bf16 %v7164_v3  ;;  %v10273_v3 = vld [vmem:[%s12028_s2 + $0x13c] ss:$12 sps:$4 sm:$0xff]  }
 0x20e   :  { %9223 = vrcp.f32 %v858_v6 }
 0x20f   :  { %9225 = vrcp.f32 %v865_v16 }
 0x218   :  { %v9224_v22 = vpop.eup %9223 }
 0x219   :  { %v868_v26 = vmul.f32 %v9224_v22, %v564_v18  ;;  %v9226_v35 = vpop.eup %9225  ;;  %v8836_v22 = vld [vmem:[%s12028_s2 + $0x8] ss:$12 sps:$4 sm:$0xff]  }
 0x21a   :  { %v871_v36 = vsub.f32 1.0, %v9226_v35  ;;  %v873_v42 = vmul.f32 %v9226_v35, %v9637_v49  ;;  %v8826_v49 = vld [vmem:[%s12030_s4 + $0x20] ss:$12 sps:$4 sm:$0xff]  }
 0x21b   :  { %v869_v41 = vadd.f32 %v868_v26, %v849_v25  ;;  %v8840_v25 = vld [vmem:[%s12028_s2 + $0x20] ss:$12 sps:$4 sm:$0xff]  }
 0x21c   :  { %v1087_v44 = vpop.f32.mrb[8].mxu0  ;;  %v1128_v46 = vpop.f32.mrb[12].mxu1  ;;  %v10090_v26 = vld [vmem:[%s12028_s2 + $0x34] ss:$12 sps:$4 sm:$0xff]  }
 0x21d   :  { %9227 = vtanh.f32 %v869_v41  ;;  %v1088_v23 = vadd.f32 %v1087_v44, %v913_v27  ;;  %v1089_v47 = vpop.f32.mrb[9].mxu0  ;;  %v8196_v50 = vpop.f32.mrb[13].mxu1  ;;  %v10099_v27 = vld [vmem:[%s12028_s2 + $0x30] ss:$12 sps:$4 sm:$0xff]   ;;  %v10109_v41 = vld [vmem:[%s12028_s2 + $0x4c] ss:$12 sps:$4 sm:$0xff]  }
 0x21e   :  { %v1090_v51 = vadd.f32 %v1089_v47, %v917_v40  ;;  %v1091_v28 = vpop.f32.mrb[10].mxu0  ;;  %v1131_v29 = vpop.f32.mrb[14].mxu1  ;;  %v8844_v40 = vld [vmem:[%s12028_s2 + $0x38] ss:$12 sps:$4 sm:$0xff]   ;;  %v8848_v44 = vld [vmem:[%s12028_s2 + $0x50] ss:$12 sps:$4 sm:$0xff]  }
 0x21f   :  { %v1399_v30 = vadd.f32 %v1396_v43, %v1088_v23  ;;  %v1092_v31 = vpop.f32.mrb[11].mxu0  ;;  %v8197_v32 = vpop.f32.mrb[15].mxu1  ;;  %v10115_v43 = vld [vmem:[%s12028_s2 + $0x48] ss:$12 sps:$4 sm:$0xff]   ;;  %v10131_v23 = vld [vmem:[%s12028_s2 + $0x60] ss:$12 sps:$4 sm:$0xff]  }
 0x220   :  { %v1406_v34 = vadd.f32 %v1397_v53, %v1090_v51  ;;  %v8852_v47 = vld [vmem:[%s12028_s2 + $0x68] ss:$12 sps:$4 sm:$0xff]   ;;  %v10147_v51 = vld [vmem:[%s12028_s2 + $0x78] ss:$12 sps:$4 sm:$0xff]   ;;  %v8856_v53 = vld [vmem:[%s12028_s2 + $0x80] ss:$12 sps:$4 sm:$0xff]  }
 0x221   :  { %v7165_v33 = vmul.f32 -1.442695, %v1399_v30  ;;  %v10141_v50 = vld [vmem:[%s12028_s2 + $0x7c] ss:$12 sps:$4 sm:$0xff]   ;;  %v10157_v28 = vld [vmem:[%s12028_s2 + $0x94] ss:$12 sps:$4 sm:$0xff]  }
 0x222   :  { %v7166_v37 = vmul.f32 -1.442695, %v1406_v34  ;;  %v10163_v29 = vld [vmem:[%s12028_s2 + $0x90] ss:$12 sps:$4 sm:$0xff]   ;;  %v8860_v30 = vld [vmem:[%s12028_s2 + $0x98] ss:$12 sps:$4 sm:$0xff]  }
 0x223   :  { %9229 = vpow2.f32 %v7165_v33  ;;  %v10173_v31 = vld [vmem:[%s12028_s2 + $0xac] ss:$12 sps:$4 sm:$0xff]   ;;  %v10179_v32 = vld [vmem:[%s12028_s2 + $0xa8] ss:$12 sps:$4 sm:$0xff]   ;;  %v8864_v33 = vld [vmem:[%s12028_s2 + $0xb0] ss:$12 sps:$4 sm:$0xff]  }
 0x224   :  { %9231 = vpow2.f32 %v7166_v37  ;;  %v10194_v34 = vld [vmem:[%s12028_s2 + $0xc4] ss:$12 sps:$4 sm:$0xff]   ;;  %v10199_v35 = vld [vmem:[%s12028_s2 + $0xc0] ss:$12 sps:$4 sm:$0xff]   ;;  %v10209_v37 = vld [vmem:[%s12028_s2 + $0xdc] ss:$12 sps:$4 sm:$0xff]  }
 0x227   :  { %v9228_v38 = vpop.eup %9227 }
 0x228   :  { %v872_v39 = vmul.f32 %v9228_v38, %v871_v36  ;;  %v8868_v36 = vld [vmem:[%s12028_s2 + $0xc8] ss:$12 sps:$4 sm:$0xff]   ;;  %v10215_v38 = vld [vmem:[%s12028_s2 + $0xd8] ss:$12 sps:$4 sm:$0xff]  }
 0x22a   :  { %v9993_v45 = vadd.f32 %v873_v42, %v872_v39  ;;  %v8872_v39 = vld [vmem:[%s12028_s2 + $0xe0] ss:$12 sps:$4 sm:$0xff]  }
 0x22b   :  { %v10225_v42 = vld [vmem:[%s12028_s2 + $0xf4] ss:$12 sps:$4 sm:$0xff]  }
 0x22c   :  { %12051 = vst [vmem:[#allocation4_spill] sm:$0xff] %v9993_v45  ;;  %v1134_v55 = vpack.c.bf16 %v9993_v45, %v9993_v45 }
 0x22d   :  { %v9230_v56 = vpop.eup %9229 }
 0x22e   :  { %v1403_v59 = vadd.f32 1.0, %v9230_v56  ;;  %1345 = vmatmul.mubr.bf16.vlgmr.msra.gmra.mrb[12].mxu0 %v1134_v55  ;;  %8215 = vmatmul.mubr.bf16.vlgmr.msra.gmra.mrb[16].mxu1 %v1134_v55  ;;  %v9232_v62 = vpop.eup %9231  ;;  %v8876_v55 = vld [vmem:[%s12028_s2 + $0xf8] ss:$12 sps:$4 sm:$0xff]  }
 0x22f   :  { %1599 = vmatpush1.bf16.msra.mxu0 %v9664_v54  ;;  %8219 = vmatpush3.bf16.msra.mxu1 %v8825_v48  ;;  %v8827_v54 = vld [vmem:[%s12030_s4 + $0x38] ss:$12 sps:$4 sm:$0xff]   ;;  %v1410_v6 = vadd.f32 1.0, %v9232_v62  ;;  %v10231_v48 = vld [vmem:[%s12028_s2 + $0xf0] ss:$12 sps:$4 sm:$0xff]  }
 0x230   :  { %9233 = vrcp.f32 %v1403_v59  ;;  %1600 = vmatprep.subr.bf16.mxu0 %v9681_v58  ;;  %8220 = vmatprep.subr.bf16.mxu1 %v12043_v1  ;;  %v921_v58 = vrot.slane %v9982_v17, %v9804_v52  ;;  %v10241_v56 = vld [vmem:[%s12028_s2 + $0x10c] ss:$12 sps:$4 sm:$0xff]   ;;  %v10247_v59 = vld [vmem:[%s12028_s2 + $0x108] ss:$12 sps:$4 sm:$0xff]  }
 0x231   :  { %1630 = vmatprep.mubr.bf16.mxu0 %v12040_v2  ;;  %8234 = vmatprep.mubr.msk.bf16.mxu1 %vm9396_vm0, %v12043_v1  ;;  %9235 = vrcp.f32 %v1410_v6  ;;  %v10263_v62 = vld [vmem:[%s12028_s2 + $0x120] ss:$12 sps:$4 sm:$0xff]   ;;  %v10279_v6 = vld [vmem:[%s12028_s2 + $0x138] ss:$12 sps:$4 sm:$0xff]  }
 0x233   :  { %1601 = vmatpush1.bf16.msra.mxu0 %v9676_v57  ;;  %8221 = vmatpush3.bf16.msra.mxu1 %v8826_v49  ;;  %v8828_v57 = vld [vmem:[%s12030_s4 + $0x50] ss:$12 sps:$4 sm:$0xff]  }
 0x234   :  { %1602 = vmatprep.subr.bf16.mxu0 %v9695_v60  ;;  %8222 = vmatprep.subr.bf16.mxu1 %v12043_v1  ;;  %v1129_v60 = vadd.f32 %v1128_v46, %v921_v58  ;;  %v10125_v46 = vld [vmem:[%s12028_s2 + $0x64] ss:$12 sps:$4 sm:$0xff]   ;;  %v8884_v58 = vld [vmem:[%s12028_s2 + $0x128] ss:$12 sps:$4 sm:$0xff]  }
 0x235   :  { %v8880_v49 = vld [vmem:[%s12028_s2 + $0x110] ss:$12 sps:$4 sm:$0xff]  }
 0x237   :  { %1603 = vmatpush1.bf16.msra.mxu0 %v9700_v61  ;;  %8223 = vmatpush3.bf16.msra.mxu1 %v8827_v54  ;;  %v8829_v61 = vld [vmem:[%s12030_s4 + $0x68] ss:$12 sps:$4 sm:$0xff]   ;;  %v10257_v54 = vld [vmem:[%s12028_s2 + $0x124] ss:$12 sps:$4 sm:$0xff]  }
 0x238   :  { %1604 = vmatprep.subr.bf16.mxu0 %v9711_v63  ;;  %8224 = vmatprep.subr.bf16.mxu1 %v12043_v1  ;;  %v8830_v63 = vld [vmem:[%s12030_s4 + $0x80] ss:$12 sps:$4 sm:$0xff]  }
 0x23a   :  { %v9234_v12 = vpop.eup %9233 }
 0x23b   :  { %v1413_v15 = vmul.f32 %v9234_v12, %v1129_v60  ;;  %1605 = vmatpush1.bf16.msra.mxu0 %v9716_v0  ;;  %8225 = vmatpush3.bf16.msra.mxu1 %v8828_v57  ;;  %v8831_v0 = vld [vmem:[%s12030_s4 + $0x98] ss:$12 sps:$4 sm:$0xff]   ;;  %v8888_v57 = vld [vmem:[%s12028_s2 + $0x140] ss:$12 sps:$4 sm:$0xff]  }
 0x23c   :  { %1606 = vmatprep.subr.bf16.mxu0 %v9727_v4  ;;  %8226 = vmatprep.subr.bf16.mxu1 %v12043_v1  ;;  %v9236_v4 = vpop.eup %9235  ;;  %v10289_v60 = vld [vmem:[%s12028_s2 + $0x154] ss:$12 sps:$4 sm:$0xff]   ;;  %v8892_v12 = vld [vmem:[%s12028_s2 + $0x158] ss:$12 sps:$4 sm:$0xff]  }
 0x23d   :  { %v1414_v16 = vadd.f32 %v1413_v15, %v1398_v9  ;;  %v1418_v18 = vmul.f32 %v9236_v4, %v9813_v24  ;;  %v10295_v9 = vld [vmem:[%s12028_s2 + $0x150] ss:$12 sps:$4 sm:$0xff]   ;;  %v10305_v15 = vld [vmem:[%s12028_s2 + $0x16c] ss:$12 sps:$4 sm:$0xff]  }
 0x23f   :  { %9237 = vtanh.f32 %v1414_v16  ;;  %1607 = vmatpush1.bf16.msra.mxu0 %v9732_v5  ;;  %8227 = vmatpush3.bf16.msra.mxu1 %v8829_v61  ;;  %v8832_v5 = vld [vmem:[%s12030_s4 + $0xb0] ss:$12 sps:$4 sm:$0xff]   ;;  %v10311_v61 = vld [vmem:[%s12028_s2 + $0x168] ss:$12 sps:$4 sm:$0xff]  }
 0x240   :  { %1608 = vmatprep.subr.bf16.mxu0 %v9742_v7  ;;  %8228 = vmatprep.subr.bf16.mxu1 %v12043_v1  ;;  %v10053_v7 = vld [vmem:[%s12028_s2 + $0x4] ss:$12 sps:$4 sm:$0xff]  }
 0x241   :  { %v8896_v16 = vld [vmem:[%s12028_s2 + $0x170] ss:$12 sps:$4 sm:$0xff]  }
 0x243   :  { %1609 = vmatpush1.bf16.msra.mxu0 %v9748_v8  ;;  %8229 = vmatpush3.bf16.msra.mxu1 %v8830_v63  ;;  %v1416_v8 = vsub.f32 1.0, %v9236_v4  ;;  %v10321_v63 = vld [vmem:[%s12030_s4 + $0x4] ss:$12 sps:$4 sm:$0xff]  }
 0x244   :  { %1610 = vmatprep.subr.bf16.mxu0 %v9756_v10  ;;  %8230 = vmatprep.subr.bf16.mxu1 %v12043_v1 }
 0x247   :  { %1611 = vmatpush1.bf16.msra.mxu0 %v9763_v11  ;;  %8231 = vmatpush3.bf16.msra.mxu1 %v8831_v0 }
 0x248   :  { %1612 = vmatprep.subr.bf16.mxu0 %v9771_v13  ;;  %8232 = vmatprep.subr.bf16.mxu1 %v12043_v1  ;;  %v10064_v13 = vld [vmem:[%s12028_s2] ss:$12 sps:$4 sm:$0xff]  }
 0x249   :  { %v9238_v10 = vpop.eup %9237 }
 0x24a   :  { %v1417_v17 = vmul.f32 %v9238_v10, %v1416_v8  ;;  %v1453_v10 = vld [vmem:[%s12033_s5] sm:$0x7] }
 0x24b   :  { %1613 = vmatpush1.bf16.msra.mxu0 %v9779_v14  ;;  %8233 = vmatpush3.bf16.msra.mxu1 %v8832_v5  ;;  %v10074_v14 = vld [vmem:[%s12028_s2 + $0x1c] ss:$12 sps:$4 sm:$0xff]  }
 0x24c   :  { %1879 = vmatprep.subr.bf16.mxu0 %v10053_v7  ;;  %8238 = vmatprep.subr.bf16.mxu1 %v12043_v1  ;;  %v10059_v11 = vadd.f32 %v1418_v18, %v1417_v17  ;;  %v7138_v17 = vld [vmem:[%s12031_s3 + $0x3] sm:$0x7] }
 0x24d   :  { %v1172_v18 = vrot.slane %v7138_v17, %v9792_v19 }
 0x24e   :  { %v1420_v24 = vpack.c.bf16 %v10059_v11, %v10059_v11 }
 0x250   :  { %1631 = vmatmul.mubr.bf16.vlgmr.msra.gmra.mrb[12].mxu0 %v1420_v24  ;;  %8235 = vmatmul.mubr.bf16.vlgmr.msra.gmra.mrb[20].mxu1 %v1420_v24 }
 0x251   :  { %1880 = vmatpush1.bf16.msra.mxu0 %v10064_v13  ;;  %8239 = vmatpush3.bf16.msra.mxu1 %v8836_v22  ;;  %v1458_v22 = vrot.slane %v1453_v10, %v9792_v19 }
 0x252   :  { %1881 = vmatprep.subr.bf16.mxu0 %v10074_v14  ;;  %8240 = vmatprep.subr.bf16.mxu1 %v12043_v1 }
 0x253   :  { %1911 = vmatprep.mubr.bf16.mxu0 %v12040_v2  ;;  %8254 = vmatprep.mubr.msk.bf16.mxu1 %vm9396_vm0, %v12043_v1 }
 0x255   :  { %1882 = vmatpush1.bf16.msra.mxu0 %v10080_v20  ;;  %8241 = vmatpush3.bf16.msra.mxu1 %v8840_v25  ;;  %v1462_v25 = vrot.slane %v1453_v10, %v9797_v21 }
 0x256   :  { %1883 = vmatprep.subr.bf16.mxu0 %v10090_v26  ;;  %8242 = vmatprep.subr.bf16.mxu1 %v12043_v1 }
 0x259   :  { %1884 = vmatpush1.bf16.msra.mxu0 %v10099_v27  ;;  %8243 = vmatpush3.bf16.msra.mxu1 %v8844_v40  ;;  %v8650_v40 = vadd.f32 %v1458_v22, %v1172_v18  ;;  %v1180_v18 = vrot.slane %v7138_v17, %v9804_v52  ;;  %v1466_v22 = vrot.slane %v1453_v10, %v9804_v52 }
 0x25a   :  { %1885 = vmatprep.subr.bf16.mxu0 %v10109_v41  ;;  %8244 = vmatprep.subr.bf16.mxu1 %v12043_v1 }
 0x25d   :  { %1886 = vmatpush1.bf16.msra.mxu0 %v10115_v43  ;;  %8245 = vmatpush3.bf16.msra.mxu1 %v8848_v44 }
 0x25e   :  { %1887 = vmatprep.subr.bf16.mxu0 %v10125_v46  ;;  %8246 = vmatprep.subr.bf16.mxu1 %v12043_v1 }
 0x261   :  { %1888 = vmatpush1.bf16.msra.mxu0 %v10131_v23  ;;  %8247 = vmatpush3.bf16.msra.mxu1 %v8852_v47 }
 0x262   :  { %1889 = vmatprep.subr.bf16.mxu0 %v10141_v50  ;;  %8248 = vmatprep.subr.bf16.mxu1 %v12043_v1 }
 0x265   :  { %1890 = vmatpush1.bf16.msra.mxu0 %v10147_v51  ;;  %8249 = vmatpush3.bf16.msra.mxu1 %v8856_v53 }
 0x266   :  { %1891 = vmatprep.subr.bf16.mxu0 %v10157_v28  ;;  %8250 = vmatprep.subr.bf16.mxu1 %v12043_v1 }
 0x269   :  { %1892 = vmatpush1.bf16.msra.mxu0 %v10163_v29  ;;  %8251 = vmatpush3.bf16.msra.mxu1 %v8860_v30 }
 0x26a   :  { %1893 = vmatprep.subr.bf16.mxu0 %v10173_v31  ;;  %8252 = vmatprep.subr.bf16.mxu1 %v12043_v1 }
 0x26d   :  { %1894 = vmatpush1.bf16.msra.mxu0 %v10179_v32  ;;  %8253 = vmatpush3.bf16.msra.mxu1 %v8864_v33 }
 0x26e   :  { %8258 = vmatprep.subr.bf16.mxu1 %v12043_v1  ;;  %2138 = vmatprep.subr.bf16.mxu0 %v10194_v34 }
 0x270   :  { %1912 = vmatmul.mubr.bf16.vlgmr.msra.gmra.mrb[16].mxu0 %v1420_v24  ;;  %8255 = vmatmul.mubr.bf16.vlgmr.msra.gmra.mrb[24].mxu1 %v1420_v24  ;;  %v1176_v24 = vrot.slane %v7138_v17, %v9797_v21 }
 0x271   :  { %2170 = vmatprep.mubr.bf16.mxu0 %v12040_v2  ;;  %8274 = vmatprep.mubr.msk.bf16.mxu1 %vm9396_vm0, %v12043_v1 }
 0x272   :  { %2139 = vmatpush1.bf16.msra.mxu0 %v10199_v35  ;;  %8259 = vmatpush3.bf16.msra.mxu1 %v8868_v36  ;;  %v8652_v53 = vadd.f32 %v1462_v25, %v1176_v24  ;;  %v10340_v25 = vld [vmem:[%s12031_s3] sm:$0x7] }
 0x273   :  { %8260 = vmatprep.subr.bf16.mxu1 %v12043_v1  ;;  %2140 = vmatprep.subr.bf16.mxu0 %v10209_v37  ;;  %v1739_v17 = vrot.slane %v10340_v25, %v9792_v19  ;;  %v1743_v10 = vrot.slane %v10340_v25, %v9797_v21 }
 0x276   :  { %2141 = vmatpush1.bf16.msra.mxu0 %v10215_v38  ;;  %8261 = vmatpush3.bf16.msra.mxu1 %v8872_v39 }
 0x277   :  { %8262 = vmatprep.subr.bf16.mxu1 %v12043_v1  ;;  %2142 = vmatprep.subr.bf16.mxu0 %v10225_v42 }
 0x27a   :  { %2143 = vmatpush1.bf16.msra.mxu0 %v10231_v48  ;;  %8263 = vmatpush3.bf16.msra.mxu1 %v8876_v55 }
 0x27b   :  { %8264 = vmatprep.subr.bf16.mxu1 %v12043_v1  ;;  %2144 = vmatprep.subr.bf16.mxu0 %v10241_v56 }
 0x27e   :  { %2145 = vmatpush1.bf16.msra.mxu0 %v10247_v59  ;;  %8265 = vmatpush3.bf16.msra.mxu1 %v8880_v49 }
 0x27f   :  { %8266 = vmatprep.subr.bf16.mxu1 %v12043_v1  ;;  %2146 = vmatprep.subr.bf16.mxu0 %v10257_v54 }
 0x282   :  { %2147 = vmatpush1.bf16.msra.mxu0 %v10263_v62  ;;  %8267 = vmatpush3.bf16.msra.mxu1 %v8884_v58 }
 0x283   :  { %8268 = vmatprep.subr.bf16.mxu1 %v12043_v1  ;;  %2148 = vmatprep.subr.bf16.mxu0 %v10273_v3 }
 0x286   :  { %2149 = vmatpush1.bf16.msra.mxu0 %v10279_v6  ;;  %8269 = vmatpush3.bf16.msra.mxu1 %v8888_v57 }
 0x287   :  { %8270 = vmatprep.subr.bf16.mxu1 %v12043_v1  ;;  %2150 = vmatprep.subr.bf16.mxu0 %v10289_v60 }
 0x28a   :  { %2151 = vmatpush1.bf16.msra.mxu0 %v10295_v9  ;;  %8271 = vmatpush3.bf16.msra.mxu1 %v8892_v12 }
 0x28b   :  { %8272 = vmatprep.subr.bf16.mxu1 %v12043_v1  ;;  %2152 = vmatprep.subr.bf16.mxu0 %v10305_v15 }
 0x28e   :  { %2153 = vmatpush1.bf16.msra.mxu0 %v10311_v61  ;;  %8273 = vmatpush3.bf16.msra.mxu1 %v8896_v16 }
 0x28f   :  { %8278 = vmatprep.subr.bf16.mxu1 %v12043_v1  ;;  %2424 = vmatprep.subr.bf16.mxu0 %v10321_v63 }
 0x301   :  { %v1387_v0 = vpop.f32.mrb[16].mxu1 }
 0x302   :  { %v8216_v4 = vpop.f32.mrb[17].mxu1 }
 0x303   :  { %v1390_v5 = vpop.f32.mrb[18].mxu1 }
 0x304   :  { %v8217_v8 = vpop.f32.mrb[19].mxu1 }
 0x323   :  { %v1632_v44 = vpop.f32.mrb[12].mxu0  ;;  %v1673_v47 = vpop.f32.mrb[20].mxu1 }
 0x324   :  { %v8651_v30 = vadd.f32 %v8650_v40, %v1632_v44  ;;  %v1634_v33 = vpop.f32.mrb[13].mxu0  ;;  %v8236_v36 = vpop.f32.mrb[21].mxu1  ;;  %v1388_v40 = vadd.f32 %v1387_v0, %v1180_v18 }
 0x325   :  { %v1636_v39 = vpop.f32.mrb[14].mxu0  ;;  %v1676_v55 = vpop.f32.mrb[22].mxu1  ;;  %v8653_v12 = vadd.f32 %v8652_v53, %v1634_v33  ;;  %v7274_v53 = vld [vmem:[%s12032_s0 + $0x18] sm:$0xff] }
 0x326   :  { %v7191_v49 = vmul.f32 -1.442695, %v8651_v30  ;;  %v1637_v58 = vpop.f32.mrb[15].mxu0  ;;  %v8237_v57 = vpop.f32.mrb[23].mxu1  ;;  %v1674_v30 = vadd.f32 %v1673_v47, %v1466_v22  ;;  %v2222_v39 = vunpack.c.l.bf16 %v7274_v53 }
 0x327   :  { %v7192_v16 = vmul.f32 -1.442695, %v8653_v12 }
 0x328   :  { %9239 = vpow2.f32 %v7191_v49 }
 0x329   :  { %9241 = vpow2.f32 %v7192_v16  ;;  %v2223_v16 = vunpack.c.h.bf16 %v7274_v53  ;;  %v10355_v53 = vld [vmem:[%s12030_s4] ss:$12 sps:$4 sm:$0xff]  }
 0x332   :  { %v9240_v4 = vpop.eup %9239 }
 0x333   :  { %v1683_v5 = vadd.f32 1.0, %v9240_v4  ;;  %v9242_v8 = vpop.eup %9241 }
 0x334   :  { %v1690_v24 = vadd.f32 1.0, %v9242_v8 }
 0x335   :  { %9243 = vrcp.f32 %v1683_v5 }
 0x336   :  { %9245 = vrcp.f32 %v1690_v24 }
 0x33f   :  { %v9244_v44 = vpop.eup %9243 }
 0x340   :  { %v1693_v33 = vmul.f32 %v9244_v44, %v1388_v40  ;;  %v9246_v40 = vpop.eup %9245 }
 0x341   :  { %v1696_v44 = vsub.f32 1.0, %v9246_v40 }
 0x342   :  { %v1694_v36 = vadd.f32 %v1693_v33, %v1674_v30 }
 0x343   :  { %v1913_v55 = vpop.f32.mrb[16].mxu0  ;;  %v1954_v49 = vpop.f32.mrb[24].mxu1 }
 0x344   :  { %9247 = vtanh.f32 %v1694_v36  ;;  %v1914_v0 = vadd.f32 %v1913_v55, %v1739_v17  ;;  %v1915_v58 = vpop.f32.mrb[17].mxu0  ;;  %v8256_v57 = vpop.f32.mrb[25].mxu1  ;;  %v1698_v36 = vmul.f32 %v9246_v40, %v9993_v45  ;;  %v10365_v55 = vld [vmem:[%s12030_s4 + $0x1c] ss:$12 sps:$4 sm:$0xff]  }
 0x345   :  { %v1916_v12 = vadd.f32 %v1915_v58, %v1743_v10  ;;  %v1917_v4 = vpop.f32.mrb[18].mxu0  ;;  %v1957_v47 = vpop.f32.mrb[26].mxu1  ;;  %v8900_v10 = vld [vmem:[%s12030_s4 + $0x8] ss:$12 sps:$4 sm:$0xff]   ;;  %v10371_v58 = vld [vmem:[%s12030_s4 + $0x18] ss:$12 sps:$4 sm:$0xff]  }
 0x346   :  { %v2225_v5 = vadd.f32 %v2222_v39, %v1914_v0  ;;  %v1918_v8 = vpop.f32.mrb[19].mxu0  ;;  %v8257_v18 = vpop.f32.mrb[27].mxu1  ;;  %v8904_v57 = vld [vmem:[%s12030_s4 + $0x20] ss:$12 sps:$4 sm:$0xff]   ;;  %v10390_v4 = vld [vmem:[%s12030_s4 + $0x30] ss:$12 sps:$4 sm:$0xff]  }
 0x347   :  { %v2232_v24 = vadd.f32 %v2223_v16, %v1916_v12  ;;  %v10381_v12 = vld [vmem:[%s12030_s4 + $0x34] ss:$12 sps:$4 sm:$0xff]   ;;  %v12053_v16 = vmov 0   ;;  %v8908_v47 = vld [vmem:[%s12030_s4 + $0x38] ss:$12 sps:$4 sm:$0xff]   ;;  %v1747_v18 = vrot.slane %v10340_v25, %v9804_v52 }
 0x348   :  { %v7276_v22 = vmul.f32 -1.442695, %v2225_v5  ;;  %v10400_v8 = vld [vmem:[%s12030_s4 + $0x4c] ss:$12 sps:$4 sm:$0xff]   ;;  %v10411_v40 = vld [vmem:[%s12030_s4 + $0x48] ss:$12 sps:$4 sm:$0xff]  }
 0x349   :  { %v7277_v30 = vmul.f32 -1.442695, %v2232_v24  ;;  %v10421_v25 = vld [vmem:[%s12030_s4 + $0x64] ss:$12 sps:$4 sm:$0xff]  }
 0x34a   :  { %9249 = vpow2.f32 %v7276_v22  ;;  %v7275_v22 = vld [vmem:[%s12032_s0 + $0x20] sm:$0xf] }
 0x34b   :  { %9251 = vpow2.f32 %v7277_v30  ;;  %v1955_v30 = vadd.f32 %v1954_v49, %v1747_v18  ;;  %v10437_v49 = vld [vmem:[%s12030_s4 + $0x7c] ss:$12 sps:$4 sm:$0xff]  }
 0x34c   :  { %v10459_v18 = vld [vmem:[%s12030_s4 + $0x90] ss:$12 sps:$4 sm:$0xff]  }
 0x34e   :  { %v9248_v33 = vpop.eup %9247 }
 0x34f   :  { %v1697_v2 = vmul.f32 %v9248_v33, %v1696_v44  ;;  %v8912_v44 = vld [vmem:[%s12030_s4 + $0x50] ss:$12 sps:$4 sm:$0xff]   ;;  %v2224_v33 = vunpack.c.l.bf16 %v7275_v22  ;;  %v8924_v22 = vld [vmem:[%s12030_s4 + $0x98] ss:$12 sps:$4 sm:$0xff]  }
 0x351   :  { %v10350_v17 = vadd.f32 %v1698_v36, %v1697_v2 }
 0x353   :  { %12052 = vst [vmem:[#allocation5_spill] sm:$0xff] %v10350_v17  ;;  %v1960_v39 = vpack.c.bf16 %v10350_v17, %v10350_v17 }
 0x354   :  { %v9250_v0 = vpop.eup %9249 }
 0x355   :  { %v2229_v2 = vadd.f32 1.0, %v9250_v0  ;;  %2171 = vmatmul.mubr.bf16.vlgmr.msra.gmra.mrb[20].mxu0 %v1960_v39  ;;  %8275 = vmatmul.mubr.bf16.vlgmr.msra.gmra.mrb[28].mxu1 %v1960_v39  ;;  %v9252_v5 = vpop.eup %9251  ;;  %v10427_v39 = vld [vmem:[%s12030_s4 + $0x60] ss:$12 sps:$4 sm:$0xff]   ;;  %v8916_v0 = vld [vmem:[%s12030_s4 + $0x68] ss:$12 sps:$4 sm:$0xff]  }
 0x356   :  { %2425 = vmatpush1.bf16.msra.mxu0 %v10355_v53  ;;  %8279 = vmatpush3.bf16.msra.mxu1 %v8900_v10  ;;  %v2236_v24 = vadd.f32 1.0, %v9252_v5  ;;  %v10453_v5 = vld [vmem:[%s12030_s4 + $0x94] ss:$12 sps:$4 sm:$0xff]  }
 0x357   :  { %9253 = vrcp.f32 %v2229_v2  ;;  %2426 = vmatprep.subr.bf16.mxu0 %v10365_v55  ;;  %8280 = vmatprep.subr.bf16.mxu1 %v12043_v1 }
 0x358   :  { %2456 = vmatprep.mubr.bf16.mxu0 %v12053_v16  ;;  %8294 = vmatprep.mubr.msk.bf16.mxu1 %vm9396_vm0, %v12043_v1  ;;  %9255 = vrcp.f32 %v2236_v24  ;;  %v10469_v24 = vld [vmem:[%s12030_s4 + $0xac] ss:$12 sps:$4 sm:$0xff]  }
 0x35a   :  { %2427 = vmatpush1.bf16.msra.mxu0 %v10371_v58  ;;  %8281 = vmatpush3.bf16.msra.mxu1 %v8904_v57  ;;  %v10443_v57 = vld [vmem:[%s12030_s4 + $0x78] ss:$12 sps:$4 sm:$0xff]  }
 0x35b   :  { %2428 = vmatprep.subr.bf16.mxu0 %v10381_v12  ;;  %8282 = vmatprep.subr.bf16.mxu1 %v12043_v1 }
 0x35e   :  { %2429 = vmatpush1.bf16.msra.mxu0 %v10390_v4  ;;  %8283 = vmatpush3.bf16.msra.mxu1 %v8908_v47  ;;  %v8920_v47 = vld [vmem:[%s12030_s4 + $0x80] ss:$12 sps:$4 sm:$0xff]  }
 0x35f   :  { %2430 = vmatprep.subr.bf16.mxu0 %v10400_v8  ;;  %8284 = vmatprep.subr.bf16.mxu1 %v12043_v1 }
 0x361   :  { %v9254_v36 = vpop.eup %9253 }
 0x362   :  { %v2239_v10 = vmul.f32 %v9254_v36, %v1955_v30  ;;  %2431 = vmatpush1.bf16.msra.mxu0 %v10411_v40  ;;  %8285 = vmatpush3.bf16.msra.mxu1 %v8912_v44  ;;  %v9256_v44 = vpop.eup %9255  ;;  %v10475_v30 = vld [vmem:[%s12030_s4 + $0xa8] ss:$12 sps:$4 sm:$0xff]  }
 0x363   :  { %2432 = vmatprep.subr.bf16.mxu0 %v10421_v25  ;;  %8286 = vmatprep.subr.bf16.mxu1 %v12043_v1  ;;  %v2242_v36 = vsub.f32 1.0, %v9256_v44 }
 0x364   :  { %v2240_v2 = vadd.f32 %v2239_v10, %v2224_v33  ;;  %v8928_v33 = vld [vmem:[%s12030_s4 + $0xb0] ss:$12 sps:$4 sm:$0xff]  }
 0x366   :  { %9257 = vtanh.f32 %v2240_v2  ;;  %2433 = vmatpush1.bf16.msra.mxu0 %v10427_v39  ;;  %8287 = vmatpush3.bf16.msra.mxu1 %v8916_v0  ;;  %v2244_v2 = vmul.f32 %v9256_v44, %v10059_v11  ;;  %v8931_v11 = vld [vmem:[%s12028_s2 + $0x38] ss:$12 sps:$4 sm:$0xff]  }
 0x367   :  { %2434 = vmatprep.subr.bf16.mxu0 %v10437_v49  ;;  %8288 = vmatprep.subr.bf16.mxu1 %v12043_v1 }
 0x36a   :  { %2435 = vmatpush1.bf16.msra.mxu0 %v10443_v57  ;;  %8289 = vmatpush3.bf16.msra.mxu1 %v8920_v47 }
 0x36b   :  { %2436 = vmatprep.subr.bf16.mxu0 %v10453_v5  ;;  %8290 = vmatprep.subr.bf16.mxu1 %v12043_v1 }
 0x36e   :  { %2437 = vmatpush1.bf16.msra.mxu0 %v10459_v18  ;;  %8291 = vmatpush3.bf16.msra.mxu1 %v8924_v22  ;;  %v8929_v22 = vld [vmem:[%s12028_s2 + $0x8] ss:$12 sps:$4 sm:$0xff]  }
 0x36f   :  { %2438 = vmatprep.subr.bf16.mxu0 %v10469_v24  ;;  %8292 = vmatprep.subr.bf16.mxu1 %v12043_v1 }
 0x370   :  { %v9258_v10 = vpop.eup %9257 }
 0x371   :  { %v2243_v0 = vmul.f32 %v9258_v10, %v2242_v36 }
 0x372   :  { %2439 = vmatpush1.bf16.msra.mxu0 %v10475_v30  ;;  %8293 = vmatpush3.bf16.msra.mxu1 %v8928_v33 }
 0x373   :  { %2705 = vmatprep.subr.bf16.mxu0 %v10053_v7  ;;  %8298 = vmatprep.subr.bf16.mxu1 %v12043_v1  ;;  %v10486_v47 = vadd.f32 %v2244_v2, %v2243_v0  ;;  %v8930_v7 = vld [vmem:[%s12028_s2 + $0x20] ss:$12 sps:$4 sm:$0xff]  }
 0x375   :  { %v2246_v45 = vpack.c.bf16 %v10486_v47, %v10486_v47 }
 0x377   :  { %2457 = vmatmul.mubr.bf16.vlgmr.msra.gmra.mrb[20].mxu0 %v2246_v45  ;;  %8295 = vmatmul.mubr.bf16.vlgmr.msra.gmra.mrb[32].mxu1 %v2246_v45 }
 0x378   :  { %2706 = vmatpush1.bf16.msra.mxu0 %v10064_v13  ;;  %8299 = vmatpush3.bf16.msra.mxu1 %v8929_v22  ;;  %v8932_v13 = vld [vmem:[%s12028_s2 + $0x50] ss:$12 sps:$4 sm:$0xff]  }
 0x379   :  { %2707 = vmatprep.subr.bf16.mxu0 %v10074_v14  ;;  %8300 = vmatprep.subr.bf16.mxu1 %v12043_v1  ;;  %v8933_v14 = vld [vmem:[%s12028_s2 + $0x68] ss:$12 sps:$4 sm:$0xff]  }
 0x37a   :  { %2737 = vmatprep.mubr.bf16.mxu0 %v12053_v16  ;;  %8314 = vmatprep.mubr.msk.bf16.mxu1 %vm9396_vm0, %v12043_v1 }
 0x37c   :  { %2708 = vmatpush1.bf16.msra.mxu0 %v10080_v20  ;;  %8301 = vmatpush3.bf16.msra.mxu1 %v8930_v7  ;;  %v8934_v20 = vld [vmem:[%s12028_s2 + $0x80] ss:$12 sps:$4 sm:$0xff]  }
 0x37d   :  { %2709 = vmatprep.subr.bf16.mxu0 %v10090_v26  ;;  %8302 = vmatprep.subr.bf16.mxu1 %v12043_v1  ;;  %v8935_v26 = vld [vmem:[%s12028_s2 + $0x98] ss:$12 sps:$4 sm:$0xff]  }
 0x380   :  { %2710 = vmatpush1.bf16.msra.mxu0 %v10099_v27  ;;  %8303 = vmatpush3.bf16.msra.mxu1 %v8931_v11  ;;  %v8936_v27 = vld [vmem:[%s12028_s2 + $0xb0] ss:$12 sps:$4 sm:$0xff]  }
 0x381   :  { %2711 = vmatprep.subr.bf16.mxu0 %v10109_v41  ;;  %8304 = vmatprep.subr.bf16.mxu1 %v12043_v1  ;;  %v8938_v41 = vld [vmem:[%s12028_s2 + $0xe0] ss:$12 sps:$4 sm:$0xff]  }
 0x384   :  { %2712 = vmatpush1.bf16.msra.mxu0 %v10115_v43  ;;  %8305 = vmatpush3.bf16.msra.mxu1 %v8932_v13  ;;  %v8939_v43 = vld [vmem:[%s12028_s2 + $0xf8] ss:$12 sps:$4 sm:$0xff]  }
 0x385   :  { %2713 = vmatprep.subr.bf16.mxu0 %v10125_v46  ;;  %8306 = vmatprep.subr.bf16.mxu1 %v12043_v1  ;;  %v8940_v46 = vld [vmem:[%s12028_s2 + $0x110] ss:$12 sps:$4 sm:$0xff]  }
 0x388   :  { %2714 = vmatpush1.bf16.msra.mxu0 %v10131_v23  ;;  %8307 = vmatpush3.bf16.msra.mxu1 %v8933_v14  ;;  %v8941_v23 = vld [vmem:[%s12028_s2 + $0x128] ss:$12 sps:$4 sm:$0xff]   ;;  %v10607_v14 = vld [vmem:[%s12031_s3] sm:$0x7] }
 0x389   :  { %2715 = vmatprep.subr.bf16.mxu0 %v10141_v50  ;;  %8308 = vmatprep.subr.bf16.mxu1 %v12043_v1  ;;  %v8942_v50 = vld [vmem:[%s12028_s2 + $0x140] ss:$12 sps:$4 sm:$0xff]  }
 0x38c   :  { %2716 = vmatpush1.bf16.msra.mxu0 %v10147_v51  ;;  %8309 = vmatpush3.bf16.msra.mxu1 %v8934_v20  ;;  %v8943_v51 = vld [vmem:[%s12028_s2 + $0x158] ss:$12 sps:$4 sm:$0xff]  }
 0x38d   :  { %2717 = vmatprep.subr.bf16.mxu0 %v10157_v28  ;;  %8310 = vmatprep.subr.bf16.mxu1 %v12043_v1  ;;  %v8944_v28 = vld [vmem:[%s12028_s2 + $0x170] ss:$12 sps:$4 sm:$0xff]  }
 0x390   :  { %2718 = vmatpush1.bf16.msra.mxu0 %v10163_v29  ;;  %8311 = vmatpush3.bf16.msra.mxu1 %v8935_v26 }
 0x391   :  { %2719 = vmatprep.subr.bf16.mxu0 %v10173_v31  ;;  %8312 = vmatprep.subr.bf16.mxu1 %v12043_v1 }
 0x394   :  { %2720 = vmatpush1.bf16.msra.mxu0 %v10179_v32  ;;  %8313 = vmatpush3.bf16.msra.mxu1 %v8936_v27  ;;  %v7385_v27 = vld [vmem:[%s12032_s0 + $0x24] sm:$0xff] }
 0x395   :  { %2964 = vmatprep.subr.bf16.mxu0 %v10194_v34  ;;  %8318 = vmatprep.subr.bf16.mxu1 %v12043_v1 }
 0x397   :  { %2738 = vmatmul.mubr.bf16.vlgmr.msra.gmra.mrb[24].mxu0 %v2246_v45  ;;  %8315 = vmatmul.mubr.bf16.vlgmr.msra.gmra.mrb[36].mxu1 %v2246_v45  ;;  %v8937_v45 = vld [vmem:[%s12028_s2 + $0xc8] ss:$12 sps:$4 sm:$0xff]  }
 0x398   :  { %2965 = vmatpush1.bf16.msra.mxu0 %v10199_v35  ;;  %2996 = vmatprep.mubr.bf16.mxu0 %v12053_v16  ;;  %v2279_v35 = vld [vmem:[%s12033_s5] sm:$0x7] }
 0x399   :  { %2966 = vmatprep.subr.bf16.mxu0 %v10209_v37  ;;  %8334 = vmatprep.mubr.msk.bf16.mxu1 %vm9396_vm0, %v12043_v1  ;;  %v7249_v37 = vld [vmem:[%s12031_s3 + $0x3] sm:$0x7]  ;;  %v2292_v11 = vrot.slane %v2279_v35, %v9804_v52 }
 0x39a   :  { %8319 = vmatpush3.bf16.msra.mxu1 %v8937_v45  ;;  %v2006_v7 = vrot.slane %v7249_v37, %v9804_v52 }
 0x39b   :  { %8320 = vmatprep.subr.bf16.mxu1 %v12043_v1 }
 0x39c   :  { %2967 = vmatpush1.bf16.msra.mxu0 %v10215_v38  ;;  %v1998_v38 = vrot.slane %v7249_v37, %v9792_v19 }
 0x39d   :  { %2968 = vmatprep.subr.bf16.mxu0 %v10225_v42  ;;  %v2284_v42 = vrot.slane %v2279_v35, %v9792_v19 }
 0x39e   :  { %8321 = vmatpush3.bf16.msra.mxu1 %v8938_v41 }
 0x39f   :  { %8322 = vmatprep.subr.bf16.mxu1 %v12043_v1 }
 0x3a0   :  { %2969 = vmatpush1.bf16.msra.mxu0 %v10231_v48  ;;  %v2002_v48 = vrot.slane %v7249_v37, %v9797_v21 }
 0x3a1   :  { %2970 = vmatprep.subr.bf16.mxu0 %v10241_v56  ;;  %v2288_v56 = vrot.slane %v2279_v35, %v9797_v21  ;;  %v3049_v35 = vunpack.c.h.bf16 %v7385_v27 }
 0x3a2   :  { %8323 = vmatpush3.bf16.msra.mxu1 %v8939_v43  ;;  %v2565_v43 = vrot.slane %v10607_v14, %v9792_v19 }
 0x3a3   :  { %8324 = vmatprep.subr.bf16.mxu1 %v12043_v1 }
 0x3a4   :  { %2971 = vmatpush1.bf16.msra.mxu0 %v10247_v59  ;;  %v8654_v59 = vadd.f32 %v2284_v42, %v1998_v38 }
 0x3a5   :  { %2972 = vmatprep.subr.bf16.mxu0 %v10257_v54 }
 0x3a6   :  { %8325 = vmatpush3.bf16.msra.mxu1 %v8940_v46  ;;  %v2569_v46 = vrot.slane %v10607_v14, %v9797_v21 }
 0x3a7   :  { %8326 = vmatprep.subr.bf16.mxu1 %v12043_v1 }
 0x3a8   :  { %2973 = vmatpush1.bf16.msra.mxu0 %v10263_v62 }
 0x3a9   :  { %2974 = vmatprep.subr.bf16.mxu0 %v10273_v3  ;;  %v8656_v3 = vadd.f32 %v2288_v56, %v2002_v48 }
 0x3aa   :  { %8327 = vmatpush3.bf16.msra.mxu1 %v8941_v23 }
 0x3ab   :  { %8328 = vmatprep.subr.bf16.mxu1 %v12043_v1 }
 0x3ac   :  { %2975 = vmatpush1.bf16.msra.mxu0 %v10279_v6 }
 0x3ad   :  { %2976 = vmatprep.subr.bf16.mxu0 %v10289_v60 }
 0x3ae   :  { %8329 = vmatpush3.bf16.msra.mxu1 %v8942_v50  ;;  %v3048_v50 = vunpack.c.l.bf16 %v7385_v27  ;;  %v8956_v27 = vld [vmem:[%s12028_s2 + $0x8] ss:$12 sps:$4 sm:$0xff]  }
 0x3af   :  { %8330 = vmatprep.subr.bf16.mxu1 %v12043_v1 }
 0x3b0   :  { %2977 = vmatpush1.bf16.msra.mxu0 %v10295_v9 }
 0x3b1   :  { %2978 = vmatprep.subr.bf16.mxu0 %v10305_v15 }
 0x3b2   :  { %8331 = vmatpush3.bf16.msra.mxu1 %v8943_v51 }
 0x3b3   :  { %8332 = vmatprep.subr.bf16.mxu1 %v12043_v1 }
 0x3b4   :  { %2979 = vmatpush1.bf16.msra.mxu0 %v10311_v61 }
 0x3b5   :  { %3250 = vmatprep.subr.bf16.mxu0 %v10321_v63 }
 0x3b6   :  { %8333 = vmatpush3.bf16.msra.mxu1 %v8944_v28 }
 0x3b7   :  { %8338 = vmatprep.subr.bf16.mxu1 %v12043_v1 }
 0x428   :  { %v2213_v29 = vpop.f32.mrb[28].mxu1 }
 0x429   :  { %v8276_v31 = vpop.f32.mrb[29].mxu1  ;;  %v2214_v20 = vadd.f32 %v2213_v29, %v2006_v7 }
 0x42a   :  { %v2216_v32 = vpop.f32.mrb[30].mxu1 }
 0x42b   :  { %v8277_v34 = vpop.f32.mrb[31].mxu1 }
 0x44a   :  { %v2458_v54 = vpop.f32.mrb[20].mxu0  ;;  %v2499_v62 = vpop.f32.mrb[32].mxu1 }
 0x44b   :  { %v8655_v6 = vadd.f32 %v8654_v59, %v2458_v54  ;;  %v2460_v60 = vpop.f32.mrb[21].mxu0  ;;  %v8296_v9 = vpop.f32.mrb[33].mxu1  ;;  %v2500_v45 = vadd.f32 %v2499_v62, %v2292_v11 }
 0x44c   :  { %v2462_v15 = vpop.f32.mrb[22].mxu0  ;;  %v2502_v61 = vpop.f32.mrb[34].mxu1  ;;  %v8657_v36 = vadd.f32 %v8656_v3, %v2460_v60 }
 0x44d   :  { %v7302_v63 = vmul.f32 -1.442695, %v8655_v6  ;;  %v2463_v44 = vpop.f32.mrb[23].mxu0  ;;  %v8297_v33 = vpop.f32.mrb[35].mxu1 }
 0x44e   :  { %v7303_v10 = vmul.f32 -1.442695, %v8657_v36 }
 0x44f   :  { %9259 = vpow2.f32 %v7302_v63  ;;  %v8945_v63 = vld [vmem:[%s12030_s4 + $0x8] ss:$12 sps:$4 sm:$0xff]  }
 0x450   :  { %9261 = vpow2.f32 %v7303_v10  ;;  %v8946_v10 = vld [vmem:[%s12030_s4 + $0x20] ss:$12 sps:$4 sm:$0xff]  }
 0x459   :  { %v9260_v0 = vpop.eup %9259 }
 0x45a   :  { %v2509_v2 = vadd.f32 1.0, %v9260_v0  ;;  %v9262_v22 = vpop.eup %9261 }
 0x45b   :  { %v2516_v13 = vadd.f32 1.0, %v9262_v22 }
 0x45c   :  { %9263 = vrcp.f32 %v2509_v2  ;;  %v7386_v2 = vld [vmem:[%s12032_s0 + $0x2c] sm:$0xf] }
 0x45d   :  { %9265 = vrcp.f32 %v2516_v13  ;;  %v3050_v7 = vunpack.c.l.bf16 %v7386_v2  ;;  %v9004_v2 = vld [vmem:[%s12028_s2 + $0x128] ss:$12 sps:$4 sm:$0xff]  }
 0x466   :  { %v9264_v26 = vpop.eup %9263 }
 0x467   :  { %v2519_v41 = vmul.f32 %v9264_v26, %v2214_v20  ;;  %v9266_v62 = vpop.eup %9265 }
 0x468   :  { %v2522_v3 = vsub.f32 1.0, %v9266_v62  ;;  %v2524_v15 = vmul.f32 %v9266_v62, %v10350_v17  ;;  %v10818_v62 = vld [vmem:[%s12028_s2 + $0xc4] ss:$12 sps:$4 sm:$0xff]  }
 0x469   :  { %v2520_v23 = vadd.f32 %v2519_v41, %v2500_v45  ;;  %v10704_v45 = vld [vmem:[%s12028_s2 + $0x18] ss:$12 sps:$4 sm:$0xff]   ;;  %v8960_v41 = vld [vmem:[%s12028_s2 + $0x20] ss:$12 sps:$4 sm:$0xff]  }
 0x46a   :  { %v2739_v51 = vpop.f32.mrb[24].mxu0  ;;  %v2780_v28 = vpop.f32.mrb[36].mxu1 }
 0x46b   :  { %9267 = vtanh.f32 %v2520_v23  ;;  %v2740_v29 = vadd.f32 %v2739_v51, %v2565_v43  ;;  %v2741_v31 = vpop.f32.mrb[25].mxu0  ;;  %v8316_v32 = vpop.f32.mrb[37].mxu1  ;;  %v10714_v43 = vld [vmem:[%s12028_s2 + $0x34] ss:$12 sps:$4 sm:$0xff]   ;;  %v8964_v23 = vld [vmem:[%s12028_s2 + $0x38] ss:$12 sps:$4 sm:$0xff]  }
 0x46c   :  { %v2742_v34 = vadd.f32 %v2741_v31, %v2569_v46  ;;  %v2743_v37 = vpop.f32.mrb[26].mxu0  ;;  %v2783_v38 = vpop.f32.mrb[38].mxu1  ;;  %v10723_v46 = vld [vmem:[%s12028_s2 + $0x30] ss:$12 sps:$4 sm:$0xff]   ;;  %v10739_v51 = vld [vmem:[%s12028_s2 + $0x48] ss:$12 sps:$4 sm:$0xff]  }
 0x46d   :  { %v3051_v42 = vadd.f32 %v3048_v50, %v2740_v29  ;;  %v2744_v48 = vpop.f32.mrb[27].mxu0  ;;  %v8317_v56 = vpop.f32.mrb[39].mxu1  ;;  %v10733_v50 = vld [vmem:[%s12028_s2 + $0x4c] ss:$12 sps:$4 sm:$0xff]   ;;  %v10749_v29 = vld [vmem:[%s12028_s2 + $0x64] ss:$12 sps:$4 sm:$0xff]  }
 0x46e   :  { %v3058_v54 = vadd.f32 %v3049_v35, %v2742_v34  ;;  %v10755_v31 = vld [vmem:[%s12028_s2 + $0x60] ss:$12 sps:$4 sm:$0xff]   ;;  %v8972_v32 = vld [vmem:[%s12028_s2 + $0x68] ss:$12 sps:$4 sm:$0xff]   ;;  %v10771_v35 = vld [vmem:[%s12028_s2 + $0x78] ss:$12 sps:$4 sm:$0xff]  }
 0x46f   :  { %v7387_v59 = vmul.f32 -1.442695, %v3051_v42  ;;  %v10765_v34 = vld [vmem:[%s12028_s2 + $0x7c] ss:$12 sps:$4 sm:$0xff]   ;;  %v8976_v37 = vld [vmem:[%s12028_s2 + $0x80] ss:$12 sps:$4 sm:$0xff]  }
 0x470   :  { %v7388_v6 = vmul.f32 -1.442695, %v3058_v54  ;;  %v10781_v38 = vld [vmem:[%s12028_s2 + $0x94] ss:$12 sps:$4 sm:$0xff]   ;;  %v10787_v42 = vld [vmem:[%s12028_s2 + $0x90] ss:$12 sps:$4 sm:$0xff]  }
 0x471   :  { %9269 = vpow2.f32 %v7387_v59  ;;  %v8980_v48 = vld [vmem:[%s12028_s2 + $0x98] ss:$12 sps:$4 sm:$0xff]   ;;  %v10803_v59 = vld [vmem:[%s12028_s2 + $0xa8] ss:$12 sps:$4 sm:$0xff]   ;;  %v8984_v54 = vld [vmem:[%s12028_s2 + $0xb0] ss:$12 sps:$4 sm:$0xff]  }
 0x472   :  { %9271 = vpow2.f32 %v7388_v6  ;;  %v10797_v56 = vld [vmem:[%s12028_s2 + $0xac] ss:$12 sps:$4 sm:$0xff]   ;;  %v8988_v6 = vld [vmem:[%s12028_s2 + $0xc8] ss:$12 sps:$4 sm:$0xff]  }
 0x475   :  { %v9268_v60 = vpop.eup %9267 }
 0x476   :  { %v2523_v9 = vmul.f32 %v9268_v60, %v2522_v3  ;;  %v10823_v3 = vld [vmem:[%s12028_s2 + $0xc0] ss:$12 sps:$4 sm:$0xff]   ;;  %v10833_v60 = vld [vmem:[%s12028_s2 + $0xdc] ss:$12 sps:$4 sm:$0xff]  }
 0x478   :  { %v10617_v61 = vadd.f32 %v2524_v15, %v2523_v9  ;;  %v10839_v9 = vld [vmem:[%s12028_s2 + $0xd8] ss:$12 sps:$4 sm:$0xff]   ;;  %v8992_v15 = vld [vmem:[%s12028_s2 + $0xe0] ss:$12 sps:$4 sm:$0xff]  }
 0x47a   :  { %12054 = vst [vmem:[#allocation6_spill] sm:$0xff] %v10617_v61  ;;  %v2786_v44 = vpack.c.bf16 %v10617_v61, %v10617_v61 }
 0x47b   :  { %v9270_v33 = vpop.eup %9269 }
 0x47c   :  { %v3055_v36 = vadd.f32 1.0, %v9270_v33  ;;  %2997 = vmatmul.mubr.bf16.vlgmr.msra.gmra.mrb[28].mxu0 %v2786_v44  ;;  %8335 = vmatmul.mubr.bf16.vlgmr.msra.gmra.mrb[40].mxu1 %v2786_v44  ;;  %v9272_v0 = vpop.eup %9271  ;;  %v10855_v44 = vld [vmem:[%s12028_s2 + $0xf0] ss:$12 sps:$4 sm:$0xff]   ;;  %v8996_v33 = vld [vmem:[%s12028_s2 + $0xf8] ss:$12 sps:$4 sm:$0xff]  }
 0x47d   :  { %3251 = vmatpush1.bf16.msra.mxu0 %v10355_v53  ;;  %8339 = vmatpush3.bf16.msra.mxu1 %v8945_v63  ;;  %v8947_v53 = vld [vmem:[%s12030_s4 + $0x38] ss:$12 sps:$4 sm:$0xff]   ;;  %v3062_v22 = vadd.f32 1.0, %v9272_v0  ;;  %v10849_v63 = vld [vmem:[%s12028_s2 + $0xf4] ss:$12 sps:$4 sm:$0xff]  }
 0x47e   :  { %9273 = vrcp.f32 %v3055_v36  ;;  %3252 = vmatprep.subr.bf16.mxu0 %v10365_v55  ;;  %8340 = vmatprep.subr.bf16.mxu1 %v12043_v1  ;;  %v2573_v55 = vrot.slane %v10607_v14, %v9804_v52  ;;  %v10865_v36 = vld [vmem:[%s12028_s2 + $0x10c] ss:$12 sps:$4 sm:$0xff]   ;;  %v10881_v0 = vld [vmem:[%s12028_s2 + $0x124] ss:$12 sps:$4 sm:$0xff]  }
 0x47f   :  { %3282 = vmatprep.mubr.bf16.mxu0 %v12053_v16  ;;  %8354 = vmatprep.mubr.msk.bf16.mxu1 %vm9396_vm0, %v12043_v1  ;;  %9275 = vrcp.f32 %v3062_v22  ;;  %v10897_v22 = vld [vmem:[%s12028_s2 + $0x13c] ss:$12 sps:$4 sm:$0xff]  }
 0x481   :  { %3253 = vmatpush1.bf16.msra.mxu0 %v10371_v58  ;;  %8341 = vmatpush3.bf16.msra.mxu1 %v8946_v10  ;;  %v8948_v58 = vld [vmem:[%s12030_s4 + $0x50] ss:$12 sps:$4 sm:$0xff]   ;;  %v10871_v10 = vld [vmem:[%s12028_s2 + $0x108] ss:$12 sps:$4 sm:$0xff]  }
 0x482   :  { %3254 = vmatprep.subr.bf16.mxu0 %v10381_v12  ;;  %8342 = vmatprep.subr.bf16.mxu1 %v12043_v1  ;;  %v2781_v12 = vadd.f32 %v2780_v28, %v2573_v55  ;;  %v8968_v28 = vld [vmem:[%s12028_s2 + $0x50] ss:$12 sps:$4 sm:$0xff]   ;;  %v10887_v55 = vld [vmem:[%s12028_s2 + $0x120] ss:$12 sps:$4 sm:$0xff]  }
 0x485   :  { %3255 = vmatpush1.bf16.msra.mxu0 %v10390_v4  ;;  %8343 = vmatpush3.bf16.msra.mxu1 %v8947_v53  ;;  %v8949_v4 = vld [vmem:[%s12030_s4 + $0x68] ss:$12 sps:$4 sm:$0xff]   ;;  %v9000_v53 = vld [vmem:[%s12028_s2 + $0x110] ss:$12 sps:$4 sm:$0xff]  }
 0x486   :  { %3256 = vmatprep.subr.bf16.mxu0 %v10400_v8  ;;  %8344 = vmatprep.subr.bf16.mxu1 %v12043_v1  ;;  %v8950_v8 = vld [vmem:[%s12030_s4 + $0x80] ss:$12 sps:$4 sm:$0xff]  }
 0x488   :  { %v9274_v11 = vpop.eup %9273 }
 0x489   :  { %v3065_v13 = vmul.f32 %v9274_v11, %v2781_v12  ;;  %3257 = vmatpush1.bf16.msra.mxu0 %v10411_v40  ;;  %8345 = vmatpush3.bf16.msra.mxu1 %v8948_v58  ;;  %v8951_v40 = vld [vmem:[%s12030_s4 + $0x98] ss:$12 sps:$4 sm:$0xff]   ;;  %v9008_v12 = vld [vmem:[%s12028_s2 + $0x140] ss:$12 sps:$4 sm:$0xff]   ;;  %v10919_v11 = vld [vmem:[%s12028_s2 + $0x150] ss:$12 sps:$4 sm:$0xff]  }
 0x48a   :  { %3258 = vmatprep.subr.bf16.mxu0 %v10421_v25  ;;  %8346 = vmatprep.subr.bf16.mxu1 %v12043_v1  ;;  %v9276_v25 = vpop.eup %9275  ;;  %v10903_v58 = vld [vmem:[%s12028_s2 + $0x138] ss:$12 sps:$4 sm:$0xff]  }
 0x48b   :  { %v3066_v14 = vadd.f32 %v3065_v13, %v3050_v7  ;;  %v3070_v26 = vmul.f32 %v9276_v25, %v10486_v47  ;;  %v10913_v7 = vld [vmem:[%s12028_s2 + $0x154] ss:$12 sps:$4 sm:$0xff]   ;;  %v9012_v13 = vld [vmem:[%s12028_s2 + $0x158] ss:$12 sps:$4 sm:$0xff]  }
 0x48d   :  { %9277 = vtanh.f32 %v3066_v14  ;;  %3259 = vmatpush1.bf16.msra.mxu0 %v10427_v39  ;;  %8347 = vmatpush3.bf16.msra.mxu1 %v8949_v4  ;;  %v8952_v39 = vld [vmem:[%s12030_s4 + $0xb0] ss:$12 sps:$4 sm:$0xff]   ;;  %v10929_v4 = vld [vmem:[%s12028_s2 + $0x16c] ss:$12 sps:$4 sm:$0xff]   ;;  %v10935_v14 = vld [vmem:[%s12028_s2 + $0x168] ss:$12 sps:$4 sm:$0xff]  }
 0x48e   :  { %3260 = vmatprep.subr.bf16.mxu0 %v10437_v49  ;;  %8348 = vmatprep.subr.bf16.mxu1 %v12043_v1  ;;  %v10677_v49 = vld [vmem:[%s12028_s2 + $0x4] ss:$12 sps:$4 sm:$0xff]  }
 0x491   :  { %3261 = vmatpush1.bf16.msra.mxu0 %v10443_v57  ;;  %8349 = vmatpush3.bf16.msra.mxu1 %v8950_v8  ;;  %v3068_v57 = vsub.f32 1.0, %v9276_v25  ;;  %v9016_v8 = vld [vmem:[%s12028_s2 + $0x170] ss:$12 sps:$4 sm:$0xff]  }
 0x492   :  { %3262 = vmatprep.subr.bf16.mxu0 %v10453_v5  ;;  %8350 = vmatprep.subr.bf16.mxu1 %v12043_v1 }
 0x495   :  { %3263 = vmatpush1.bf16.msra.mxu0 %v10459_v18  ;;  %8351 = vmatpush3.bf16.msra.mxu1 %v8951_v40  ;;  %v10945_v40 = vld [vmem:[%s12030_s4 + $0x4] ss:$12 sps:$4 sm:$0xff]  }
 0x496   :  { %3264 = vmatprep.subr.bf16.mxu0 %v10469_v24  ;;  %8352 = vmatprep.subr.bf16.mxu1 %v12043_v1  ;;  %v10688_v24 = vld [vmem:[%s12028_s2] ss:$12 sps:$4 sm:$0xff]  }
 0x497   :  { %v9278_v5 = vpop.eup %9277 }
 0x498   :  { %v3069_v20 = vmul.f32 %v9278_v5, %v3068_v57 }
 0x499   :  { %3265 = vmatpush1.bf16.msra.mxu0 %v10475_v30  ;;  %8353 = vmatpush3.bf16.msra.mxu1 %v8952_v39  ;;  %v10698_v30 = vld [vmem:[%s12028_s2 + $0x1c] ss:$12 sps:$4 sm:$0xff]  }
 0x49a   :  { %3531 = vmatprep.subr.bf16.mxu0 %v10677_v49  ;;  %8358 = vmatprep.subr.bf16.mxu1 %v12043_v1  ;;  %v10683_v18 = vadd.f32 %v3070_v26, %v3069_v20  ;;  %v3105_v20 = vld [vmem:[%s12033_s5] sm:$0x7]  ;;  %v7360_v26 = vld [vmem:[%s12031_s3 + $0x3] sm:$0x7] }
 0x49c   :  { %v3072_v47 = vpack.c.bf16 %v10683_v18, %v10683_v18 }
 0x49e   :  { %3283 = vmatmul.mubr.bf16.vlgmr.msra.gmra.mrb[28].mxu0 %v3072_v47  ;;  %8355 = vmatmul.mubr.bf16.vlgmr.msra.gmra.mrb[44].mxu1 %v3072_v47 }
 0x49f   :  { %3532 = vmatpush1.bf16.msra.mxu0 %v10688_v24  ;;  %8359 = vmatpush3.bf16.msra.mxu1 %v8956_v27  ;;  %v2824_v27 = vrot.slane %v7360_v26, %v9792_v19 }
 0x4a0   :  { %3533 = vmatprep.subr.bf16.mxu0 %v10698_v30  ;;  %8360 = vmatprep.subr.bf16.mxu1 %v12043_v1 }
 0x4a1   :  { %3563 = vmatprep.mubr.bf16.mxu0 %v12053_v16  ;;  %8374 = vmatprep.mubr.msk.bf16.mxu1 %vm9396_vm0, %v12043_v1 }
 0x4a3   :  { %3534 = vmatpush1.bf16.msra.mxu0 %v10704_v45  ;;  %8361 = vmatpush3.bf16.msra.mxu1 %v8960_v41  ;;  %v2828_v41 = vrot.slane %v7360_v26, %v9797_v21 }
 0x4a4   :  { %3535 = vmatprep.subr.bf16.mxu0 %v10714_v43  ;;  %8362 = vmatprep.subr.bf16.mxu1 %v12043_v1 }
 0x4a7   :  { %3536 = vmatpush1.bf16.msra.mxu0 %v10723_v46  ;;  %8363 = vmatpush3.bf16.msra.mxu1 %v8964_v23  ;;  %v3114_v23 = vrot.slane %v3105_v20, %v9797_v21 }
 0x4a8   :  { %3537 = vmatprep.subr.bf16.mxu0 %v10733_v50  ;;  %8364 = vmatprep.subr.bf16.mxu1 %v12043_v1 }
 0x4ab   :  { %3538 = vmatpush1.bf16.msra.mxu0 %v10739_v51  ;;  %8365 = vmatpush3.bf16.msra.mxu1 %v8968_v28 }
 0x4ac   :  { %3539 = vmatprep.subr.bf16.mxu0 %v10749_v29  ;;  %8366 = vmatprep.subr.bf16.mxu1 %v12043_v1 }
 0x4af   :  { %3540 = vmatpush1.bf16.msra.mxu0 %v10755_v31  ;;  %8367 = vmatpush3.bf16.msra.mxu1 %v8972_v32 }
 0x4b0   :  { %3541 = vmatprep.subr.bf16.mxu0 %v10765_v34  ;;  %8368 = vmatprep.subr.bf16.mxu1 %v12043_v1 }
 0x4b3   :  { %3542 = vmatpush1.bf16.msra.mxu0 %v10771_v35  ;;  %8369 = vmatpush3.bf16.msra.mxu1 %v8976_v37 }
 0x4b4   :  { %3543 = vmatprep.subr.bf16.mxu0 %v10781_v38  ;;  %8370 = vmatprep.subr.bf16.mxu1 %v12043_v1 }
 0x4b7   :  { %3544 = vmatpush1.bf16.msra.mxu0 %v10787_v42  ;;  %8371 = vmatpush3.bf16.msra.mxu1 %v8980_v48  ;;  %v8660_v48 = vadd.f32 %v3114_v23, %v2828_v41  ;;  %v10964_v23 = vld [vmem:[%s12031_s3] sm:$0x7] }
 0x4b8   :  { %3545 = vmatprep.subr.bf16.mxu0 %v10797_v56  ;;  %8372 = vmatprep.subr.bf16.mxu1 %v12043_v1 }
 0x4bb   :  { %3546 = vmatpush1.bf16.msra.mxu0 %v10803_v59  ;;  %8373 = vmatpush3.bf16.msra.mxu1 %v8984_v54 }
 0x4bc   :  { %8378 = vmatprep.subr.bf16.mxu1 %v12043_v1  ;;  %3790 = vmatprep.subr.bf16.mxu0 %v10818_v62 }
 0x4be   :  { %3564 = vmatmul.mubr.bf16.vlgmr.msra.gmra.mrb[32].mxu0 %v3072_v47  ;;  %8375 = vmatmul.mubr.bf16.vlgmr.msra.gmra.mrb[48].mxu1 %v3072_v47  ;;  %v3110_v47 = vrot.slane %v3105_v20, %v9792_v19 }
 0x4bf   :  { %3822 = vmatprep.mubr.bf16.mxu0 %v12053_v16  ;;  %8394 = vmatprep.mubr.msk.bf16.mxu1 %vm9396_vm0, %v12043_v1 }
 0x4c0   :  { %3791 = vmatpush1.bf16.msra.mxu0 %v10823_v3  ;;  %8379 = vmatpush3.bf16.msra.mxu1 %v8988_v6  ;;  %v8658_v28 = vadd.f32 %v3110_v47, %v2824_v27  ;;  %v2832_v27 = vrot.slane %v7360_v26, %v9804_v52  ;;  %v3118_v47 = vrot.slane %v3105_v20, %v9804_v52 }
 0x4c1   :  { %8380 = vmatprep.subr.bf16.mxu1 %v12043_v1  ;;  %3792 = vmatprep.subr.bf16.mxu0 %v10833_v60  ;;  %v3391_v26 = vrot.slane %v10964_v23, %v9792_v19 }
 0x4c4   :  { %3793 = vmatpush1.bf16.msra.mxu0 %v10839_v9  ;;  %8381 = vmatpush3.bf16.msra.mxu1 %v8992_v15 }
 0x4c5   :  { %8382 = vmatprep.subr.bf16.mxu1 %v12043_v1  ;;  %3794 = vmatprep.subr.bf16.mxu0 %v10849_v63 }
 0x4c8   :  { %3795 = vmatpush1.bf16.msra.mxu0 %v10855_v44  ;;  %8383 = vmatpush3.bf16.msra.mxu1 %v8996_v33 }
 0x4c9   :  { %8384 = vmatprep.subr.bf16.mxu1 %v12043_v1  ;;  %3796 = vmatprep.subr.bf16.mxu0 %v10865_v36 }
 0x4cc   :  { %3797 = vmatpush1.bf16.msra.mxu0 %v10871_v10  ;;  %8385 = vmatpush3.bf16.msra.mxu1 %v9000_v53 }
 0x4cd   :  { %8386 = vmatprep.subr.bf16.mxu1 %v12043_v1  ;;  %3798 = vmatprep.subr.bf16.mxu0 %v10881_v0 }
 0x4d0   :  { %3799 = vmatpush1.bf16.msra.mxu0 %v10887_v55  ;;  %8387 = vmatpush3.bf16.msra.mxu1 %v9004_v2 }
 0x4d1   :  { %8388 = vmatprep.subr.bf16.mxu1 %v12043_v1  ;;  %3800 = vmatprep.subr.bf16.mxu0 %v10897_v22 }
 0x4d4   :  { %3801 = vmatpush1.bf16.msra.mxu0 %v10903_v58  ;;  %8389 = vmatpush3.bf16.msra.mxu1 %v9008_v12 }
 0x4d5   :  { %8390 = vmatprep.subr.bf16.mxu1 %v12043_v1  ;;  %3802 = vmatprep.subr.bf16.mxu0 %v10913_v7 }
 0x4d8   :  { %3803 = vmatpush1.bf16.msra.mxu0 %v10919_v11  ;;  %8391 = vmatpush3.bf16.msra.mxu1 %v9012_v13 }
 0x4d9   :  { %8392 = vmatprep.subr.bf16.mxu1 %v12043_v1  ;;  %3804 = vmatprep.subr.bf16.mxu0 %v10929_v4 }
 0x4dc   :  { %3805 = vmatpush1.bf16.msra.mxu0 %v10935_v14  ;;  %8393 = vmatpush3.bf16.msra.mxu1 %v9016_v8 }
 0x4dd   :  { %8398 = vmatprep.subr.bf16.mxu1 %v12043_v1  ;;  %4076 = vmatprep.subr.bf16.mxu0 %v10945_v40 }
 0x54f   :  { %v3039_v25 = vpop.f32.mrb[40].mxu1 }
 0x550   :  { %v8336_v39 = vpop.f32.mrb[41].mxu1 }
 0x551   :  { %v3042_v57 = vpop.f32.mrb[42].mxu1 }
 0x552   :  { %v8337_v5 = vpop.f32.mrb[43].mxu1 }
 0x571   :  { %v3284_v32 = vpop.f32.mrb[28].mxu0  ;;  %v3325_v37 = vpop.f32.mrb[44].mxu1 }
 0x572   :  { %v8659_v54 = vadd.f32 %v8658_v28, %v3284_v32  ;;  %v3286_v6 = vpop.f32.mrb[29].mxu0  ;;  %v8356_v15 = vpop.f32.mrb[45].mxu1  ;;  %v3040_v28 = vadd.f32 %v3039_v25, %v2832_v27 }
 0x573   :  { %v3288_v33 = vpop.f32.mrb[30].mxu0  ;;  %v3328_v53 = vpop.f32.mrb[46].mxu1  ;;  %v8661_v8 = vadd.f32 %v8660_v48, %v3286_v6  ;;  %v7496_v48 = vld [vmem:[%s12032_s0 + $0x30] sm:$0xff] }
 0x574   :  { %v7413_v2 = vmul.f32 -1.442695, %v8659_v54  ;;  %v3289_v12 = vpop.f32.mrb[31].mxu0  ;;  %v8357_v13 = vpop.f32.mrb[47].mxu1  ;;  %v3326_v54 = vadd.f32 %v3325_v37, %v3118_v47  ;;  %v3874_v15 = vunpack.c.l.bf16 %v7496_v48 }
 0x575   :  { %v7414_v39 = vmul.f32 -1.442695, %v8661_v8  ;;  %v3875_v8 = vunpack.c.h.bf16 %v7496_v48  ;;  %v10979_v48 = vld [vmem:[%s12030_s4] ss:$12 sps:$4 sm:$0xff]  }
 0x576   :  { %9279 = vpow2.f32 %v7413_v2 }
 0x577   :  { %9281 = vpow2.f32 %v7414_v39 }
 0x580   :  { %v9280_v57 = vpop.eup %9279 }
 0x581   :  { %v3335_v5 = vadd.f32 1.0, %v9280_v57  ;;  %v9282_v1 = vpop.eup %9281 }
 0x582   :  { %v3342_v41 = vadd.f32 1.0, %v9282_v1  ;;  %v3395_v1 = vrot.slane %v10964_v23, %v9797_v21 }
 0x583   :  { %9283 = vrcp.f32 %v3335_v5 }
 0x584   :  { %9285 = vrcp.f32 %v3342_v41 }
 0x58d   :  { %v9284_v32 = vpop.eup %9283 }
 0x58e   :  { %v3345_v6 = vmul.f32 %v9284_v32, %v3040_v28  ;;  %v9286_v28 = vpop.eup %9285 }
 0x58f   :  { %v3348_v32 = vsub.f32 1.0, %v9286_v28 }
 0x590   :  { %v3346_v20 = vadd.f32 %v3345_v6, %v3326_v54 }
 0x591   :  { %v3565_v33 = vpop.f32.mrb[32].mxu0  ;;  %v3606_v53 = vpop.f32.mrb[48].mxu1 }
 0x592   :  { %9287 = vtanh.f32 %v3346_v20  ;;  %v3566_v25 = vadd.f32 %v3565_v33, %v3391_v26  ;;  %v3567_v2 = vpop.f32.mrb[33].mxu0  ;;  %v8376_v12 = vpop.f32.mrb[49].mxu1  ;;  %v3350_v20 = vmul.f32 %v9286_v28, %v10617_v61  ;;  %v10989_v33 = vld [vmem:[%s12030_s4 + $0x1c] ss:$12 sps:$4 sm:$0xff]  }
 0x593   :  { %v3568_v13 = vadd.f32 %v3567_v2, %v3395_v1  ;;  %v3569_v39 = vpop.f32.mrb[34].mxu0  ;;  %v3609_v37 = vpop.f32.mrb[50].mxu1  ;;  %v9020_v1 = vld [vmem:[%s12030_s4 + $0x8] ss:$12 sps:$4 sm:$0xff]   ;;  %v10995_v2 = vld [vmem:[%s12030_s4 + $0x18] ss:$12 sps:$4 sm:$0xff]  }
 0x594   :  { %v3877_v57 = vadd.f32 %v3874_v15, %v3566_v25  ;;  %v3570_v5 = vpop.f32.mrb[35].mxu0  ;;  %v8377_v27 = vpop.f32.mrb[51].mxu1  ;;  %v9024_v12 = vld [vmem:[%s12030_s4 + $0x20] ss:$12 sps:$4 sm:$0xff]   ;;  %v11014_v39 = vld [vmem:[%s12030_s4 + $0x30] ss:$12 sps:$4 sm:$0xff]  }
 0x595   :  { %v3884_v41 = vadd.f32 %v3875_v8, %v3568_v13  ;;  %v12056_v13 = vmov 0.0   ;;  %v11005_v8 = vld [vmem:[%s12030_s4 + $0x34] ss:$12 sps:$4 sm:$0xff]   ;;  %v9028_v37 = vld [vmem:[%s12030_s4 + $0x38] ss:$12 sps:$4 sm:$0xff]   ;;  %v3399_v27 = vrot.slane %v10964_v23, %v9804_v52 }
 0x596   :  { %v7498_v47 = vmul.f32 -1.442695, %v3877_v57  ;;  %v11024_v5 = vld [vmem:[%s12030_s4 + $0x4c] ss:$12 sps:$4 sm:$0xff]   ;;  %v11035_v28 = vld [vmem:[%s12030_s4 + $0x48] ss:$12 sps:$4 sm:$0xff]  }
 0x597   :  { %v7499_v54 = vmul.f32 -1.442695, %v3884_v41  ;;  %v11045_v23 = vld [vmem:[%s12030_s4 + $0x64] ss:$12 sps:$4 sm:$0xff]  }
 0x598   :  { %9289 = vpow2.f32 %v7498_v47  ;;  %v7497_v47 = vld [vmem:[%s12032_s0 + $0x38] sm:$0xf] }
 0x599   :  { %9291 = vpow2.f32 %v7499_v54  ;;  %v3607_v54 = vadd.f32 %v3606_v53, %v3399_v27  ;;  %v11061_v53 = vld [vmem:[%s12030_s4 + $0x7c] ss:$12 sps:$4 sm:$0xff]  }
 0x59a   :  { %v11083_v27 = vld [vmem:[%s12030_s4 + $0x90] ss:$12 sps:$4 sm:$0xff]  }
 0x59c   :  { %v9288_v6 = vpop.eup %9287 }
 0x59d   :  { %v3349_v17 = vmul.f32 %v9288_v6, %v3348_v32  ;;  %v9032_v32 = vld [vmem:[%s12030_s4 + $0x50] ss:$12 sps:$4 sm:$0xff]   ;;  %v3876_v6 = vunpack.c.l.bf16 %v7497_v47  ;;  %v9044_v47 = vld [vmem:[%s12030_s4 + $0x98] ss:$12 sps:$4 sm:$0xff]  }
 0x59f   :  { %v10974_v26 = vadd.f32 %v3350_v20, %v3349_v17 }
 0x5a1   :  { %12055 = vst [vmem:[#allocation7_spill] sm:$0xff] %v10974_v26  ;;  %v3612_v15 = vpack.c.bf16 %v10974_v26, %v10974_v26 }
 0x5a2   :  { %v9290_v25 = vpop.eup %9289 }
 0x5a3   :  { %v3881_v17 = vadd.f32 1.0, %v9290_v25  ;;  %3823 = vmatmul.mubr.bf16.vlgmr.msra.gmra.mrb[36].mxu0 %v3612_v15  ;;  %8395 = vmatmul.mubr.bf16.vlgmr.msra.gmra.mrb[52].mxu1 %v3612_v15  ;;  %v9292_v57 = vpop.eup %9291  ;;  %v11051_v15 = vld [vmem:[%s12030_s4 + $0x60] ss:$12 sps:$4 sm:$0xff]   ;;  %v9036_v25 = vld [vmem:[%s12030_s4 + $0x68] ss:$12 sps:$4 sm:$0xff]  }
 0x5a4   :  { %4077 = vmatpush1.bf16.msra.mxu0 %v10979_v48  ;;  %8399 = vmatpush3.bf16.msra.mxu1 %v9020_v1  ;;  %v3888_v41 = vadd.f32 1.0, %v9292_v57  ;;  %v11077_v57 = vld [vmem:[%s12030_s4 + $0x94] ss:$12 sps:$4 sm:$0xff]  }
 0x5a5   :  { %9293 = vrcp.f32 %v3881_v17  ;;  %4078 = vmatprep.subr.bf16.mxu0 %v10989_v33  ;;  %8400 = vmatprep.subr.bf16.mxu1 %v12056_v13 }
 0x5a6   :  { %4108 = vmatprep.mubr.bf16.mxu0 %v12053_v16  ;;  %8414 = vmatprep.mubr.msk.bf16.mxu1 %vm9396_vm0, %v12056_v13  ;;  %9295 = vrcp.f32 %v3888_v41  ;;  %v11093_v41 = vld [vmem:[%s12030_s4 + $0xac] ss:$12 sps:$4 sm:$0xff]  }
 0x5a8   :  { %4079 = vmatpush1.bf16.msra.mxu0 %v10995_v2  ;;  %8401 = vmatpush3.bf16.msra.mxu1 %v9024_v12  ;;  %v11067_v12 = vld [vmem:[%s12030_s4 + $0x78] ss:$12 sps:$4 sm:$0xff]  }
 0x5a9   :  { %4080 = vmatprep.subr.bf16.mxu0 %v11005_v8  ;;  %8402 = vmatprep.subr.bf16.mxu1 %v12056_v13 }
 0x5ac   :  { %4081 = vmatpush1.bf16.msra.mxu0 %v11014_v39  ;;  %8403 = vmatpush3.bf16.msra.mxu1 %v9028_v37  ;;  %v9040_v37 = vld [vmem:[%s12030_s4 + $0x80] ss:$12 sps:$4 sm:$0xff]  }
 0x5ad   :  { %4082 = vmatprep.subr.bf16.mxu0 %v11024_v5  ;;  %8404 = vmatprep.subr.bf16.mxu1 %v12056_v13 }
 0x5af   :  { %v9294_v20 = vpop.eup %9293 }
 0x5b0   :  { %v3891_v1 = vmul.f32 %v9294_v20, %v3607_v54  ;;  %4083 = vmatpush1.bf16.msra.mxu0 %v11035_v28  ;;  %8405 = vmatpush3.bf16.msra.mxu1 %v9032_v32  ;;  %v9296_v32 = vpop.eup %9295  ;;  %v11099_v54 = vld [vmem:[%s12030_s4 + $0xa8] ss:$12 sps:$4 sm:$0xff]  }
 0x5b1   :  { %4084 = vmatprep.subr.bf16.mxu0 %v11045_v23  ;;  %8406 = vmatprep.subr.bf16.mxu1 %v12056_v13  ;;  %v3894_v20 = vsub.f32 1.0, %v9296_v32 }
 0x5b2   :  { %v3892_v17 = vadd.f32 %v3891_v1, %v3876_v6  ;;  %v9048_v6 = vld [vmem:[%s12030_s4 + $0xb0] ss:$12 sps:$4 sm:$0xff]  }
 0x5b4   :  { %9297 = vtanh.f32 %v3892_v17  ;;  %4085 = vmatpush1.bf16.msra.mxu0 %v11051_v15  ;;  %8407 = vmatpush3.bf16.msra.mxu1 %v9036_v25  ;;  %v3896_v17 = vmul.f32 %v9296_v32, %v10683_v18  ;;  %v9051_v18 = vld [vmem:[%s12028_s2 + $0x38] ss:$12 sps:$4 sm:$0xff]  }
 0x5b5   :  { %4086 = vmatprep.subr.bf16.mxu0 %v11061_v53  ;;  %8408 = vmatprep.subr.bf16.mxu1 %v12056_v13 }
 0x5b8   :  { %4087 = vmatpush1.bf16.msra.mxu0 %v11067_v12  ;;  %8409 = vmatpush3.bf16.msra.mxu1 %v9040_v37 }
 0x5b9   :  { %4088 = vmatprep.subr.bf16.mxu0 %v11077_v57  ;;  %8410 = vmatprep.subr.bf16.mxu1 %v12056_v13 }
 0x5bc   :  { %4089 = vmatpush1.bf16.msra.mxu0 %v11083_v27  ;;  %8411 = vmatpush3.bf16.msra.mxu1 %v9044_v47  ;;  %v9049_v47 = vld [vmem:[%s12028_s2 + $0x8] ss:$12 sps:$4 sm:$0xff]  }
 0x5bd   :  { %4090 = vmatprep.subr.bf16.mxu0 %v11093_v41  ;;  %8412 = vmatprep.subr.bf16.mxu1 %v12056_v13 }
 0x5be   :  { %v9298_v1 = vpop.eup %9297 }
 0x5bf   :  { %v3895_v25 = vmul.f32 %v9298_v1, %v3894_v20 }
 0x5c0   :  { %4091 = vmatpush1.bf16.msra.mxu0 %v11099_v54  ;;  %8413 = vmatpush3.bf16.msra.mxu1 %v9048_v6 }
 0x5c1   :  { %4357 = vmatprep.subr.bf16.mxu0 %v10677_v49  ;;  %8418 = vmatprep.subr.bf16.mxu1 %v12056_v13  ;;  %v11110_v37 = vadd.f32 %v3896_v17, %v3895_v25  ;;  %v9050_v49 = vld [vmem:[%s12028_s2 + $0x20] ss:$12 sps:$4 sm:$0xff]  }
 0x5c3   :  { %v3898_v61 = vpack.c.bf16 %v11110_v37, %v11110_v37 }
 0x5c5   :  { %4109 = vmatmul.mubr.bf16.vlgmr.msra.gmra.mrb[36].mxu0 %v3898_v61  ;;  %8415 = vmatmul.mubr.bf16.vlgmr.msra.gmra.mrb[56].mxu1 %v3898_v61 }
 0x5c6   :  { %4358 = vmatpush1.bf16.msra.mxu0 %v10688_v24  ;;  %8419 = vmatpush3.bf16.msra.mxu1 %v9049_v47  ;;  %v9052_v24 = vld [vmem:[%s12028_s2 + $0x50] ss:$12 sps:$4 sm:$0xff]  }
 0x5c7   :  { %4359 = vmatprep.subr.bf16.mxu0 %v10698_v30  ;;  %8420 = vmatprep.subr.bf16.mxu1 %v12056_v13  ;;  %v9053_v30 = vld [vmem:[%s12028_s2 + $0x68] ss:$12 sps:$4 sm:$0xff]  }
 0x5c8   :  { %4389 = vmatprep.mubr.bf16.mxu0 %v12053_v16  ;;  %8434 = vmatprep.mubr.msk.bf16.mxu1 %vm9396_vm0, %v12056_v13 }
 0x5ca   :  { %4360 = vmatpush1.bf16.msra.mxu0 %v10704_v45  ;;  %8421 = vmatpush3.bf16.msra.mxu1 %v9050_v49  ;;  %v9054_v45 = vld [vmem:[%s12028_s2 + $0x80] ss:$12 sps:$4 sm:$0xff]  }
 0x5cb   :  { %4361 = vmatprep.subr.bf16.mxu0 %v10714_v43  ;;  %8422 = vmatprep.subr.bf16.mxu1 %v12056_v13  ;;  %v9055_v43 = vld [vmem:[%s12028_s2 + $0x98] ss:$12 sps:$4 sm:$0xff]  }
 0x5ce   :  { %4362 = vmatpush1.bf16.msra.mxu0 %v10723_v46  ;;  %8423 = vmatpush3.bf16.msra.mxu1 %v9051_v18  ;;  %v9056_v46 = vld [vmem:[%s12028_s2 + $0xb0] ss:$12 sps:$4 sm:$0xff]  }
 0x5cf   :  { %4363 = vmatprep.subr.bf16.mxu0 %v10733_v50  ;;  %8424 = vmatprep.subr.bf16.mxu1 %v12056_v13  ;;  %v9058_v50 = vld [vmem:[%s12028_s2 + $0xe0] ss:$12 sps:$4 sm:$0xff]  }
 0x5d2   :  { %4364 = vmatpush1.bf16.msra.mxu0 %v10739_v51  ;;  %8425 = vmatpush3.bf16.msra.mxu1 %v9052_v24  ;;  %v9059_v51 = vld [vmem:[%s12028_s2 + $0xf8] ss:$12 sps:$4 sm:$0xff]  }
 0x5d3   :  { %4365 = vmatprep.subr.bf16.mxu0 %v10749_v29  ;;  %8426 = vmatprep.subr.bf16.mxu1 %v12056_v13  ;;  %v9060_v29 = vld [vmem:[%s12028_s2 + $0x110] ss:$12 sps:$4 sm:$0xff]  }
 0x5d6   :  { %4366 = vmatpush1.bf16.msra.mxu0 %v10755_v31  ;;  %8427 = vmatpush3.bf16.msra.mxu1 %v9053_v30  ;;  %v9061_v31 = vld [vmem:[%s12028_s2 + $0x128] ss:$12 sps:$4 sm:$0xff]   ;;  %v11231_v30 = vld [vmem:[%s12031_s3] sm:$0x7] }
 0x5d7   :  { %4367 = vmatprep.subr.bf16.mxu0 %v10765_v34  ;;  %8428 = vmatprep.subr.bf16.mxu1 %v12056_v13  ;;  %v9062_v34 = vld [vmem:[%s12028_s2 + $0x140] ss:$12 sps:$4 sm:$0xff]  }
 0x5da   :  { %4368 = vmatpush1.bf16.msra.mxu0 %v10771_v35  ;;  %8429 = vmatpush3.bf16.msra.mxu1 %v9054_v45  ;;  %v9063_v35 = vld [vmem:[%s12028_s2 + $0x158] ss:$12 sps:$4 sm:$0xff]  }
 0x5db   :  { %4369 = vmatprep.subr.bf16.mxu0 %v10781_v38  ;;  %8430 = vmatprep.subr.bf16.mxu1 %v12056_v13  ;;  %v9064_v38 = vld [vmem:[%s12028_s2 + $0x170] ss:$12 sps:$4 sm:$0xff]  }
 0x5de   :  { %4370 = vmatpush1.bf16.msra.mxu0 %v10787_v42  ;;  %8431 = vmatpush3.bf16.msra.mxu1 %v9055_v43 }
 0x5df   :  { %4371 = vmatprep.subr.bf16.mxu0 %v10797_v56  ;;  %8432 = vmatprep.subr.bf16.mxu1 %v12056_v13 }
 0x5e2   :  { %4372 = vmatpush1.bf16.msra.mxu0 %v10803_v59  ;;  %8433 = vmatpush3.bf16.msra.mxu1 %v9056_v46  ;;  %v7607_v46 = vld [vmem:[%s12032_s0 + $0x3c] sm:$0xff] }
 0x5e3   :  { %4616 = vmatprep.subr.bf16.mxu0 %v10818_v62  ;;  %8438 = vmatprep.subr.bf16.mxu1 %v12056_v13 }
 0x5e5   :  { %4390 = vmatmul.mubr.bf16.vlgmr.msra.gmra.mrb[40].mxu0 %v3898_v61  ;;  %8435 = vmatmul.mubr.bf16.vlgmr.msra.gmra.mrb[60].mxu1 %v3898_v61  ;;  %v9057_v61 = vld [vmem:[%s12028_s2 + $0xc8] ss:$12 sps:$4 sm:$0xff]  }
 0x5e6   :  { %4617 = vmatpush1.bf16.msra.mxu0 %v10823_v3  ;;  %4648 = vmatprep.mubr.bf16.mxu0 %v12053_v16  ;;  %v3931_v3 = vld [vmem:[%s12033_s5] sm:$0x7] }
 0x5e7   :  { %4618 = vmatprep.subr.bf16.mxu0 %v10833_v60  ;;  %8454 = vmatprep.mubr.msk.bf16.mxu1 %vm9396_vm0, %v12056_v13  ;;  %v7471_v60 = vld [vmem:[%s12031_s3 + $0x3] sm:$0x7]  ;;  %v3944_v18 = vrot.slane %v3931_v3, %v9804_v52 }
 0x5e8   :  { %8439 = vmatpush3.bf16.msra.mxu1 %v9057_v61  ;;  %v3658_v49 = vrot.slane %v7471_v60, %v9804_v52 }
 0x5e9   :  { %8440 = vmatprep.subr.bf16.mxu1 %v12056_v13 }
 0x5ea   :  { %4619 = vmatpush1.bf16.msra.mxu0 %v10839_v9  ;;  %v3650_v9 = vrot.slane %v7471_v60, %v9792_v19 }
 0x5eb   :  { %4620 = vmatprep.subr.bf16.mxu0 %v10849_v63  ;;  %v3936_v63 = vrot.slane %v3931_v3, %v9792_v19 }
 0x5ec   :  { %8441 = vmatpush3.bf16.msra.mxu1 %v9058_v50 }
 0x5ed   :  { %8442 = vmatprep.subr.bf16.mxu1 %v12056_v13 }
 0x5ee   :  { %4621 = vmatpush1.bf16.msra.mxu0 %v10855_v44  ;;  %v3654_v44 = vrot.slane %v7471_v60, %v9797_v21 }
 0x5ef   :  { %4622 = vmatprep.subr.bf16.mxu0 %v10865_v36  ;;  %v3940_v36 = vrot.slane %v3931_v3, %v9797_v21  ;;  %v4701_v3 = vunpack.c.h.bf16 %v7607_v46 }
 0x5f0   :  { %8443 = vmatpush3.bf16.msra.mxu1 %v9059_v51  ;;  %v4217_v51 = vrot.slane %v11231_v30, %v9792_v19 }
 0x5f1   :  { %8444 = vmatprep.subr.bf16.mxu1 %v12056_v13 }
 0x5f2   :  { %4623 = vmatpush1.bf16.msra.mxu0 %v10871_v10  ;;  %v8662_v10 = vadd.f32 %v3936_v63, %v3650_v9 }
 0x5f3   :  { %4624 = vmatprep.subr.bf16.mxu0 %v10881_v0 }
 0x5f4   :  { %8445 = vmatpush3.bf16.msra.mxu1 %v9060_v29  ;;  %v4221_v29 = vrot.slane %v11231_v30, %v9797_v21 }
 0x5f5   :  { %8446 = vmatprep.subr.bf16.mxu1 %v12056_v13 }
 0x5f6   :  { %4625 = vmatpush1.bf16.msra.mxu0 %v10887_v55 }
 0x5f7   :  { %4626 = vmatprep.subr.bf16.mxu0 %v10897_v22  ;;  %v8664_v22 = vadd.f32 %v3940_v36, %v3654_v44 }
 0x5f8   :  { %8447 = vmatpush3.bf16.msra.mxu1 %v9061_v31 }
 0x5f9   :  { %8448 = vmatprep.subr.bf16.mxu1 %v12056_v13 }
 0x5fa   :  { %4627 = vmatpush1.bf16.msra.mxu0 %v10903_v58 }
 0x5fb   :  { %4628 = vmatprep.subr.bf16.mxu0 %v10913_v7 }
 0x5fc   :  { %8449 = vmatpush3.bf16.msra.mxu1 %v9062_v34  ;;  %v4700_v34 = vunpack.c.l.bf16 %v7607_v46  ;;  %v9076_v46 = vld [vmem:[%s12028_s2 + $0x8] ss:$12 sps:$4 sm:$0xff]  }
 0x5fd   :  { %8450 = vmatprep.subr.bf16.mxu1 %v12056_v13 }
 0x5fe   :  { %4629 = vmatpush1.bf16.msra.mxu0 %v10919_v11 }
 0x5ff   :  { %4630 = vmatprep.subr.bf16.mxu0 %v10929_v4 }
 0x600   :  { %8451 = vmatpush3.bf16.msra.mxu1 %v9063_v35 }
 0x601   :  { %8452 = vmatprep.subr.bf16.mxu1 %v12056_v13 }
 0x602   :  { %4631 = vmatpush1.bf16.msra.mxu0 %v10935_v14 }
 0x603   :  { %4902 = vmatprep.subr.bf16.mxu0 %v10945_v40 }
 0x604   :  { %8453 = vmatpush3.bf16.msra.mxu1 %v9064_v38 }
 0x605   :  { %8458 = vmatprep.subr.bf16.mxu1 %v12056_v13 }
 0x676   :  { %v3865_v42 = vpop.f32.mrb[52].mxu1 }
 0x677   :  { %v8396_v56 = vpop.f32.mrb[53].mxu1  ;;  %v3866_v45 = vadd.f32 %v3865_v42, %v3658_v49 }
 0x678   :  { %v3868_v59 = vpop.f32.mrb[54].mxu1 }
 0x679   :  { %v8397_v62 = vpop.f32.mrb[55].mxu1 }
 0x698   :  { %v4110_v0 = vpop.f32.mrb[36].mxu0  ;;  %v4151_v55 = vpop.f32.mrb[56].mxu1 }
 0x699   :  { %v8663_v58 = vadd.f32 %v8662_v10, %v4110_v0  ;;  %v4112_v7 = vpop.f32.mrb[37].mxu0  ;;  %v8416_v11 = vpop.f32.mrb[57].mxu1  ;;  %v4152_v61 = vadd.f32 %v4151_v55, %v3944_v18 }
 0x69a   :  { %v4114_v4 = vpop.f32.mrb[38].mxu0  ;;  %v4154_v14 = vpop.f32.mrb[58].mxu1  ;;  %v8665_v20 = vadd.f32 %v8664_v22, %v4112_v7 }
 0x69b   :  { %v7524_v40 = vmul.f32 -1.442695, %v8663_v58  ;;  %v4115_v32 = vpop.f32.mrb[39].mxu0  ;;  %v8417_v6 = vpop.f32.mrb[59].mxu1 }
 0x69c   :  { %v7525_v1 = vmul.f32 -1.442695, %v8665_v20 }
 0x69d   :  { %9299 = vpow2.f32 %v7524_v40  ;;  %v9065_v40 = vld [vmem:[%s12030_s4 + $0x8] ss:$12 sps:$4 sm:$0xff]  }
 0x69e   :  { %9301 = vpow2.f32 %v7525_v1  ;;  %v9066_v1 = vld [vmem:[%s12030_s4 + $0x20] ss:$12 sps:$4 sm:$0xff]  }
 0x6a7   :  { %v9300_v25 = vpop.eup %9299 }
 0x6a8   :  { %v4161_v17 = vadd.f32 1.0, %v9300_v25  ;;  %v9302_v47 = vpop.eup %9301 }
 0x6a9   :  { %v4168_v24 = vadd.f32 1.0, %v9302_v47 }
 0x6aa   :  { %9303 = vrcp.f32 %v4161_v17  ;;  %v7608_v17 = vld [vmem:[%s12032_s0 + $0x44] sm:$0xf] }
 0x6ab   :  { %9305 = vrcp.f32 %v4168_v24  ;;  %v4702_v49 = vunpack.c.l.bf16 %v7608_v17  ;;  %v9124_v17 = vld [vmem:[%s12028_s2 + $0x128] ss:$12 sps:$4 sm:$0xff]  }
 0x6b4   :  { %v9304_v43 = vpop.eup %9303 }
 0x6b5   :  { %v4171_v50 = vmul.f32 %v9304_v43, %v3866_v45  ;;  %v9306_v55 = vpop.eup %9305 }
 0x6b6   :  { %v4174_v22 = vsub.f32 1.0, %v9306_v55  ;;  %v4176_v4 = vmul.f32 %v9306_v55, %v10974_v26  ;;  %v11442_v55 = vld [vmem:[%s12028_s2 + $0xc4] ss:$12 sps:$4 sm:$0xff]  }
 0x6b7   :  { %v4172_v31 = vadd.f32 %v4171_v50, %v4152_v61  ;;  %v11328_v61 = vld [vmem:[%s12028_s2 + $0x18] ss:$12 sps:$4 sm:$0xff]   ;;  %v9080_v50 = vld [vmem:[%s12028_s2 + $0x20] ss:$12 sps:$4 sm:$0xff]  }
 0x6b8   :  { %v4391_v35 = vpop.f32.mrb[40].mxu0  ;;  %v4432_v38 = vpop.f32.mrb[60].mxu1 }
 0x6b9   :  { %9307 = vtanh.f32 %v4172_v31  ;;  %v4392_v42 = vadd.f32 %v4391_v35, %v4217_v51  ;;  %v4393_v56 = vpop.f32.mrb[41].mxu0  ;;  %v8436_v59 = vpop.f32.mrb[61].mxu1  ;;  %v11338_v51 = vld [vmem:[%s12028_s2 + $0x34] ss:$12 sps:$4 sm:$0xff]   ;;  %v9084_v31 = vld [vmem:[%s12028_s2 + $0x38] ss:$12 sps:$4 sm:$0xff]  }
 0x6ba   :  { %v4394_v62 = vadd.f32 %v4393_v56, %v4221_v29  ;;  %v4395_v60 = vpop.f32.mrb[42].mxu0  ;;  %v4435_v9 = vpop.f32.mrb[62].mxu1  ;;  %v11347_v29 = vld [vmem:[%s12028_s2 + $0x30] ss:$12 sps:$4 sm:$0xff]   ;;  %v11363_v35 = vld [vmem:[%s12028_s2 + $0x48] ss:$12 sps:$4 sm:$0xff]  }
 0x6bb   :  { %v4703_v63 = vadd.f32 %v4700_v34, %v4392_v42  ;;  %v4396_v44 = vpop.f32.mrb[43].mxu0  ;;  %v8437_v36 = vpop.f32.mrb[63].mxu1  ;;  %v11357_v34 = vld [vmem:[%s12028_s2 + $0x4c] ss:$12 sps:$4 sm:$0xff]   ;;  %v11373_v42 = vld [vmem:[%s12028_s2 + $0x64] ss:$12 sps:$4 sm:$0xff]  }
 0x6bc   :  { %v4710_v0 = vadd.f32 %v4701_v3, %v4394_v62  ;;  %v11379_v56 = vld [vmem:[%s12028_s2 + $0x60] ss:$12 sps:$4 sm:$0xff]   ;;  %v9092_v59 = vld [vmem:[%s12028_s2 + $0x68] ss:$12 sps:$4 sm:$0xff]   ;;  %v11395_v3 = vld [vmem:[%s12028_s2 + $0x78] ss:$12 sps:$4 sm:$0xff]  }
 0x6bd   :  { %v7609_v10 = vmul.f32 -1.442695, %v4703_v63  ;;  %v11389_v62 = vld [vmem:[%s12028_s2 + $0x7c] ss:$12 sps:$4 sm:$0xff]   ;;  %v9096_v60 = vld [vmem:[%s12028_s2 + $0x80] ss:$12 sps:$4 sm:$0xff]  }
 0x6be   :  { %v7610_v58 = vmul.f32 -1.442695, %v4710_v0  ;;  %v11405_v9 = vld [vmem:[%s12028_s2 + $0x94] ss:$12 sps:$4 sm:$0xff]   ;;  %v11411_v63 = vld [vmem:[%s12028_s2 + $0x90] ss:$12 sps:$4 sm:$0xff]  }
 0x6bf   :  { %9309 = vpow2.f32 %v7609_v10  ;;  %v9100_v44 = vld [vmem:[%s12028_s2 + $0x98] ss:$12 sps:$4 sm:$0xff]   ;;  %v11427_v10 = vld [vmem:[%s12028_s2 + $0xa8] ss:$12 sps:$4 sm:$0xff]   ;;  %v9104_v0 = vld [vmem:[%s12028_s2 + $0xb0] ss:$12 sps:$4 sm:$0xff]  }
 0x6c0   :  { %9311 = vpow2.f32 %v7610_v58  ;;  %v11421_v36 = vld [vmem:[%s12028_s2 + $0xac] ss:$12 sps:$4 sm:$0xff]   ;;  %v9108_v58 = vld [vmem:[%s12028_s2 + $0xc8] ss:$12 sps:$4 sm:$0xff]  }
 0x6c3   :  { %v9308_v7 = vpop.eup %9307 }
 0x6c4   :  { %v4175_v11 = vmul.f32 %v9308_v7, %v4174_v22  ;;  %v11447_v22 = vld [vmem:[%s12028_s2 + $0xc0] ss:$12 sps:$4 sm:$0xff]   ;;  %v11457_v7 = vld [vmem:[%s12028_s2 + $0xdc] ss:$12 sps:$4 sm:$0xff]  }
 0x6c6   :  { %v11241_v14 = vadd.f32 %v4176_v4, %v4175_v11  ;;  %v11463_v11 = vld [vmem:[%s12028_s2 + $0xd8] ss:$12 sps:$4 sm:$0xff]   ;;  %v9112_v4 = vld [vmem:[%s12028_s2 + $0xe0] ss:$12 sps:$4 sm:$0xff]  }
 0x6c8   :  { %v4438_v32 = vpack.c.bf16 %v11241_v14, %v11241_v14 }
 0x6c9   :  { %v9310_v6 = vpop.eup %9309 }
 0x6ca   :  { %v4707_v20 = vadd.f32 1.0, %v9310_v6  ;;  %4649 = vmatmul.mubr.bf16.vlgmr.msra.gmra.mrb[44].mxu0 %v4438_v32  ;;  %8455 = vmatmul.mubr.bf16.vlgmr.msra.gmra.mrb[64].mxu1 %v4438_v32  ;;  %v9312_v25 = vpop.eup %9311  ;;  %v11479_v32 = vld [vmem:[%s12028_s2 + $0xf0] ss:$12 sps:$4 sm:$0xff]   ;;  %v9116_v6 = vld [vmem:[%s12028_s2 + $0xf8] ss:$12 sps:$4 sm:$0xff]  }
 0x6cb   :  { %4903 = vmatpush1.bf16.msra.mxu0 %v10979_v48  ;;  %8459 = vmatpush3.bf16.msra.mxu1 %v9065_v40  ;;  %v9067_v48 = vld [vmem:[%s12030_s4 + $0x38] ss:$12 sps:$4 sm:$0xff]   ;;  %v4714_v47 = vadd.f32 1.0, %v9312_v25  ;;  %v11473_v40 = vld [vmem:[%s12028_s2 + $0xf4] ss:$12 sps:$4 sm:$0xff]  }
 0x6cc   :  { %9313 = vrcp.f32 %v4707_v20  ;;  %4904 = vmatprep.subr.bf16.mxu0 %v10989_v33  ;;  %8460 = vmatprep.subr.bf16.mxu1 %v12056_v13  ;;  %v4225_v33 = vrot.slane %v11231_v30, %v9804_v52  ;;  %v11489_v20 = vld [vmem:[%s12028_s2 + $0x10c] ss:$12 sps:$4 sm:$0xff]   ;;  %v11505_v25 = vld [vmem:[%s12028_s2 + $0x124] ss:$12 sps:$4 sm:$0xff]  }
 0x6cd   :  { %4934 = vmatprep.mubr.bf16.mxu0 %v12053_v16  ;;  %8474 = vmatprep.mubr.msk.bf16.mxu1 %vm9396_vm0, %v12056_v13  ;;  %9315 = vrcp.f32 %v4714_v47  ;;  %v11521_v47 = vld [vmem:[%s12028_s2 + $0x13c] ss:$12 sps:$4 sm:$0xff]  }
 0x6cf   :  { %4905 = vmatpush1.bf16.msra.mxu0 %v10995_v2  ;;  %8461 = vmatpush3.bf16.msra.mxu1 %v9066_v1  ;;  %v9068_v2 = vld [vmem:[%s12030_s4 + $0x50] ss:$12 sps:$4 sm:$0xff]   ;;  %v11495_v1 = vld [vmem:[%s12028_s2 + $0x108] ss:$12 sps:$4 sm:$0xff]  }
 0x6d0   :  { %4906 = vmatprep.subr.bf16.mxu0 %v11005_v8  ;;  %8462 = vmatprep.subr.bf16.mxu1 %v12056_v13  ;;  %v4433_v8 = vadd.f32 %v4432_v38, %v4225_v33  ;;  %v9088_v38 = vld [vmem:[%s12028_s2 + $0x50] ss:$12 sps:$4 sm:$0xff]   ;;  %v11511_v33 = vld [vmem:[%s12028_s2 + $0x120] ss:$12 sps:$4 sm:$0xff]  }
 0x6d3   :  { %4907 = vmatpush1.bf16.msra.mxu0 %v11014_v39  ;;  %8463 = vmatpush3.bf16.msra.mxu1 %v9067_v48  ;;  %v9069_v39 = vld [vmem:[%s12030_s4 + $0x68] ss:$12 sps:$4 sm:$0xff]   ;;  %v9120_v48 = vld [vmem:[%s12028_s2 + $0x110] ss:$12 sps:$4 sm:$0xff]  }
 0x6d4   :  { %4908 = vmatprep.subr.bf16.mxu0 %v11024_v5  ;;  %8464 = vmatprep.subr.bf16.mxu1 %v12056_v13  ;;  %v9070_v5 = vld [vmem:[%s12030_s4 + $0x80] ss:$12 sps:$4 sm:$0xff]  }
 0x6d6   :  { %v9314_v18 = vpop.eup %9313 }
 0x6d7   :  { %v4717_v24 = vmul.f32 %v9314_v18, %v4433_v8  ;;  %4909 = vmatpush1.bf16.msra.mxu0 %v11035_v28  ;;  %8465 = vmatpush3.bf16.msra.mxu1 %v9068_v2  ;;  %v9071_v28 = vld [vmem:[%s12030_s4 + $0x98] ss:$12 sps:$4 sm:$0xff]   ;;  %v9128_v8 = vld [vmem:[%s12028_s2 + $0x140] ss:$12 sps:$4 sm:$0xff]   ;;  %v11543_v18 = vld [vmem:[%s12028_s2 + $0x150] ss:$12 sps:$4 sm:$0xff]  }
 0x6d8   :  { %4910 = vmatprep.subr.bf16.mxu0 %v11045_v23  ;;  %8466 = vmatprep.subr.bf16.mxu1 %v12056_v13  ;;  %v9316_v23 = vpop.eup %9315  ;;  %v11527_v2 = vld [vmem:[%s12028_s2 + $0x138] ss:$12 sps:$4 sm:$0xff]  }
 0x6d9   :  { %v4718_v30 = vadd.f32 %v4717_v24, %v4702_v49  ;;  %v4722_v43 = vmul.f32 %v9316_v23, %v11110_v37  ;;  %v11537_v49 = vld [vmem:[%s12028_s2 + $0x154] ss:$12 sps:$4 sm:$0xff]   ;;  %v9132_v24 = vld [vmem:[%s12028_s2 + $0x158] ss:$12 sps:$4 sm:$0xff]  }
 0x6db   :  { %9317 = vtanh.f32 %v4718_v30  ;;  %4911 = vmatpush1.bf16.msra.mxu0 %v11051_v15  ;;  %8467 = vmatpush3.bf16.msra.mxu1 %v9069_v39  ;;  %v9072_v15 = vld [vmem:[%s12030_s4 + $0xb0] ss:$12 sps:$4 sm:$0xff]   ;;  %v11553_v39 = vld [vmem:[%s12028_s2 + $0x16c] ss:$12 sps:$4 sm:$0xff]   ;;  %v11559_v30 = vld [vmem:[%s12028_s2 + $0x168] ss:$12 sps:$4 sm:$0xff]  }
 0x6dc   :  { %4912 = vmatprep.subr.bf16.mxu0 %v11061_v53  ;;  %8468 = vmatprep.subr.bf16.mxu1 %v12056_v13  ;;  %v11301_v53 = vld [vmem:[%s12028_s2 + $0x4] ss:$12 sps:$4 sm:$0xff]  }
 0x6df   :  { %4913 = vmatpush1.bf16.msra.mxu0 %v11067_v12  ;;  %8469 = vmatpush3.bf16.msra.mxu1 %v9070_v5  ;;  %v4720_v12 = vsub.f32 1.0, %v9316_v23  ;;  %v9136_v5 = vld [vmem:[%s12028_s2 + $0x170] ss:$12 sps:$4 sm:$0xff]  }
 0x6e0   :  { %4914 = vmatprep.subr.bf16.mxu0 %v11077_v57  ;;  %8470 = vmatprep.subr.bf16.mxu1 %v12056_v13 }
 0x6e3   :  { %4915 = vmatpush1.bf16.msra.mxu0 %v11083_v27  ;;  %8471 = vmatpush3.bf16.msra.mxu1 %v9071_v28  ;;  %v11569_v28 = vld [vmem:[%s12030_s4 + $0x4] ss:$12 sps:$4 sm:$0xff]  }
 0x6e4   :  { %4916 = vmatprep.subr.bf16.mxu0 %v11093_v41  ;;  %8472 = vmatprep.subr.bf16.mxu1 %v12056_v13  ;;  %v11312_v41 = vld [vmem:[%s12028_s2] ss:$12 sps:$4 sm:$0xff]  }
 0x6e5   :  { %v9318_v57 = vpop.eup %9317 }
 0x6e6   :  { %v4721_v45 = vmul.f32 %v9318_v57, %v4720_v12 }
 0x6e7   :  { %4917 = vmatpush1.bf16.msra.mxu0 %v11099_v54  ;;  %8473 = vmatpush3.bf16.msra.mxu1 %v9072_v15  ;;  %v11322_v54 = vld [vmem:[%s12028_s2 + $0x1c] ss:$12 sps:$4 sm:$0xff]  }
 0x6e8   :  { %5183 = vmatprep.subr.bf16.mxu0 %v11301_v53  ;;  %8478 = vmatprep.subr.bf16.mxu1 %v12056_v13  ;;  %v11307_v27 = vadd.f32 %v4722_v43, %v4721_v45  ;;  %v4757_v45 = vld [vmem:[%s12033_s5] sm:$0x7]  ;;  %v7582_v43 = vld [vmem:[%s12031_s3 + $0x3] sm:$0x7] }
 0x6ea   :  { %v4724_v37 = vpack.c.bf16 %v11307_v27, %v11307_v27 }
 0x6ec   :  { %4935 = vmatmul.mubr.bf16.vlgmr.msra.gmra.mrb[44].mxu0 %v4724_v37  ;;  %8475 = vmatmul.mubr.bf16.vlgmr.msra.gmra.mrb[68].mxu1 %v4724_v37 }
 0x6ed   :  { %5184 = vmatpush1.bf16.msra.mxu0 %v11312_v41  ;;  %8479 = vmatpush3.bf16.msra.mxu1 %v9076_v46  ;;  %v4476_v46 = vrot.slane %v7582_v43, %v9792_v19 }
 0x6ee   :  { %5185 = vmatprep.subr.bf16.mxu0 %v11322_v54  ;;  %8480 = vmatprep.subr.bf16.mxu1 %v12056_v13 }
 0x6ef   :  { %5215 = vmatprep.mubr.bf16.mxu0 %v12053_v16  ;;  %8494 = vmatprep.mubr.msk.bf16.mxu1 %vm9396_vm0, %v12056_v13 }
 0x6f1   :  { %5186 = vmatpush1.bf16.msra.mxu0 %v11328_v61  ;;  %8481 = vmatpush3.bf16.msra.mxu1 %v9080_v50  ;;  %v4480_v50 = vrot.slane %v7582_v43, %v9797_v21 }
 0x6f2   :  { %5187 = vmatprep.subr.bf16.mxu0 %v11338_v51  ;;  %8482 = vmatprep.subr.bf16.mxu1 %v12056_v13 }
 0x6f5   :  { %5188 = vmatpush1.bf16.msra.mxu0 %v11347_v29  ;;  %8483 = vmatpush3.bf16.msra.mxu1 %v9084_v31  ;;  %v4766_v31 = vrot.slane %v4757_v45, %v9797_v21 }
 0x6f6   :  { %5189 = vmatprep.subr.bf16.mxu0 %v11357_v34  ;;  %8484 = vmatprep.subr.bf16.mxu1 %v12056_v13 }
 0x6f9   :  { %5190 = vmatpush1.bf16.msra.mxu0 %v11363_v35  ;;  %8485 = vmatpush3.bf16.msra.mxu1 %v9088_v38 }
 0x6fa   :  { %5191 = vmatprep.subr.bf16.mxu0 %v11373_v42  ;;  %8486 = vmatprep.subr.bf16.mxu1 %v12056_v13 }
 0x6fd   :  { %5192 = vmatpush1.bf16.msra.mxu0 %v11379_v56  ;;  %8487 = vmatpush3.bf16.msra.mxu1 %v9092_v59 }
 0x6fe   :  { %5193 = vmatprep.subr.bf16.mxu0 %v11389_v62  ;;  %8488 = vmatprep.subr.bf16.mxu1 %v12056_v13 }
 0x701   :  { %5194 = vmatpush1.bf16.msra.mxu0 %v11395_v3  ;;  %8489 = vmatpush3.bf16.msra.mxu1 %v9096_v60 }
 0x702   :  { %5195 = vmatprep.subr.bf16.mxu0 %v11405_v9  ;;  %8490 = vmatprep.subr.bf16.mxu1 %v12056_v13 }
 0x705   :  { %5196 = vmatpush1.bf16.msra.mxu0 %v11411_v63  ;;  %8491 = vmatpush3.bf16.msra.mxu1 %v9100_v44  ;;  %v8668_v44 = vadd.f32 %v4766_v31, %v4480_v50  ;;  %v11588_v31 = vld [vmem:[%s12031_s3] sm:$0x7] }
 0x706   :  { %5197 = vmatprep.subr.bf16.mxu0 %v11421_v36  ;;  %8492 = vmatprep.subr.bf16.mxu1 %v12056_v13 }
 0x709   :  { %5198 = vmatpush1.bf16.msra.mxu0 %v11427_v10  ;;  %8493 = vmatpush3.bf16.msra.mxu1 %v9104_v0 }
 0x70a   :  { %8498 = vmatprep.subr.bf16.mxu1 %v12056_v13  ;;  %5442 = vmatprep.subr.bf16.mxu0 %v11442_v55 }
 0x70c   :  { %5216 = vmatmul.mubr.bf16.vlgmr.msra.gmra.mrb[48].mxu0 %v4724_v37  ;;  %8495 = vmatmul.mubr.bf16.vlgmr.msra.gmra.mrb[72].mxu1 %v4724_v37  ;;  %v4762_v37 = vrot.slane %v4757_v45, %v9792_v19 }
 0x70d   :  { %5474 = vmatprep.mubr.bf16.mxu0 %v12053_v16  ;;  %8514 = vmatprep.mubr.msk.bf16.mxu1 %vm9396_vm0, %v12056_v13 }
 0x70e   :  { %5443 = vmatpush1.bf16.msra.mxu0 %v11447_v22  ;;  %8499 = vmatpush3.bf16.msra.mxu1 %v9108_v58  ;;  %v8666_v38 = vadd.f32 %v4762_v37, %v4476_v46  ;;  %v4484_v46 = vrot.slane %v7582_v43, %v9804_v52  ;;  %v4770_v37 = vrot.slane %v4757_v45, %v9804_v52 }
 0x70f   :  { %8500 = vmatprep.subr.bf16.mxu1 %v12056_v13  ;;  %5444 = vmatprep.subr.bf16.mxu0 %v11457_v7  ;;  %v5043_v43 = vrot.slane %v11588_v31, %v9792_v19 }
 0x712   :  { %5445 = vmatpush1.bf16.msra.mxu0 %v11463_v11  ;;  %8501 = vmatpush3.bf16.msra.mxu1 %v9112_v4 }
 0x713   :  { %8502 = vmatprep.subr.bf16.mxu1 %v12056_v13  ;;  %5446 = vmatprep.subr.bf16.mxu0 %v11473_v40 }
 0x716   :  { %5447 = vmatpush1.bf16.msra.mxu0 %v11479_v32  ;;  %8503 = vmatpush3.bf16.msra.mxu1 %v9116_v6 }
 0x717   :  { %8504 = vmatprep.subr.bf16.mxu1 %v12056_v13  ;;  %5448 = vmatprep.subr.bf16.mxu0 %v11489_v20 }
 0x71a   :  { %5449 = vmatpush1.bf16.msra.mxu0 %v11495_v1  ;;  %8505 = vmatpush3.bf16.msra.mxu1 %v9120_v48 }
 0x71b   :  { %8506 = vmatprep.subr.bf16.mxu1 %v12056_v13  ;;  %5450 = vmatprep.subr.bf16.mxu0 %v11505_v25 }
 0x71e   :  { %5451 = vmatpush1.bf16.msra.mxu0 %v11511_v33  ;;  %8507 = vmatpush3.bf16.msra.mxu1 %v9124_v17 }
 0x71f   :  { %8508 = vmatprep.subr.bf16.mxu1 %v12056_v13  ;;  %5452 = vmatprep.subr.bf16.mxu0 %v11521_v47 }
 0x722   :  { %5453 = vmatpush1.bf16.msra.mxu0 %v11527_v2  ;;  %8509 = vmatpush3.bf16.msra.mxu1 %v9128_v8 }
 0x723   :  { %8510 = vmatprep.subr.bf16.mxu1 %v12056_v13  ;;  %5454 = vmatprep.subr.bf16.mxu0 %v11537_v49 }
 0x726   :  { %5455 = vmatpush1.bf16.msra.mxu0 %v11543_v18  ;;  %8511 = vmatpush3.bf16.msra.mxu1 %v9132_v24 }
 0x727   :  { %8512 = vmatprep.subr.bf16.mxu1 %v12056_v13  ;;  %5456 = vmatprep.subr.bf16.mxu0 %v11553_v39 }
 0x72a   :  { %5457 = vmatpush1.bf16.msra.mxu0 %v11559_v30  ;;  %8513 = vmatpush3.bf16.msra.mxu1 %v9136_v5 }
 0x72b   :  { %8518 = vmatprep.subr.bf16.mxu1 %v12056_v13  ;;  %5728 = vmatprep.subr.bf16.mxu0 %v11569_v28 }
 0x79d   :  { %v4691_v23 = vpop.f32.mrb[64].mxu1 }
 0x79e   :  { %v8456_v15 = vpop.f32.mrb[65].mxu1 }
 0x79f   :  { %v4694_v12 = vpop.f32.mrb[66].mxu1 }
 0x7a0   :  { %v8457_v57 = vpop.f32.mrb[67].mxu1 }
 0x7bf   :  { %v4936_v59 = vpop.f32.mrb[44].mxu0  ;;  %v4977_v60 = vpop.f32.mrb[68].mxu1 }
 0x7c0   :  { %v8667_v0 = vadd.f32 %v8666_v38, %v4936_v59  ;;  %v4938_v58 = vpop.f32.mrb[45].mxu0  ;;  %v8476_v4 = vpop.f32.mrb[69].mxu1  ;;  %v4692_v38 = vadd.f32 %v4691_v23, %v4484_v46 }
 0x7c1   :  { %v4940_v6 = vpop.f32.mrb[46].mxu0  ;;  %v4980_v48 = vpop.f32.mrb[70].mxu1  ;;  %v8669_v5 = vadd.f32 %v8668_v44, %v4938_v58  ;;  %v7718_v44 = vld [vmem:[%s12032_s0 + $0x48] sm:$0xff] }
 0x7c2   :  { %v7635_v17 = vmul.f32 -1.442695, %v8667_v0  ;;  %v4941_v8 = vpop.f32.mrb[47].mxu0  ;;  %v8477_v24 = vpop.f32.mrb[71].mxu1  ;;  %v4978_v0 = vadd.f32 %v4977_v60, %v4770_v37  ;;  %v5526_v4 = vunpack.c.l.bf16 %v7718_v44 }
 0x7c3   :  { %v7636_v15 = vmul.f32 -1.442695, %v8669_v5  ;;  %v5527_v5 = vunpack.c.h.bf16 %v7718_v44  ;;  %v11603_v44 = vld [vmem:[%s12030_s4] ss:$12 sps:$4 sm:$0xff]  }
 0x7c4   :  { %9319 = vpow2.f32 %v7635_v17 }
 0x7c5   :  { %9321 = vpow2.f32 %v7636_v15 }
 0x7ce   :  { %v9320_v12 = vpop.eup %9319 }
 0x7cf   :  { %v4987_v57 = vadd.f32 1.0, %v9320_v12  ;;  %v9322_v26 = vpop.eup %9321 }
 0x7d0   :  { %v4994_v50 = vadd.f32 1.0, %v9322_v26  ;;  %v5047_v26 = vrot.slane %v11588_v31, %v9797_v21 }
 0x7d1   :  { %9323 = vrcp.f32 %v4987_v57 }
 0x7d2   :  { %9325 = vrcp.f32 %v4994_v50 }
 0x7db   :  { %v9324_v59 = vpop.eup %9323 }
 0x7dc   :  { %v4997_v58 = vmul.f32 %v9324_v59, %v4692_v38  ;;  %v9326_v38 = vpop.eup %9325 }
 0x7dd   :  { %v5000_v59 = vsub.f32 1.0, %v9326_v38 }
 0x7de   :  { %v4998_v45 = vadd.f32 %v4997_v58, %v4978_v0 }
 0x7df   :  { %v5217_v6 = vpop.f32.mrb[48].mxu0  ;;  %v5258_v48 = vpop.f32.mrb[72].mxu1 }
 0x7e0   :  { %9327 = vtanh.f32 %v4998_v45  ;;  %v5218_v23 = vadd.f32 %v5217_v6, %v5043_v43  ;;  %v5219_v17 = vpop.f32.mrb[49].mxu0  ;;  %v8496_v8 = vpop.f32.mrb[73].mxu1  ;;  %v5002_v45 = vmul.f32 %v9326_v38, %v11241_v14  ;;  %v11613_v6 = vld [vmem:[%s12030_s4 + $0x1c] ss:$12 sps:$4 sm:$0xff]  }
 0x7e1   :  { %v5220_v24 = vadd.f32 %v5219_v17, %v5047_v26  ;;  %v5221_v15 = vpop.f32.mrb[50].mxu0  ;;  %v5261_v60 = vpop.f32.mrb[74].mxu1  ;;  %v9140_v26 = vld [vmem:[%s12030_s4 + $0x8] ss:$12 sps:$4 sm:$0xff]   ;;  %v11619_v17 = vld [vmem:[%s12030_s4 + $0x18] ss:$12 sps:$4 sm:$0xff]  }
 0x7e2   :  { %v5529_v12 = vadd.f32 %v5526_v4, %v5218_v23  ;;  %v5222_v57 = vpop.f32.mrb[51].mxu0  ;;  %v8497_v46 = vpop.f32.mrb[75].mxu1  ;;  %v9144_v8 = vld [vmem:[%s12030_s4 + $0x20] ss:$12 sps:$4 sm:$0xff]   ;;  %v9148_v15 = vld [vmem:[%s12030_s4 + $0x38] ss:$12 sps:$4 sm:$0xff]  }
 0x7e3   :  { %v5536_v50 = vadd.f32 %v5527_v5, %v5220_v24  ;;  %v11629_v24 = vld [vmem:[%s12030_s4 + $0x34] ss:$12 sps:$4 sm:$0xff]   ;;  %v11638_v5 = vld [vmem:[%s12030_s4 + $0x30] ss:$12 sps:$4 sm:$0xff]   ;;  %v5051_v57 = vrot.slane %v11588_v31, %v9804_v52 }
 0x7e4   :  { %v7720_v37 = vmul.f32 -1.442695, %v5529_v12  ;;  %v11648_v12 = vld [vmem:[%s12030_s4 + $0x4c] ss:$12 sps:$4 sm:$0xff]   ;;  %v7719_v46 = vld [vmem:[%s12032_s0 + $0x50] sm:$0xf] }
 0x7e5   :  { %v7721_v0 = vmul.f32 -1.442695, %v5536_v50  ;;  %v11659_v50 = vld [vmem:[%s12030_s4 + $0x48] ss:$12 sps:$4 sm:$0xff]   ;;  %v9152_v38 = vld [vmem:[%s12030_s4 + $0x50] ss:$12 sps:$4 sm:$0xff]  }
 0x7e6   :  { %9329 = vpow2.f32 %v7720_v37  ;;  %v11669_v31 = vld [vmem:[%s12030_s4 + $0x64] ss:$12 sps:$4 sm:$0xff]  }
 0x7e7   :  { %9331 = vpow2.f32 %v7721_v0  ;;  %v5528_v0 = vunpack.c.l.bf16 %v7719_v46  ;;  %v11717_v46 = vld [vmem:[%s12030_s4 + $0xac] ss:$12 sps:$4 sm:$0xff]  }
 0x7ea   :  { %v9328_v58 = vpop.eup %9327 }
 0x7eb   :  { %v5001_v21 = vmul.f32 %v9328_v58, %v5000_v59  ;;  %v5259_v59 = vadd.f32 %v5258_v48, %v5051_v57  ;;  %v11685_v48 = vld [vmem:[%s12030_s4 + $0x7c] ss:$12 sps:$4 sm:$0xff]   ;;  %v9164_v57 = vld [vmem:[%s12030_s4 + $0x98] ss:$12 sps:$4 sm:$0xff]  }
 0x7ed   :  { %v11598_v43 = vadd.f32 %v5002_v45, %v5001_v21 }
 0x7ef   :  { %v5264_v4 = vpack.c.bf16 %v11598_v43, %v11598_v43 }
 0x7f0   :  { %v9330_v23 = vpop.eup %9329 }
 0x7f1   :  { %v5533_v21 = vadd.f32 1.0, %v9330_v23  ;;  %5475 = vmatmul.mubr.bf16.vlgmr.msra.gmra.mrb[52].mxu0 %v5264_v4  ;;  %8515 = vmatmul.mubr.bf16.vlgmr.msra.gmra.mrb[76].mxu1 %v5264_v4  ;;  %v9332_v60 = vpop.eup %9331  ;;  %v9156_v4 = vld [vmem:[%s12030_s4 + $0x68] ss:$12 sps:$4 sm:$0xff]  }
 0x7f2   :  { %5729 = vmatpush1.bf16.msra.mxu0 %v11603_v44  ;;  %8519 = vmatpush3.bf16.msra.mxu1 %v9140_v26  ;;  %v5540_v37 = vadd.f32 1.0, %v9332_v60  ;;  %v11675_v26 = vld [vmem:[%s12030_s4 + $0x60] ss:$12 sps:$4 sm:$0xff]   ;;  %v11707_v60 = vld [vmem:[%s12030_s4 + $0x90] ss:$12 sps:$4 sm:$0xff]  }
 0x7f3   :  { %9333 = vrcp.f32 %v5533_v21  ;;  %5730 = vmatprep.subr.bf16.mxu0 %v11613_v6  ;;  %8520 = vmatprep.subr.bf16.mxu1 %v12056_v13  ;;  %v11691_v21 = vld [vmem:[%s12030_s4 + $0x78] ss:$12 sps:$4 sm:$0xff]  }
 0x7f4   :  { %5760 = vmatprep.mubr.bf16.mxu0 %v12053_v16  ;;  %8534 = vmatprep.mubr.msk.bf16.mxu1 %vm9396_vm0, %v12056_v13  ;;  %9335 = vrcp.f32 %v5540_v37 }
 0x7f6   :  { %5731 = vmatpush1.bf16.msra.mxu0 %v11619_v17  ;;  %8521 = vmatpush3.bf16.msra.mxu1 %v9144_v8  ;;  %v9160_v8 = vld [vmem:[%s12030_s4 + $0x80] ss:$12 sps:$4 sm:$0xff]  }
 0x7f7   :  { %5732 = vmatprep.subr.bf16.mxu0 %v11629_v24  ;;  %8522 = vmatprep.subr.bf16.mxu1 %v12056_v13 }
 0x7fa   :  { %5733 = vmatpush1.bf16.msra.mxu0 %v11638_v5  ;;  %8523 = vmatpush3.bf16.msra.mxu1 %v9148_v15  ;;  %v11701_v15 = vld [vmem:[%s12030_s4 + $0x94] ss:$12 sps:$4 sm:$0xff]  }
 0x7fb   :  { %5734 = vmatprep.subr.bf16.mxu0 %v11648_v12  ;;  %8524 = vmatprep.subr.bf16.mxu1 %v12056_v13 }
 0x7fd   :  { %v9334_v58 = vpop.eup %9333 }
 0x7fe   :  { %v5543_v45 = vmul.f32 %v9334_v58, %v5259_v59  ;;  %5735 = vmatpush1.bf16.msra.mxu0 %v11659_v50  ;;  %8525 = vmatpush3.bf16.msra.mxu1 %v9152_v38  ;;  %v9336_v37 = vpop.eup %9335  ;;  %v11723_v38 = vld [vmem:[%s12030_s4 + $0xa8] ss:$12 sps:$4 sm:$0xff]   ;;  %v9168_v59 = vld [vmem:[%s12030_s4 + $0xb0] ss:$12 sps:$4 sm:$0xff]  }
 0x7ff   :  { %5736 = vmatprep.subr.bf16.mxu0 %v11669_v31  ;;  %8526 = vmatprep.subr.bf16.mxu1 %v12056_v13 }
 0x800   :  { %v5544_v23 = vadd.f32 %v5543_v45, %v5528_v0  ;;  %v5546_v0 = vsub.f32 1.0, %v9336_v37 }
 0x802   :  { %9337 = vtanh.f32 %v5544_v23  ;;  %5737 = vmatpush1.bf16.msra.mxu0 %v11675_v26  ;;  %8527 = vmatpush3.bf16.msra.mxu1 %v9156_v4  ;;  %v5548_v4 = vmul.f32 %v9336_v37, %v11307_v27  ;;  %v9171_v27 = vld [vmem:[%s12028_s2 + $0x38] ss:$12 sps:$4 sm:$0xff]  }
 0x803   :  { %5738 = vmatprep.subr.bf16.mxu0 %v11685_v48  ;;  %8528 = vmatprep.subr.bf16.mxu1 %v12056_v13 }
 0x806   :  { %5739 = vmatpush1.bf16.msra.mxu0 %v11691_v21  ;;  %8529 = vmatpush3.bf16.msra.mxu1 %v9160_v8  ;;  %v9169_v8 = vld [vmem:[%s12028_s2 + $0x8] ss:$12 sps:$4 sm:$0xff]  }
 0x807   :  { %5740 = vmatprep.subr.bf16.mxu0 %v11701_v15  ;;  %8530 = vmatprep.subr.bf16.mxu1 %v12056_v13 }
 0x80a   :  { %5741 = vmatpush1.bf16.msra.mxu0 %v11707_v60  ;;  %8531 = vmatpush3.bf16.msra.mxu1 %v9164_v57 }
 0x80b   :  { %5742 = vmatprep.subr.bf16.mxu0 %v11717_v46  ;;  %8532 = vmatprep.subr.bf16.mxu1 %v12056_v13 }
 0x80c   :  { %v9338_v58 = vpop.eup %9337 }
 0x80d   :  { %v5547_v45 = vmul.f32 %v9338_v58, %v5546_v0 }
 0x80e   :  { %5743 = vmatpush1.bf16.msra.mxu0 %v11723_v38  ;;  %8533 = vmatpush3.bf16.msra.mxu1 %v9168_v59 }
 0x80f   :  { %6009 = vmatprep.subr.bf16.mxu0 %v11301_v53  ;;  %8538 = vmatprep.subr.bf16.mxu1 %v12056_v13  ;;  %v11734_v23 = vadd.f32 %v5548_v4, %v5547_v45  ;;  %v9170_v53 = vld [vmem:[%s12028_s2 + $0x20] ss:$12 sps:$4 sm:$0xff]  }
 0x811   :  { %v5550_v57 = vpack.c.bf16 %v11734_v23, %v11734_v23 }
 0x813   :  { %5761 = vmatmul.mubr.bf16.vlgmr.msra.gmra.mrb[52].mxu0 %v5550_v57  ;;  %8535 = vmatmul.mubr.bf16.vlgmr.msra.gmra.mrb[80].mxu1 %v5550_v57 }
 0x814   :  { %6010 = vmatpush1.bf16.msra.mxu0 %v11312_v41  ;;  %8539 = vmatpush3.bf16.msra.mxu1 %v9169_v8  ;;  %v9172_v41 = vld [vmem:[%s12028_s2 + $0x50] ss:$12 sps:$4 sm:$0xff]  }
 0x815   :  { %6011 = vmatprep.subr.bf16.mxu0 %v11322_v54  ;;  %8540 = vmatprep.subr.bf16.mxu1 %v12056_v13  ;;  %v9173_v54 = vld [vmem:[%s12028_s2 + $0x68] ss:$12 sps:$4 sm:$0xff]  }
 0x816   :  { %6041 = vmatprep.mubr.bf16.mxu0 %v12053_v16  ;;  %8554 = vmatprep.mubr.msk.bf16.mxu1 %vm9396_vm0, %v12056_v13 }
 0x818   :  { %6012 = vmatpush1.bf16.msra.mxu0 %v11328_v61  ;;  %8541 = vmatpush3.bf16.msra.mxu1 %v9170_v53  ;;  %v9174_v61 = vld [vmem:[%s12028_s2 + $0x80] ss:$12 sps:$4 sm:$0xff]  }
 0x819   :  { %6013 = vmatprep.subr.bf16.mxu0 %v11338_v51  ;;  %8542 = vmatprep.subr.bf16.mxu1 %v12056_v13  ;;  %v9175_v51 = vld [vmem:[%s12028_s2 + $0x98] ss:$12 sps:$4 sm:$0xff]  }
 0x81c   :  { %6014 = vmatpush1.bf16.msra.mxu0 %v11347_v29  ;;  %8543 = vmatpush3.bf16.msra.mxu1 %v9171_v27  ;;  %v9176_v29 = vld [vmem:[%s12028_s2 + $0xb0] ss:$12 sps:$4 sm:$0xff]  }
 0x81d   :  { %6015 = vmatprep.subr.bf16.mxu0 %v11357_v34  ;;  %8544 = vmatprep.subr.bf16.mxu1 %v12056_v13  ;;  %v9177_v34 = vld [vmem:[%s12028_s2 + $0xc8] ss:$12 sps:$4 sm:$0xff]  }
 0x820   :  { %6016 = vmatpush1.bf16.msra.mxu0 %v11363_v35  ;;  %8545 = vmatpush3.bf16.msra.mxu1 %v9172_v41  ;;  %v9178_v35 = vld [vmem:[%s12028_s2 + $0xe0] ss:$12 sps:$4 sm:$0xff]  }
 0x821   :  { %6017 = vmatprep.subr.bf16.mxu0 %v11373_v42  ;;  %8546 = vmatprep.subr.bf16.mxu1 %v12056_v13  ;;  %v9179_v42 = vld [vmem:[%s12028_s2 + $0xf8] ss:$12 sps:$4 sm:$0xff]  }
 0x824   :  { %6018 = vmatpush1.bf16.msra.mxu0 %v11379_v56  ;;  %8547 = vmatpush3.bf16.msra.mxu1 %v9173_v54  ;;  %v9180_v56 = vld [vmem:[%s12028_s2 + $0x110] ss:$12 sps:$4 sm:$0xff]  }
 0x825   :  { %6019 = vmatprep.subr.bf16.mxu0 %v11389_v62  ;;  %8548 = vmatprep.subr.bf16.mxu1 %v12056_v13  ;;  %v9181_v62 = vld [vmem:[%s12028_s2 + $0x128] ss:$12 sps:$4 sm:$0xff]  }
 0x828   :  { %6020 = vmatpush1.bf16.msra.mxu0 %v11395_v3  ;;  %8549 = vmatpush3.bf16.msra.mxu1 %v9174_v61  ;;  %v9182_v3 = vld [vmem:[%s12028_s2 + $0x140] ss:$12 sps:$4 sm:$0xff]  }
 0x829   :  { %6021 = vmatprep.subr.bf16.mxu0 %v11405_v9  ;;  %8550 = vmatprep.subr.bf16.mxu1 %v12056_v13  ;;  %v9183_v9 = vld [vmem:[%s12028_s2 + $0x158] ss:$12 sps:$4 sm:$0xff]   ;;  %v11855_v61 = vld [vmem:[%s12031_s3] sm:$0x7] }
 0x82c   :  { %6022 = vmatpush1.bf16.msra.mxu0 %v11411_v63  ;;  %8551 = vmatpush3.bf16.msra.mxu1 %v9175_v51  ;;  %v9184_v63 = vld [vmem:[%s12028_s2 + $0x170] ss:$12 sps:$4 sm:$0xff]  }
 0x82d   :  { %6023 = vmatprep.subr.bf16.mxu0 %v11421_v36  ;;  %8552 = vmatprep.subr.bf16.mxu1 %v12056_v13 }
 0x830   :  { %6024 = vmatpush1.bf16.msra.mxu0 %v11427_v10  ;;  %8553 = vmatpush3.bf16.msra.mxu1 %v9176_v29 }
 0x831   :  { %6268 = vmatprep.subr.bf16.mxu0 %v11442_v55  ;;  %8558 = vmatprep.subr.bf16.mxu1 %v12056_v13 }
 0x833   :  { %6042 = vmatmul.mubr.bf16.vlgmr.msra.gmra.mrb[56].mxu0 %v5550_v57  ;;  %8555 = vmatmul.mubr.bf16.vlgmr.msra.gmra.mrb[84].mxu1 %v5550_v57 }
 0x834   :  { %6269 = vmatpush1.bf16.msra.mxu0 %v11447_v22  ;;  %6300 = vmatprep.mubr.bf16.mxu0 %v12053_v16 }
 0x835   :  { %6270 = vmatprep.subr.bf16.mxu0 %v11457_v7  ;;  %8574 = vmatprep.mubr.msk.bf16.mxu1 %vm9396_vm0, %v12056_v13  ;;  %v5583_v7 = vld [vmem:[%s12033_s5] sm:$0x7] }
 0x836   :  { %8559 = vmatpush3.bf16.msra.mxu1 %v9177_v34  ;;  %v5596_v41 = vrot.slane %v5583_v7, %v9804_v52  ;;  %v7829_v34 = vld [vmem:[%s12032_s0 + $0x54] sm:$0xff] }
 0x837   :  { %8560 = vmatprep.subr.bf16.mxu1 %v12056_v13 }
 0x838   :  { %6271 = vmatpush1.bf16.msra.mxu0 %v11463_v11  ;;  %v7693_v11 = vld [vmem:[%s12031_s3 + $0x3] sm:$0x7] }
 0x839   :  { %6272 = vmatprep.subr.bf16.mxu0 %v11473_v40  ;;  %v5302_v40 = vrot.slane %v7693_v11, %v9792_v19  ;;  %v5310_v27 = vrot.slane %v7693_v11, %v9804_v52 }
 0x83a   :  { %8561 = vmatpush3.bf16.msra.mxu1 %v9178_v35 }
 0x83b   :  { %8562 = vmatprep.subr.bf16.mxu1 %v12056_v13 }
 0x83c   :  { %6273 = vmatpush1.bf16.msra.mxu0 %v11479_v32  ;;  %v5588_v32 = vrot.slane %v5583_v7, %v9792_v19 }
 0x83d   :  { %6274 = vmatprep.subr.bf16.mxu0 %v11489_v20  ;;  %v12057_v20 = vld [vmem:[#allocation3_spill] sm:$0xff] }
 0x83e   :  { %8563 = vmatpush3.bf16.msra.mxu1 %v9179_v42 }
 0x83f   :  { %8564 = vmatprep.subr.bf16.mxu1 %v12056_v13 }
 0x840   :  { %6275 = vmatpush1.bf16.msra.mxu0 %v11495_v1  ;;  %v5306_v1 = vrot.slane %v7693_v11, %v12057_v20  ;;  %v6353_v11 = vunpack.c.h.bf16 %v7829_v34 }
 0x841   :  { %6276 = vmatprep.subr.bf16.mxu0 %v11505_v25  ;;  %v5592_v25 = vrot.slane %v5583_v7, %v12057_v20 }
 0x842   :  { %8565 = vmatpush3.bf16.msra.mxu1 %v9180_v56  ;;  %v5869_v56 = vrot.slane %v11855_v61, %v9792_v19 }
 0x843   :  { %8566 = vmatprep.subr.bf16.mxu1 %v12056_v13 }
 0x844   :  { %6277 = vmatpush1.bf16.msra.mxu0 %v11511_v33  ;;  %v8670_v33 = vadd.f32 %v5588_v32, %v5302_v40 }
 0x845   :  { %6278 = vmatprep.subr.bf16.mxu0 %v11521_v47 }
 0x846   :  { %8567 = vmatpush3.bf16.msra.mxu1 %v9181_v62  ;;  %v5873_v62 = vrot.slane %v11855_v61, %v12057_v20 }
 0x847   :  { %8568 = vmatprep.subr.bf16.mxu1 %v12056_v13 }
 0x848   :  { %6279 = vmatpush1.bf16.msra.mxu0 %v11527_v2 }
 0x849   :  { %6280 = vmatprep.subr.bf16.mxu0 %v11537_v49  ;;  %v8672_v49 = vadd.f32 %v5592_v25, %v5306_v1 }
 0x84a   :  { %8569 = vmatpush3.bf16.msra.mxu1 %v9182_v3 }
 0x84b   :  { %8570 = vmatprep.subr.bf16.mxu1 %v12056_v13 }
 0x84c   :  { %6281 = vmatpush1.bf16.msra.mxu0 %v11543_v18 }
 0x84d   :  { %6282 = vmatprep.subr.bf16.mxu0 %v11553_v39 }
 0x84e   :  { %8571 = vmatpush3.bf16.msra.mxu1 %v9183_v9  ;;  %v6352_v9 = vunpack.c.l.bf16 %v7829_v34 }
 0x84f   :  { %8572 = vmatprep.subr.bf16.mxu1 %v12056_v13 }
 0x850   :  { %6283 = vmatpush1.bf16.msra.mxu0 %v11559_v30 }
 0x851   :  { %6554 = vmatprep.subr.bf16.mxu0 %v11569_v28 }
 0x852   :  { %8573 = vmatpush3.bf16.msra.mxu1 %v9184_v63 }
 0x853   :  { %8578 = vmatprep.subr.bf16.mxu1 %v12056_v13 }
 0x8c4   :  { %v5517_v36 = vpop.f32.mrb[76].mxu1 }
 0x8c5   :  { %v8516_v10 = vpop.f32.mrb[77].mxu1  ;;  %v5518_v51 = vadd.f32 %v5517_v36, %v5310_v27 }
 0x8c6   :  { %v5520_v55 = vpop.f32.mrb[78].mxu1 }
 0x8c7   :  { %v8517_v22 = vpop.f32.mrb[79].mxu1 }
 0x8e6   :  { %v5762_v47 = vpop.f32.mrb[52].mxu0  ;;  %v5803_v2 = vpop.f32.mrb[80].mxu1 }
 0x8e7   :  { %v8671_v18 = vadd.f32 %v8670_v33, %v5762_v47  ;;  %v5764_v39 = vpop.f32.mrb[53].mxu0  ;;  %v8536_v30 = vpop.f32.mrb[81].mxu1  ;;  %v5804_v35 = vadd.f32 %v5803_v2, %v5596_v41 }
 0x8e8   :  { %v5766_v28 = vpop.f32.mrb[54].mxu0  ;;  %v5806_v37 = vpop.f32.mrb[82].mxu1  ;;  %v8673_v45 = vadd.f32 %v8672_v49, %v5764_v39 }
 0x8e9   :  { %v7746_v59 = vmul.f32 -1.442695, %v8671_v18  ;;  %v5767_v0 = vpop.f32.mrb[55].mxu0  ;;  %v8537_v58 = vpop.f32.mrb[83].mxu1 }
 0x8ea   :  { %v7747_v4 = vmul.f32 -1.442695, %v8673_v45  ;;  %v9185_v0 = vld [vmem:[%s12030_s4 + $0x8] ss:$12 sps:$4 sm:$0xff]  }
 0x8eb   :  { %9339 = vpow2.f32 %v7746_v59 }
 0x8ec   :  { %9341 = vpow2.f32 %v7747_v4 }
 0x8f5   :  { %v9340_v8 = vpop.eup %9339 }
 0x8f6   :  { %v5813_v57 = vadd.f32 1.0, %v9340_v8  ;;  %v9342_v53 = vpop.eup %9341  ;;  %v9186_v8 = vld [vmem:[%s12030_s4 + $0x20] ss:$12 sps:$4 sm:$0xff]  }
 0x8f7   :  { %v5820_v54 = vadd.f32 1.0, %v9342_v53 }
 0x8f8   :  { %9343 = vrcp.f32 %v5813_v57 }
 0x8f9   :  { %9345 = vrcp.f32 %v5820_v54 }
 0x902   :  { %v9344_v29 = vpop.eup %9343 }
 0x903   :  { %v5823_v42 = vmul.f32 %v9344_v29, %v5518_v51  ;;  %v9346_v49 = vpop.eup %9345 }
 0x904   :  { %v5826_v18 = vsub.f32 1.0, %v9346_v49  ;;  %v5828_v37 = vmul.f32 %v9346_v49, %v11598_v43  ;;  %v6409_v49 = vld [vmem:[%s12033_s5] sm:$0x7] }
 0x905   :  { %v5824_v3 = vadd.f32 %v5823_v42, %v5804_v35  ;;  %v12059_v35 = vld [vmem:[#allocation5_spill] sm:$0xff] }
 0x906   :  { %v6043_v63 = vpop.f32.mrb[56].mxu0  ;;  %v6084_v10 = vpop.f32.mrb[84].mxu1 }
 0x907   :  { %9347 = vtanh.f32 %v5824_v3  ;;  %v6044_v36 = vadd.f32 %v6043_v63, %v5869_v56  ;;  %v6045_v55 = vpop.f32.mrb[57].mxu0  ;;  %v8556_v22 = vpop.f32.mrb[85].mxu1  ;;  %v9197_v56 = vld [vmem:[%s12034_s6 + $0x20] sm:$0xff]   ;;  %v9199_v3 = vld [vmem:[%s12034_s6 + $0x30] sm:$0xff]   ;;  %v12060_v63 = vld [vmem:[#allocation6_spill] sm:$0xff] }
 0x908   :  { %v6046_v7 = vadd.f32 %v6045_v55, %v5873_v62  ;;  %v6047_v40 = vpop.f32.mrb[58].mxu0  ;;  %v6087_v32 = vpop.f32.mrb[86].mxu1  ;;  %v9198_v62 = vld [vmem:[%s12034_s6 + $0x28] sm:$0xff]   ;;  %v6670_v55 = vpack.c.bf16 %v11598_v43, %v11241_v14  ;;  %v9201_v22 = vld [vmem:[%s12036_s8] sm:$0xff]   ;;  %v9204_v14 = vld [vmem:[%s12036_s8 + $0x18] sm:$0xff]  }
 0x909   :  { %v6355_v1 = vadd.f32 %v6352_v9, %v6044_v36  ;;  %v6048_v25 = vpop.f32.mrb[59].mxu0  ;;  %v8557_v33 = vpop.f32.mrb[87].mxu1  ;;  %v9200_v9 = vld [vmem:[%s12034_s6 + $0x38] sm:$0xff]   ;;  %v9205_v43 = vld [vmem:[%s12036_s8 + $0x20] sm:$0xff]   ;;  %v9206_v40 = vld [vmem:[%s12036_s8 + $0x28] sm:$0xff]  }
 0x90a   :  { %v6362_v2 = vadd.f32 %v6353_v11, %v6046_v7  ;;  %v9202_v7 = vld [vmem:[%s12036_s8 + $0x8] sm:$0xff]   ;;  %v9203_v11 = vld [vmem:[%s12036_s8 + $0x10] sm:$0xff]  }
 0x90b   :  { %v7831_v47 = vmul.f32 -1.442695, %v6355_v1  ;;  %v9207_v32 = vld [vmem:[%s12036_s8 + $0x30] sm:$0xff]   ;;  %v9208_v1 = vld [vmem:[%s12036_s8 + $0x38] sm:$0xff]  }
 0x90c   :  { %v7832_v39 = vmul.f32 -1.442695, %v6362_v2 }
 0x90d   :  { %9349 = vpow2.f32 %v7831_v47 }
 0x90e   :  { %9351 = vpow2.f32 %v7832_v39 }
 0x911   :  { %v9348_v30 = vpop.eup %9347 }
 0x912   :  { %v5827_v28 = vmul.f32 %v9348_v30, %v5826_v18  ;;  %v7804_v18 = vld [vmem:[%s12031_s3 + $0x3] sm:$0x7]  ;;  %v6414_v30 = vrot.slane %v6409_v49, %v9792_v19 }
 0x913   :  { %v6128_v39 = vrot.slane %v7804_v18, %v9792_v19 }
 0x914   :  { %v11865_v59 = vadd.f32 %v5828_v37, %v5827_v28  ;;  %v6132_v28 = vrot.slane %v7804_v18, %v12057_v20  ;;  %v6418_v37 = vrot.slane %v6409_v49, %v12057_v20 }
 0x916   :  { %v6090_v58 = vpack.c.bf16 %v11865_v59, %v11865_v59 }
 0x917   :  { %v9350_v45 = vpop.eup %9349 }
 0x918   :  { %v6359_v4 = vadd.f32 1.0, %v9350_v45  ;;  %6301 = vmatmul.mubr.bf16.vlgmr.msra.gmra.mrb[60].mxu0 %v6090_v58  ;;  %8575 = vmatmul.mubr.bf16.vlgmr.msra.gmra.mrb[88].mxu1 %v6090_v58  ;;  %v9352_v57 = vpop.eup %9351 }
 0x919   :  { %6555 = vmatpush1.bf16.msra.mxu0 %v11603_v44  ;;  %8579 = vmatpush3.bf16.msra.mxu1 %v9185_v0  ;;  %v9187_v44 = vld [vmem:[%s12030_s4 + $0x38] ss:$12 sps:$4 sm:$0xff]   ;;  %v6366_v53 = vadd.f32 1.0, %v9352_v57  ;;  %v8674_v0 = vadd.f32 %v6414_v30, %v6128_v39 }
 0x91a   :  { %9353 = vrcp.f32 %v6359_v4  ;;  %6556 = vmatprep.subr.bf16.mxu0 %v11613_v6  ;;  %8580 = vmatprep.subr.bf16.mxu1 %v12056_v13  ;;  %v5877_v6 = vrot.slane %v11855_v61, %v9804_v52  ;;  %v8676_v4 = vadd.f32 %v6418_v37, %v6132_v28 }
 0x91b   :  { %6586 = vmatprep.mubr.bf16.mxu0 %v12053_v16  ;;  %8594 = vmatprep.mubr.msk.bf16.mxu1 %vm9396_vm0, %v12056_v13  ;;  %v7830_v16 = vld [vmem:[%s12032_s0 + $0x5c] sm:$0xf]  ;;  %9355 = vrcp.f32 %v6366_v53 }
 0x91c   :  { %v6354_v27 = vunpack.c.l.bf16 %v7830_v16 }
 0x91d   :  { %6557 = vmatpush1.bf16.msra.mxu0 %v11619_v17  ;;  %8581 = vmatpush3.bf16.msra.mxu1 %v9186_v8  ;;  %v9188_v17 = vld [vmem:[%s12030_s4 + $0x50] ss:$12 sps:$4 sm:$0xff]  }
 0x91e   :  { %6558 = vmatprep.subr.bf16.mxu0 %v11629_v24  ;;  %8582 = vmatprep.subr.bf16.mxu1 %v12056_v13  ;;  %v6085_v24 = vadd.f32 %v6084_v10, %v5877_v6  ;;  %v12061_v10 = vld [vmem:[#allocation7_spill] sm:$0xff] }
 0x91f   :  { %v6669_v36 = vpack.c.bf16 %v12061_v10, %v12060_v63 }
 0x921   :  { %6559 = vmatpush1.bf16.msra.mxu0 %v11638_v5  ;;  %8583 = vmatpush3.bf16.msra.mxu1 %v9187_v44  ;;  %v9189_v5 = vld [vmem:[%s12030_s4 + $0x68] ss:$12 sps:$4 sm:$0xff]  }
 0x922   :  { %6560 = vmatprep.subr.bf16.mxu0 %v11648_v12  ;;  %8584 = vmatprep.subr.bf16.mxu1 %v12056_v13  ;;  %v9190_v12 = vld [vmem:[%s12030_s4 + $0x80] ss:$12 sps:$4 sm:$0xff]  }
 0x924   :  { %v9354_v41 = vpop.eup %9353 }
 0x925   :  { %v6369_v54 = vmul.f32 %v9354_v41, %v6085_v24  ;;  %6561 = vmatpush1.bf16.msra.mxu0 %v11659_v50  ;;  %8585 = vmatpush3.bf16.msra.mxu1 %v9188_v17  ;;  %v9191_v50 = vld [vmem:[%s12030_s4 + $0x98] ss:$12 sps:$4 sm:$0xff]  }
 0x926   :  { %6562 = vmatprep.subr.bf16.mxu0 %v11669_v31  ;;  %8586 = vmatprep.subr.bf16.mxu1 %v12056_v13  ;;  %v9356_v31 = vpop.eup %9355 }
 0x927   :  { %v6370_v61 = vadd.f32 %v6369_v54, %v6354_v27  ;;  %v6374_v29 = vmul.f32 %v9356_v31, %v11734_v23  ;;  %v9196_v23 = vld [vmem:[%s12034_s6 + $0x18] sm:$0xff]  }
 0x929   :  { %9357 = vtanh.f32 %v6370_v61  ;;  %6563 = vmatpush1.bf16.msra.mxu0 %v11675_v26  ;;  %8587 = vmatpush3.bf16.msra.mxu1 %v9189_v5  ;;  %v9192_v26 = vld [vmem:[%s12030_s4 + $0xb0] ss:$12 sps:$4 sm:$0xff]   ;;  %v6136_v5 = vrot.slane %v7804_v18, %v9804_v52  ;;  %v6422_v61 = vrot.slane %v6409_v49, %v9804_v52 }
 0x92a   :  { %6564 = vmatprep.subr.bf16.mxu0 %v11685_v48  ;;  %8588 = vmatprep.subr.bf16.mxu1 %v12056_v13  ;;  %v9193_v48 = vld [vmem:[%s12034_s6] sm:$0xff]  }
 0x92d   :  { %6565 = vmatpush1.bf16.msra.mxu0 %v11691_v21  ;;  %8589 = vmatpush3.bf16.msra.mxu1 %v9190_v12  ;;  %v6372_v21 = vsub.f32 1.0, %v9356_v31 }
 0x92e   :  { %6566 = vmatprep.subr.bf16.mxu0 %v11701_v15  ;;  %8590 = vmatprep.subr.bf16.mxu1 %v12056_v13 }
 0x931   :  { %6567 = vmatpush1.bf16.msra.mxu0 %v11707_v60  ;;  %8591 = vmatpush3.bf16.msra.mxu1 %v9191_v50 }
 0x932   :  { %6568 = vmatprep.subr.bf16.mxu0 %v11717_v46  ;;  %8592 = vmatprep.subr.bf16.mxu1 %v12056_v13  ;;  %v9194_v13 = vld [vmem:[%s12034_s6 + $0x8] sm:$0xff]  }
 0x933   :  { %v9358_v15 = vpop.eup %9357  ;;  %v12058_v46 = vld [vmem:[#allocation4_spill] sm:$0xff] }
 0x934   :  { %v6373_v51 = vmul.f32 %v9358_v15, %v6372_v21  ;;  %v6668_v42 = vpack.c.bf16 %v12059_v35, %v12058_v46  ;;  %v7860_v21 = vld [vmem:[%s12037_s7] ss:$0 sm:$0xff] }
 0x935   :  { %6569 = vmatpush1.bf16.msra.mxu0 %v11723_v38  ;;  %8593 = vmatpush3.bf16.msra.mxu1 %v9192_v26  ;;  %v9195_v38 = vld [vmem:[%s12034_s6 + $0x10] sm:$0xff]  }
 0x936   :  { %8598 = vmatprep.subr.bf16.mxu0 %v9193_v48  ;;  %v6375_v60 = vadd.f32 %v6374_v29, %v6373_v51  ;;  %8622 = vmatprep.subr.bf16.mxu1 %v9201_v22 }
 0x938   :  { %v6376_v34 = vpack.c.bf16 %v6375_v60, %v6375_v60  ;;  %6658 = vst [vmem:[%s12035_s11] sm:$0xff] %v6375_v60 }
 0x93a   :  { %6587 = vmatmul.mubr.bf16.vlgmr.msra.gmra.mrb[60].mxu0 %v6376_v34  ;;  %8595 = vmatmul.mubr.bf16.vlgmr.msra.gmra.mrb[92].mxu1 %v6376_v34 }
 0x93b   :  { %8599 = vmatpush3.bf16.msra.mxu0 %v9193_v48  ;;  %8614 = vmatprep.mubr.bf16.mxu0 %v6668_v42 }
 0x93c   :  { %8600 = vmatprep.subr.bf16.mxu0 %v9194_v13  ;;  %8623 = vmatpush3.bf16.msra.mxu1 %v9201_v22 }
 0x93d   :  { %8624 = vmatprep.subr.bf16.mxu1 %v9202_v7 }
 0x93f   :  { %8601 = vmatpush3.bf16.msra.mxu0 %v9194_v13 }
 0x940   :  { %8602 = vmatprep.subr.bf16.mxu0 %v9195_v38  ;;  %8625 = vmatpush3.bf16.msra.mxu1 %v9202_v7 }
 0x941   :  { %8626 = vmatprep.subr.bf16.mxu1 %v9203_v11 }
 0x943   :  { %8603 = vmatpush3.bf16.msra.mxu0 %v9195_v38 }
 0x944   :  { %8604 = vmatprep.subr.bf16.mxu0 %v9196_v23  ;;  %8627 = vmatpush3.bf16.msra.mxu1 %v9203_v11  ;;  %v7869_v11 = vld [vmem:[%s12038_s9] ss:$0 sm:$0xff] }
 0x945   :  { %8628 = vmatprep.subr.bf16.mxu1 %v9204_v14 }
 0x947   :  { %8605 = vmatpush3.bf16.msra.mxu0 %v9196_v23 }
 0x948   :  { %8606 = vmatprep.subr.bf16.mxu0 %v9197_v56  ;;  %8629 = vmatpush3.bf16.msra.mxu1 %v9204_v14 }
 0x949   :  { %8630 = vmatprep.subr.bf16.mxu1 %v9205_v43 }
 0x94b   :  { %8607 = vmatpush3.bf16.msra.mxu0 %v9197_v56 }
 0x94c   :  { %8608 = vmatprep.subr.bf16.mxu0 %v9198_v62  ;;  %8631 = vmatpush3.bf16.msra.mxu1 %v9205_v43 }
 0x94d   :  { %8632 = vmatprep.subr.bf16.mxu1 %v9206_v40 }
 0x94f   :  { %8609 = vmatpush3.bf16.msra.mxu0 %v9198_v62 }
 0x950   :  { %8610 = vmatprep.subr.bf16.mxu0 %v9199_v3  ;;  %8633 = vmatpush3.bf16.msra.mxu1 %v9206_v40 }
 0x951   :  { %8634 = vmatprep.subr.bf16.mxu1 %v9207_v32 }
 0x953   :  { %8611 = vmatpush3.bf16.msra.mxu0 %v9199_v3 }
 0x954   :  { %8612 = vmatprep.subr.bf16.mxu0 %v9200_v9  ;;  %8635 = vmatpush3.bf16.msra.mxu1 %v9207_v32 }
 0x955   :  { %8636 = vmatprep.subr.bf16.mxu1 %v9208_v1 }
 0x957   :  { %8613 = vmatpush3.bf16.msra.mxu0 %v9200_v9 }
 0x958   :  { %8637 = vmatpush3.bf16.msra.mxu1 %v9208_v1 }
 0x95a   :  { %8615 = vmatmul.mubr.bf16.vlgmr.msra.gmra.mrb[64].mxu0 %v6669_v36 }
 0x95b   :  { %8618 = vmatprep.mubr.bf16.mxu0 %v6670_v55 }
 0x9eb   :  { %v6343_v25 = vpop.f32.mrb[88].mxu1 }
 0x9ec   :  { %v8576_v33 = vpop.f32.mrb[89].mxu1  ;;  %v6344_v50 = vadd.f32 %v6343_v25, %v6136_v5 }
 0x9ed   :  { %v6346_v47 = vpop.f32.mrb[90].mxu1 }
 0x9ee   :  { %v8577_v2 = vpop.f32.mrb[91].mxu1 }
 0xa0d   :  { %v6588_v58 = vpop.f32.mrb[60].mxu0  ;;  %v6629_v45 = vpop.f32.mrb[92].mxu1 }
 0xa0e   :  { %v8675_v8 = vadd.f32 %v8674_v0, %v6588_v58  ;;  %v6590_v44 = vpop.f32.mrb[61].mxu0  ;;  %v8596_v57 = vpop.f32.mrb[93].mxu1  ;;  %v6630_v26 = vadd.f32 %v6629_v45, %v6422_v61 }
 0xa0f   :  { %v6592_v6 = vpop.f32.mrb[62].mxu0  ;;  %v6632_v16 = vpop.f32.mrb[94].mxu1  ;;  %v8677_v27 = vadd.f32 %v8676_v4, %v6590_v44 }
 0xa10   :  { %v7857_v53 = vmul.f32 -1.442695, %v8675_v8  ;;  %v6593_v17 = vpop.f32.mrb[63].mxu0  ;;  %v8597_v24 = vpop.f32.mrb[95].mxu1 }
 0xa11   :  { %v7858_v41 = vmul.f32 -1.442695, %v8677_v27 }
 0xa12   :  { %9359 = vpow2.f32 %v7857_v53 }
 0xa13   :  { %9361 = vpow2.f32 %v7858_v41 }
 0xa1c   :  { %v9360_v19 = vpop.eup %9359 }
 0xa1d   :  { %v6639_v54 = vadd.f32 1.0, %v9360_v19  ;;  %v9362_v20 = vpop.eup %9361 }
 0xa1e   :  { %v6646_v12 = vadd.f32 1.0, %v9362_v20 }
 0xa1f   :  { %9363 = vrcp.f32 %v6639_v54 }
 0xa20   :  { %9365 = vrcp.f32 %v6646_v12 }
 0xa29   :  { %v9364_v31 = vpop.eup %9363 }
 0xa2a   :  { %v6649_v48 = vmul.f32 %v9364_v31, %v6344_v50  ;;  %v9366_v62 = vpop.eup %9365 }
 0xa2b   :  { %v6652_v63 = vsub.f32 1.0, %v9366_v62  ;;  %v6654_v55 = vmul.f32 %v9366_v62, %v11865_v59 }
 0xa2c   :  { %v6650_v15 = vadd.f32 %v6649_v48, %v6630_v26 }
 0xa2d   :  { %v8616_v51 = vpop.f32.mrb[64].mxu0 }
 0xa2e   :  { %9367 = vtanh.f32 %v6650_v15  ;;  %v6786_v29 = vadd.f32 %v8616_v51, %v7860_v21  ;;  %v6777_v60 = vpop.f32.mrb[65].mxu0 }
 0xa2f   :  { %v6778_v34 = vadd.f32 %v7860_v21, %v6777_v60  ;;  %v8617_v13 = vpop.f32.mrb[66].mxu0 }
 0xa30   :  { %v6789_v46 = vadd.f32 %v8617_v13, %v7860_v21  ;;  %v6780_v35 = vpop.f32.mrb[67].mxu0  ;;  %v6810_v42 = vmax.f32 %v6786_v29, 0.0 }
 0xa31   :  { %v6781_v52 = vadd.f32 %v7860_v21, %v6780_v35  ;;  %v6808_v23 = vmax.f32 %v6778_v34, 0.0 }
 0xa32   :  { %v6811_v38 = vmax.f32 %v6789_v46, 0.0 }
 0xa33   :  { %v6809_v56 = vmax.f32 %v6781_v52, 0.0 }
 0xa34   :  { %v6817_v3 = vpack.c.bf16 %v6811_v38, %v6810_v42 }
 0xa35   :  { %v6816_v9 = vpack.c.bf16 %v6809_v56, %v6808_v23 }
 0xa37   :  { %8638 = vmatprep.mubr.bf16.mxu1 %v6816_v9 }
 0xa38   :  { %v9368_v10 = vpop.eup %9367  ;;  %8639 = vmatmul.mubr.bf16.vlgmr.msra.gmra.mrb[96].mxu1 %v6817_v3 }
 0xa39   :  { %v6653_v36 = vmul.f32 %v9368_v10, %v6652_v63 }
 0xa3b   :  { %v6655_v22 = vadd.f32 %v6654_v55, %v6653_v36 }
 0xa3d   :  { %7859 = vst [vmem:[%s12035_s11 + $0x8] sm:$0xff] %v6655_v22  ;;  %v6671_v7 = vpack.c.bf16 %v6655_v22, %v11865_v59 }
 0xa3f   :  { %8619 = vmatmul.mubr.bf16.gmra.mrb[68].mxu0 %v6671_v7 }
 0xb0b   :  { %v8640_v14 = vpop.f32.mrb[96].mxu1 }
 0xb0c   :  { %v6934_v43 = vadd.f32 %v8640_v14, %v7869_v11  ;;  %v6925_v40 = vpop.f32.mrb[97].mxu1 }
 0xb0d   :  { %v6926_v32 = vadd.f32 %v7869_v11, %v6925_v40  ;;  %v8641_v1 = vpop.f32.mrb[98].mxu1 }
 0xb0e   :  { %6958 = vst [vmem:[%s12039_s10 + $0x10] sm:$0xff] %v6934_v43  ;;  %v6937_v25 = vadd.f32 %v8641_v1, %v7869_v11  ;;  %v6928_v33 = vpop.f32.mrb[99].mxu1 }
 0xb0f   :  { %6956 = vst [vmem:[%s12039_s10] sm:$0xff] %v6926_v32  ;;  %v6929_v59 = vadd.f32 %v7869_v11, %v6928_v33 }
 0xb10   :  { %6959 = vst [vmem:[%s12039_s10 + $0x18] sm:$0xff] %v6937_v25 }
 0xb11   :  { %6957 = vst [vmem:[%s12039_s10 + $0x8] sm:$0xff] %v6929_v59 }
 0xb12   :  { %v8620_v47 = vpop.f32.mrb[68].mxu0 }
 0xb13   :  { %v6802_v2 = vadd.f32 %v8620_v47, %v7860_v21  ;;  %v6793_v49 = vpop.f32.mrb[69].mxu0 }
 0xb14   :  { %v6794_v18 = vadd.f32 %v7860_v21, %v6793_v49  ;;  %v8621_v39 = vpop.f32.mrb[70].mxu0 }
 0xb15   :  { %v6805_v30 = vadd.f32 %v8621_v39, %v7860_v21  ;;  %v6796_v28 = vpop.f32.mrb[71].mxu0  ;;  %v6814_v0 = vmax.f32 %v6802_v2, 0.0 }
 0xb16   :  { %v6797_v37 = vadd.f32 %v7860_v21, %v6796_v28  ;;  %v6812_v45 = vmax.f32 %v6794_v18, 0.0 }
 0xb17   :  { %v6815_v58 = vmax.f32 %v6805_v30, 0.0 }
 0xb18   :  { %v6813_v4 = vmax.f32 %v6797_v37, 0.0 }
 0xb19   :  { %v6819_v8 = vpack.c.bf16 %v6815_v58, %v6814_v0 }
 0xb1a   :  { %v6818_v44 = vpack.c.bf16 %v6813_v4, %v6812_v45 }
 0xb1c   :  { %8642 = vmatprep.mubr.bf16.mxu1 %v6818_v44 }
 0xb1d   :  { %8643 = vmatmul.mubr.bf16.gmra.mrb[100].mxu1 %v6819_v8 }
 0xbf0   :  { %v8644_v57 = vpop.f32.mrb[100].mxu1 }
 0xbf1   :  { %v6950_v6 = vadd.f32 %v8644_v57, %v7869_v11  ;;  %v6941_v16 = vpop.f32.mrb[101].mxu1 }
 0xbf2   :  { %v6942_v53 = vadd.f32 %v7869_v11, %v6941_v16  ;;  %v8645_v17 = vpop.f32.mrb[102].mxu1 }
 0xbf3   :  { %6962 = vst [vmem:[%s12039_s10 + $0x30] sm:$0xff] %v6950_v6  ;;  %v6953_v24 = vadd.f32 %v8645_v17, %v7869_v11  ;;  %v6944_v27 = vpop.f32.mrb[103].mxu1 }
 0xbf4   :  { %6960 = vst [vmem:[%s12039_s10 + $0x20] sm:$0xff] %v6942_v53  ;;  %v6945_v41 = vadd.f32 %v7869_v11, %v6944_v27 }
 0xbf5   :  { %6963 = vst [vmem:[%s12039_s10 + $0x38] sm:$0xff] %v6953_v24 }
 0xbf6   :  { %6961 = vst [vmem:[%s12039_s10 + $0x28] sm:$0xff] %v6945_v41 }

</bundles_post_ra>
